<compile_context>
chip_gen: v7x
topology: tpu7x:2x2x1
jax: 0.10.0
libtpu: 0.0.40
codegen_flags: <defaults>
</compile_context>

<pallas_src>
import numpy as np
import jax
import jax.numpy as jnp
from jax.experimental import pallas as pl
from jax.experimental.pallas import tpu as pltpu

EPS = 1e-5


def _round_up(x, m):
    return (x + m - 1) // m * m


def fuse_bn(gamma, beta, mean, var):
    scale = gamma / jnp.sqrt(var + EPS)
    shift = beta - mean * scale
    return scale, shift


# ---------------------------------------------------------------------------
# Kernel
# ---------------------------------------------------------------------------
def make_kernel(P, halo, n_seg, Ls_pad, Ll_pad, Ls, Ll, pad_replace):
    """P: max filter half-width; n_seg = 2P+1 effective section taps;
    C = n_seg + 3 (common conv taps)."""
    C = n_seg + 3

    def process(x, Wk, ck, bk, pad_row, L_pad, L_valid):
        # x: (L_pad, D)  Wk: (D, C)  ck: (1, C)  bk: (1, 2)  pad_row: (1, D)
        # One MXU pass does the channel reduction for every tap of every filter
        # (BN scale folded into Wk, BN shift folded into ck).
        Y = jnp.dot(x, Wk, preferred_element_type=jnp.float32) + ck   # (L_pad, C)

        if L_valid != L_pad:                      # static; no-op at test shapes
            row = jax.lax.broadcasted_iota(jnp.int32, (L_pad, 1), 0)
            valid = (row < L_valid).astype(jnp.float32)
            Y = Y * valid

        # Zero halo (8-aligned chunks) implements the conv's "same" zero pad.
        zpad = jnp.zeros((halo, C), jnp.float32)
        Yp = jnp.concatenate([zpad, Y, zpad], axis=0)                  # (L_pad+2*halo, C)

        # Section branch: effective filter taps at offsets -P..P (columns 0..n_seg-1).
        seg = bk[0:1, 0:1]
        for j in range(n_seg):
            a = halo - P + j
            seg = seg + Yp[a:a + L_pad, j:j + 1]
        # Common branch: kernel_size=3 taps (columns n_seg..n_seg+2).
        com = bk[0:1, 1:2]
        for t in range(3):
            a = halo - 1 + t
            c0 = n_seg + t
            com = com + Yp[a:a + L_pad, c0:c0 + 1]

        mask = jax.nn.sigmoid(seg) * jax.nn.sigmoid(com)               # (L_pad, 1)

        if pad_replace:
            out = x * mask + (1.0 - mask) * pad_row
        else:
            out = x * mask

        if L_valid != L_pad:
            msum = jnp.sum(mask * valid, axis=0, keepdims=True)
        else:
            msum = jnp.sum(mask, axis=0, keepdims=True)                # (1, 1)
        return out, msum

    def kernel(es_ref, el_ref, w_ref, c_ref, b_ref, pad_ref,
               os_ref, ol_ref, mss_ref, msl_ref):
        pad_row = pad_ref[...]                                         # (1, D)

        ssum = jnp.zeros((1, 1), jnp.float32)
        for k in range(6):                                             # short sections
            out, m = process(es_ref[0, k], w_ref[k], c_ref[k], b_ref[k],
                             pad_row, Ls_pad, Ls)
            os_ref[0, k] = out
            ssum = ssum + m

        lsum = jnp.zeros((1, 1), jnp.float32)
        for k in range(4):                                             # long sections
            out, m = process(el_ref[0, k], w_ref[6 + k], c_ref[6 + k],
                             b_ref[6 + k], pad_row, Ll_pad, Ll)
            ol_ref[0, k] = out
            lsum = lsum + m

        mss_ref[0] = ssum
        msl_ref[0] = lsum

    return kernel


# ---------------------------------------------------------------------------
# Parameter folding (wrapper-side, tiny, one-time)
# ---------------------------------------------------------------------------
def build_folded_params(sections, common, filter_sizes, D):
    assert all(f % 2 == 1 for f in filter_sizes), \
        "Conv1d padding=floor(f/2) keeps length only for odd filter sizes"
    P = max(max(f // 2 for f in filter_sizes), 1)
    n_seg = 2 * P + 1
    C = n_seg + 3

    c_scale, c_shift = fuse_bn(common["gamma"], common["beta"],
                               common["mean"], common["var"])
    Wc = common["w"]                                    # (3, D)
    Wc_fold = (Wc * c_scale[None, :]).T                 # (D, 3)
    cc = Wc @ c_shift                                   # (3,)
    bc = common["b"]

    Ws, cs, bs = [], [], []
    for sec in sections:
        scale, shift = fuse_bn(sec["gamma"], sec["beta"], sec["mean"], sec["var"])
        # Collapse all this section's filters into one effective (2P+1)-tap filter.
        V = jnp.zeros((n_seg, D), jnp.float32)
        for f, w in zip(filter_sizes, sec["ws"]):
            p = f // 2
            V = V.at[P - p:P - p + f].add(w)
        Wk = jnp.concatenate([(V * scale[None, :]).T, Wc_fold], axis=1)   # (D, C)
        ck = jnp.concatenate([V @ shift, cc]).reshape(1, C)                # (1, C)
        b_seg = sum(sec["bs"])
        bk = jnp.stack([jnp.asarray(b_seg, jnp.float32),
                        jnp.asarray(bc, jnp.float32)]).reshape(1, 2)
        Ws.append(Wk)
        cs.append(ck)
        bs.append(bk)
    return jnp.stack(Ws), jnp.stack(cs), jnp.stack(bs), P, n_seg, C


# ---------------------------------------------------------------------------
# pallas_call wrapper
# ---------------------------------------------------------------------------
def cnn_filter_bn_forward(short_ids, long_ids, B, params, filter_sizes,
                          pad_replace):
    emb_table, sections, common, pad_emb = params
    D = emb_table.shape[1]
    Ls, Ll = short_ids.shape[1], long_ids.shape[1]
    Ls_pad, Ll_pad = _round_up(Ls, 8), _round_up(Ll, 8)

    # Embedding lookup (glue); keep channels-last: (B, num_sec, L, D).
    emb_s = emb_table[short_ids].reshape(B, 6, Ls, D)
    emb_l = emb_table[long_ids].reshape(B, 4, Ll, D)
    if Ls_pad != Ls:   # no-op at test shapes (16, 24 are multiples of 8)
        emb_s = jnp.pad(emb_s, ((0, 0), (0, 0), (0, Ls_pad - Ls), (0, 0)))
    if Ll_pad != Ll:
        emb_l = jnp.pad(emb_l, ((0, 0), (0, 0), (0, Ll_pad - Ll), (0, 0)))

    W_all, c_all, b_all, P, n_seg, C = build_folded_params(
        sections, common, filter_sizes, D)
    halo = _round_up(P, 8)

    kernel = make_kernel(P, halo, n_seg, Ls_pad, Ll_pad, Ls, Ll, pad_replace)

    in_specs = [
        pl.BlockSpec((1, 6, Ls_pad, D), lambda b: (b, 0, 0, 0)),   # short emb
        pl.BlockSpec((1, 4, Ll_pad, D), lambda b: (b, 0, 0, 0)),   # long emb
        pl.BlockSpec((10, D, C), lambda b: (0, 0, 0)),             # folded weights
        pl.BlockSpec((10, 1, C), lambda b: (0, 0, 0)),             # folded shifts
        pl.BlockSpec((10, 1, 2), lambda b: (0, 0, 0)),             # conv biases
        pl.BlockSpec((1, D), lambda b: (0, 0)),                    # pad embedding
    ]
    out_specs = (
        pl.BlockSpec((1, 6, Ls_pad, D), lambda b: (b, 0, 0, 0)),
        pl.BlockSpec((1, 4, Ll_pad, D), lambda b: (b, 0, 0, 0)),
        pl.BlockSpec((1, 1, 1), lambda b: (b, 0, 0)),
        pl.BlockSpec((1, 1, 1), lambda b: (b, 0, 0)),
    )
    out_shape = (
        jax.ShapeDtypeStruct((B, 6, Ls_pad, D), jnp.float32),
        jax.ShapeDtypeStruct((B, 4, Ll_pad, D), jnp.float32),
        jax.ShapeDtypeStruct((B, 1, 1), jnp.float32),   # sum of short masks per batch
        jax.ShapeDtypeStruct((B, 1, 1), jnp.float32),   # sum of long masks per batch
    )

    out_s, out_l, msum_s, msum_l = pl.pallas_call(
        kernel,
        out_shape=out_shape,
        grid_spec=pltpu.PrefetchScalarGridSpec(
            num_scalar_prefetch=0,
            grid=(B,),
            in_specs=in_specs,
            out_specs=out_specs),
        compiler_params=pltpu.CompilerParams(
            dimension_semantics=("parallel",)),
    )(emb_s, emb_l, W_all, c_all, b_all, pad_emb)

    emb_short_out = out_s[:, :, :Ls, :].reshape(B * 6, Ls, D)
    emb_long_out = out_l[:, :, :Ll, :].reshape(B * 4, Ll, D)
    mean_short = jnp.sum(msum_s) / (B * 6 * Ls)
    mean_long = jnp.sum(msum_l) / (B * 4 * Ll)
    mean_mask = 0.5 * (mean_short + mean_long)   # == (mask_s.mean()+mask_l.mean())/2
    return (emb_short_out, emb_long_out), mean_mask


# ---------------------------------------------------------------------------
# Deterministic parameter construction (stands in for the PyTorch module init)
# ---------------------------------------------------------------------------
def init_params(key, vocab, D, filter_sizes):
    nf = len(filter_sizes)
    n_keys = 1 + 10 * (1 + 2 * nf) + 3
    keys = list(jax.random.split(key, n_keys))
    ki = iter(keys)

    emb_table = 0.1 * jax.random.normal(next(ki), (vocab, D), jnp.float32)

    def bn_params(k):
        k1, k2, k3, k4 = jax.random.split(k, 4)
        return dict(
            gamma=1.0 + 0.1 * jax.random.normal(k1, (D,), jnp.float32),
            beta=0.1 * jax.random.normal(k2, (D,), jnp.float32),
            mean=0.1 * jax.random.normal(k3, (D,), jnp.float32),
            var=1.0 + 0.1 * jax.random.uniform(k4, (D,), jnp.float32))

    # 10 per-section heads (convs[0..5] for short, convs[6..9] for long).
    sections = []
    for _ in range(10):
        bn = bn_params(next(ki))
        ws, bs = [], []
        for f in filter_sizes:
            bound = 1.0 / np.sqrt(D * f)
            w = jax.random.uniform(next(ki), (f, D), jnp.float32, -bound, bound)
            b = jax.random.uniform(next(ki), (), jnp.float32, -bound, bound)
            b = b + 3.0 / nf                     # matches `bias += 3/len(filter_sizes)`
            ws.append(w)
            bs.append(b)
        sections.append(dict(**bn, ws=ws, bs=bs))

    # common_conv = BN(D) -> Conv1d(D, 1, k=3, padding=1), bias += 3
    bn = bn_params(next(ki))
    bound = 1.0 / np.sqrt(D * 3)
    cw = jax.random.uniform(next(ki), (3, D), jnp.float32, -bound, bound)
    cb = jax.random.uniform(next(ki), (), jnp.float32, -bound, bound) + 3.0
    common = dict(**bn, w=cw, b=cb)

    # TODO(synk): pad_embedding comes from tokenizer('[UNK]') in the original;
    # here it is modeled as a fixed row of the embedding table.
    pad_emb = emb_table[1].reshape(1, D)
    return emb_table, sections, common, pad_emb


if __name__ == "__main__":
    key = jax.random.PRNGKey(0)
    kp, ks, kl = jax.random.split(key, 3)

    B, D, VOCAB = 2, 32, 100
    Ls, Ll = 16, 24                 # short / long sequence lengths
    FILTER_SIZES = (3, 5)           # config.filter_sizes
    PAD_REPLACE = True              # config.pad_replace

    params = init_params(kp, VOCAB, D, FILTER_SIZES)
    short_ids = jax.random.randint(ks, (B * 6, Ls), 0, VOCAB, dtype=jnp.int32)
    long_ids = jax.random.randint(kl, (B * 4, Ll), 0, VOCAB, dtype=jnp.int32)

    (emb_short, emb_long), mean_mask = cnn_filter_bn_forward(
        short_ids, long_ids, B, params, FILTER_SIZES, PAD_REPLACE)
    jax.block_until_ready((emb_short, emb_long, mean_mask))

    assert emb_short.shape == (B * 6, Ls, D)
    assert emb_long.shape == (B * 4, Ll, D)
    assert mean_mask.shape == ()
    print("KERNEL_OK")
</pallas_src>

<mosaic_0001>
module attributes {stable_mosaic.version = 11 : i64} {
  func.func @kernel(%arg0: i32, %arg1: memref<1x6x16x32xf32, #tpu.memory_space<vmem>>, %arg2: memref<1x4x24x32xf32, #tpu.memory_space<vmem>>, %arg3: memref<10x32x8xf32, #tpu.memory_space<vmem>>, %arg4: memref<10x1x8xf32, #tpu.memory_space<vmem>>, %arg5: memref<10x1x2xf32, #tpu.memory_space<vmem>>, %arg6: memref<1x32xf32, #tpu.memory_space<vmem>>, %arg7: memref<1x6x16x32xf32, #tpu.memory_space<vmem>>, %arg8: memref<1x4x24x32xf32, #tpu.memory_space<vmem>>, %arg9: memref<1x1x1xf32, #tpu.memory_space<vmem>>, %arg10: memref<1x1x1xf32, #tpu.memory_space<vmem>>) attributes {dimension_semantics = [#tpu.dimension_semantics<parallel>], iteration_bounds = array<i64: 2>, scalar_prefetch = 0 : i64, scratch_operands = 0 : i64, tpu.core_type = #tpu.core_type<tc>, window_params = [{transform_indices = @transform_0, window_bounds = array<i64: 1, 6, 16, 32>}, {transform_indices = @transform_1, window_bounds = array<i64: 1, 4, 24, 32>}, {pipeline_mode = #tpu.pipeline_mode<synchronous>, transform_indices = @transform_2, window_bounds = array<i64: 10, 32, 8>}, {pipeline_mode = #tpu.pipeline_mode<synchronous>, transform_indices = @transform_3, window_bounds = array<i64: 10, 1, 8>}, {pipeline_mode = #tpu.pipeline_mode<synchronous>, transform_indices = @transform_4, window_bounds = array<i64: 10, 1, 2>}, {pipeline_mode = #tpu.pipeline_mode<synchronous>, transform_indices = @transform_5, window_bounds = array<i64: 1, 32>}, {transform_indices = @transform_6, window_bounds = array<i64: 1, 6, 16, 32>}, {transform_indices = @transform_7, window_bounds = array<i64: 1, 4, 24, 32>}, {transform_indices = @transform_8, window_bounds = array<i64: 1, 1, 1>}, {transform_indices = @transform_9, window_bounds = array<i64: 1, 1, 1>}]} {
    %c0 = arith.constant 0 : index
    %c0_0 = arith.constant 0 : index
    %0 = vector.load %arg6[%c0, %c0_0] : memref<1x32xf32, #tpu.memory_space<vmem>>, vector<1x32xf32>
    %cst = arith.constant 0.000000e+00 : f32
    %1 = vector.broadcast %cst : f32 to vector<1x1xf32>
    %c0_1 = arith.constant 0 : index
    %c0_2 = arith.constant 0 : index
    %c0_3 = arith.constant 0 : index
    %c0_4 = arith.constant 0 : index
    %2 = vector.load %arg1[%c0_1, %c0_2, %c0_3, %c0_4] : memref<1x6x16x32xf32, #tpu.memory_space<vmem>>, vector<1x1x16x32xf32>
    %3 = vector.shape_cast %2 : vector<1x1x16x32xf32> to vector<16x32xf32>
    %c0_5 = arith.constant 0 : index
    %c0_6 = arith.constant 0 : index
    %c0_7 = arith.constant 0 : index
    %4 = vector.load %arg3[%c0_5, %c0_6, %c0_7] : memref<10x32x8xf32, #tpu.memory_space<vmem>>, vector<1x32x8xf32>
    %5 = vector.shape_cast %4 : vector<1x32x8xf32> to vector<32x8xf32>
    %c0_8 = arith.constant 0 : index
    %c0_9 = arith.constant 0 : index
    %c0_10 = arith.constant 0 : index
    %6 = vector.load %arg4[%c0_8, %c0_9, %c0_10] : memref<10x1x8xf32, #tpu.memory_space<vmem>>, vector<1x1x8xf32>
    %7 = vector.shape_cast %6 : vector<1x1x8xf32> to vector<1x8xf32>
    %c0_11 = arith.constant 0 : index
    %c0_12 = arith.constant 0 : index
    %c0_13 = arith.constant 0 : index
    %8 = vector.load %arg5[%c0_11, %c0_12, %c0_13] : memref<10x1x2xf32, #tpu.memory_space<vmem>>, vector<1x1x2xf32>
    %9 = vector.shape_cast %8 : vector<1x1x2xf32> to vector<1x2xf32>
    %cst_14 = arith.constant dense<0.000000e+00> : vector<16x8xf32>
    %10 = tpu.matmul %3, %5, %cst_14 {dimension_numbers = #tpu.dot_dimension_numbers<[1], [0], [0], [1], [0, 0, 1, 1], [], []>} : vector<16x32xf32>, vector<32x8xf32>, vector<16x8xf32> -> vector<16x8xf32>
    %11 = vector.broadcast %7 : vector<1x8xf32> to vector<16x8xf32>
    %12 = arith.addf %10, %11 : vector<16x8xf32>
    %cst_15 = arith.constant 0.000000e+00 : f32
    %13 = vector.broadcast %cst_15 : f32 to vector<8x8xf32>
    %14 = tpu.concatenate %13, %12, %13 in 0 : vector<8x8xf32>, vector<16x8xf32>, vector<8x8xf32> -> vector<32x8xf32>
    %15 = vector.extract_strided_slice %9 {offsets = [0, 0], sizes = [1, 1], strides = [1, 1]} : vector<1x2xf32> to vector<1x1xf32>
    %16 = vector.extract_strided_slice %14 {offsets = [6, 0], sizes = [16, 1], strides = [1, 1]} : vector<32x8xf32> to vector<16x1xf32>
    %17 = vector.broadcast %15 : vector<1x1xf32> to vector<16x1xf32>
    %18 = arith.addf %17, %16 : vector<16x1xf32>
    %19 = vector.extract_strided_slice %14 {offsets = [7, 1], sizes = [16, 1], strides = [1, 1]} : vector<32x8xf32> to vector<16x1xf32>
    %20 = arith.addf %18, %19 : vector<16x1xf32>
    %21 = vector.extract_strided_slice %14 {offsets = [8, 2], sizes = [16, 1], strides = [1, 1]} : vector<32x8xf32> to vector<16x1xf32>
    %22 = arith.addf %20, %21 : vector<16x1xf32>
    %23 = vector.extract_strided_slice %14 {offsets = [9, 3], sizes = [16, 1], strides = [1, 1]} : vector<32x8xf32> to vector<16x1xf32>
    %24 = arith.addf %22, %23 : vector<16x1xf32>
    %25 = vector.extract_strided_slice %14 {offsets = [10, 4], sizes = [16, 1], strides = [1, 1]} : vector<32x8xf32> to vector<16x1xf32>
    %26 = arith.addf %24, %25 : vector<16x1xf32>
    %27 = vector.extract_strided_slice %9 {offsets = [0, 1], sizes = [1, 1], strides = [1, 1]} : vector<1x2xf32> to vector<1x1xf32>
    %28 = vector.extract_strided_slice %14 {offsets = [7, 5], sizes = [16, 1], strides = [1, 1]} : vector<32x8xf32> to vector<16x1xf32>
    %29 = vector.broadcast %27 : vector<1x1xf32> to vector<16x1xf32>
    %30 = arith.addf %29, %28 : vector<16x1xf32>
    %31 = vector.extract_strided_slice %14 {offsets = [8, 6], sizes = [16, 1], strides = [1, 1]} : vector<32x8xf32> to vector<16x1xf32>
    %32 = arith.addf %30, %31 : vector<16x1xf32>
    %33 = vector.extract_strided_slice %14 {offsets = [9, 7], sizes = [16, 1], strides = [1, 1]} : vector<32x8xf32> to vector<16x1xf32>
    %34 = arith.addf %32, %33 : vector<16x1xf32>
    %35 = arith.negf %26 : vector<16x1xf32>
    %36 = math.exp %35 : vector<16x1xf32>
    %cst_16 = arith.constant 1.000000e+00 : f32
    %37 = vector.broadcast %cst_16 : f32 to vector<16x1xf32>
    %38 = arith.addf %37, %36 : vector<16x1xf32>
    %39 = arith.divf %37, %38 : vector<16x1xf32>
    %40 = arith.negf %34 : vector<16x1xf32>
    %41 = math.exp %40 : vector<16x1xf32>
    %cst_17 = arith.constant 1.000000e+00 : f32
    %42 = vector.broadcast %cst_17 : f32 to vector<16x1xf32>
    %43 = arith.addf %42, %41 : vector<16x1xf32>
    %44 = arith.divf %42, %43 : vector<16x1xf32>
    %45 = arith.mulf %39, %44 : vector<16x1xf32>
    %46 = vector.broadcast %45 : vector<16x1xf32> to vector<16x32xf32>
    %47 = arith.mulf %3, %46 : vector<16x32xf32>
    %cst_18 = arith.constant 1.000000e+00 : f32
    %48 = vector.broadcast %cst_18 : f32 to vector<16x1xf32>
    %49 = arith.subf %48, %45 : vector<16x1xf32>
    %50 = vector.broadcast %49 : vector<16x1xf32> to vector<16x32xf32>
    %51 = vector.broadcast %0 : vector<1x32xf32> to vector<16x32xf32>
    %52 = arith.mulf %50, %51 : vector<16x32xf32>
    %53 = arith.addf %47, %52 : vector<16x32xf32>
    %cst_19 = arith.constant dense<0.000000e+00> : vector<1xf32>
    %54 = vector.multi_reduction <add>, %45, %cst_19 [0] : vector<16x1xf32> to vector<1xf32>
    %55 = vector.shape_cast %54 : vector<1xf32> to vector<1x1xf32>
    %c0_20 = arith.constant 0 : index
    %c0_21 = arith.constant 0 : index
    %c0_22 = arith.constant 0 : index
    %c0_23 = arith.constant 0 : index
    %56 = vector.load %arg7[%c0_20, %c0_21, %c0_22, %c0_23] : memref<1x6x16x32xf32, #tpu.memory_space<vmem>>, vector<1x1x16x32xf32>
    %57 = vector.shape_cast %56 : vector<1x1x16x32xf32> to vector<16x32xf32>
    %58 = vector.shape_cast %53 : vector<16x32xf32> to vector<1x1x16x32xf32>
    tpu.vector_store %arg7[%c0_20, %c0_21, %c0_22, %c0_23], %58 {strides = array<i32>} : memref<1x6x16x32xf32, #tpu.memory_space<vmem>>, vector<1x1x16x32xf32>,
    %59 = arith.addf %1, %55 : vector<1x1xf32>
    %c0_24 = arith.constant 0 : index
    %c1 = arith.constant 1 : index
    %c0_25 = arith.constant 0 : index
    %c0_26 = arith.constant 0 : index
    %60 = vector.load %arg1[%c0_24, %c1, %c0_25, %c0_26] : memref<1x6x16x32xf32, #tpu.memory_space<vmem>>, vector<1x1x16x32xf32>
    %61 = vector.shape_cast %60 : vector<1x1x16x32xf32> to vector<16x32xf32>
    %c1_27 = arith.constant 1 : index
    %c0_28 = arith.constant 0 : index
    %c0_29 = arith.constant 0 : index
    %62 = vector.load %arg3[%c1_27, %c0_28, %c0_29] : memref<10x32x8xf32, #tpu.memory_space<vmem>>, vector<1x32x8xf32>
    %63 = vector.shape_cast %62 : vector<1x32x8xf32> to vector<32x8xf32>
    %c1_30 = arith.constant 1 : index
    %c0_31 = arith.constant 0 : index
    %c0_32 = arith.constant 0 : index
    %64 = vector.load %arg4[%c1_30, %c0_31, %c0_32] : memref<10x1x8xf32, #tpu.memory_space<vmem>>, vector<1x1x8xf32>
    %65 = vector.shape_cast %64 : vector<1x1x8xf32> to vector<1x8xf32>
    %c1_33 = arith.constant 1 : index
    %c0_34 = arith.constant 0 : index
    %c0_35 = arith.constant 0 : index
    %66 = vector.load %arg5[%c1_33, %c0_34, %c0_35] : memref<10x1x2xf32, #tpu.memory_space<vmem>>, vector<1x1x2xf32>
    %67 = vector.shape_cast %66 : vector<1x1x2xf32> to vector<1x2xf32>
    %cst_36 = arith.constant dense<0.000000e+00> : vector<16x8xf32>
    %68 = tpu.matmul %61, %63, %cst_36 {dimension_numbers = #tpu.dot_dimension_numbers<[1], [0], [0], [1], [0, 0, 1, 1], [], []>} : vector<16x32xf32>, vector<32x8xf32>, vector<16x8xf32> -> vector<16x8xf32>
    %69 = vector.broadcast %65 : vector<1x8xf32> to vector<16x8xf32>
    %70 = arith.addf %68, %69 : vector<16x8xf32>
    %cst_37 = arith.constant 0.000000e+00 : f32
    %71 = vector.broadcast %cst_37 : f32 to vector<8x8xf32>
    %72 = tpu.concatenate %71, %70, %71 in 0 : vector<8x8xf32>, vector<16x8xf32>, vector<8x8xf32> -> vector<32x8xf32>
    %73 = vector.extract_strided_slice %67 {offsets = [0, 0], sizes = [1, 1], strides = [1, 1]} : vector<1x2xf32> to vector<1x1xf32>
    %74 = vector.extract_strided_slice %72 {offsets = [6, 0], sizes = [16, 1], strides = [1, 1]} : vector<32x8xf32> to vector<16x1xf32>
    %75 = vector.broadcast %73 : vector<1x1xf32> to vector<16x1xf32>
    %76 = arith.addf %75, %74 : vector<16x1xf32>
    %77 = vector.extract_strided_slice %72 {offsets = [7, 1], sizes = [16, 1], strides = [1, 1]} : vector<32x8xf32> to vector<16x1xf32>
    %78 = arith.addf %76, %77 : vector<16x1xf32>
    %79 = vector.extract_strided_slice %72 {offsets = [8, 2], sizes = [16, 1], strides = [1, 1]} : vector<32x8xf32> to vector<16x1xf32>
    %80 = arith.addf %78, %79 : vector<16x1xf32>
    %81 = vector.extract_strided_slice %72 {offsets = [9, 3], sizes = [16, 1], strides = [1, 1]} : vector<32x8xf32> to vector<16x1xf32>
    %82 = arith.addf %80, %81 : vector<16x1xf32>
    %83 = vector.extract_strided_slice %72 {offsets = [10, 4], sizes = [16, 1], strides = [1, 1]} : vector<32x8xf32> to vector<16x1xf32>
    %84 = arith.addf %82, %83 : vector<16x1xf32>
    %85 = vector.extract_strided_slice %67 {offsets = [0, 1], sizes = [1, 1], strides = [1, 1]} : vector<1x2xf32> to vector<1x1xf32>
    %86 = vector.extract_strided_slice %72 {offsets = [7, 5], sizes = [16, 1], strides = [1, 1]} : vector<32x8xf32> to vector<16x1xf32>
    %87 = vector.broadcast %85 : vector<1x1xf32> to vector<16x1xf32>
    %88 = arith.addf %87, %86 : vector<16x1xf32>
    %89 = vector.extract_strided_slice %72 {offsets = [8, 6], sizes = [16, 1], strides = [1, 1]} : vector<32x8xf32> to vector<16x1xf32>
    %90 = arith.addf %88, %89 : vector<16x1xf32>
    %91 = vector.extract_strided_slice %72 {offsets = [9, 7], sizes = [16, 1], strides = [1, 1]} : vector<32x8xf32> to vector<16x1xf32>
    %92 = arith.addf %90, %91 : vector<16x1xf32>
    %93 = arith.negf %84 : vector<16x1xf32>
    %94 = math.exp %93 : vector<16x1xf32>
    %cst_38 = arith.constant 1.000000e+00 : f32
    %95 = vector.broadcast %cst_38 : f32 to vector<16x1xf32>
    %96 = arith.addf %95, %94 : vector<16x1xf32>
    %97 = arith.divf %95, %96 : vector<16x1xf32>
    %98 = arith.negf %92 : vector<16x1xf32>
    %99 = math.exp %98 : vector<16x1xf32>
    %cst_39 = arith.constant 1.000000e+00 : f32
    %100 = vector.broadcast %cst_39 : f32 to vector<16x1xf32>
    %101 = arith.addf %100, %99 : vector<16x1xf32>
    %102 = arith.divf %100, %101 : vector<16x1xf32>
    %103 = arith.mulf %97, %102 : vector<16x1xf32>
    %104 = vector.broadcast %103 : vector<16x1xf32> to vector<16x32xf32>
    %105 = arith.mulf %61, %104 : vector<16x32xf32>
    %cst_40 = arith.constant 1.000000e+00 : f32
    %106 = vector.broadcast %cst_40 : f32 to vector<16x1xf32>
    %107 = arith.subf %106, %103 : vector<16x1xf32>
    %108 = vector.broadcast %107 : vector<16x1xf32> to vector<16x32xf32>
    %109 = vector.broadcast %0 : vector<1x32xf32> to vector<16x32xf32>
    %110 = arith.mulf %108, %109 : vector<16x32xf32>
    %111 = arith.addf %105, %110 : vector<16x32xf32>
    %cst_41 = arith.constant dense<0.000000e+00> : vector<1xf32>
    %112 = vector.multi_reduction <add>, %103, %cst_41 [0] : vector<16x1xf32> to vector<1xf32>
    %113 = vector.shape_cast %112 : vector<1xf32> to vector<1x1xf32>
    %c0_42 = arith.constant 0 : index
    %c1_43 = arith.constant 1 : index
    %c0_44 = arith.constant 0 : index
    %c0_45 = arith.constant 0 : index
    %114 = vector.load %arg7[%c0_42, %c1_43, %c0_44, %c0_45] : memref<1x6x16x32xf32, #tpu.memory_space<vmem>>, vector<1x1x16x32xf32>
    %115 = vector.shape_cast %114 : vector<1x1x16x32xf32> to vector<16x32xf32>
    %116 = vector.shape_cast %111 : vector<16x32xf32> to vector<1x1x16x32xf32>
    tpu.vector_store %arg7[%c0_42, %c1_43, %c0_44, %c0_45], %116 {strides = array<i32>} : memref<1x6x16x32xf32, #tpu.memory_space<vmem>>, vector<1x1x16x32xf32>,
    %117 = arith.addf %59, %113 : vector<1x1xf32>
    %c0_46 = arith.constant 0 : index
    %c2 = arith.constant 2 : index
    %c0_47 = arith.constant 0 : index
    %c0_48 = arith.constant 0 : index
    %118 = vector.load %arg1[%c0_46, %c2, %c0_47, %c0_48] : memref<1x6x16x32xf32, #tpu.memory_space<vmem>>, vector<1x1x16x32xf32>
    %119 = vector.shape_cast %118 : vector<1x1x16x32xf32> to vector<16x32xf32>
    %c2_49 = arith.constant 2 : index
    %c0_50 = arith.constant 0 : index
    %c0_51 = arith.constant 0 : index
    %120 = vector.load %arg3[%c2_49, %c0_50, %c0_51] : memref<10x32x8xf32, #tpu.memory_space<vmem>>, vector<1x32x8xf32>
    %121 = vector.shape_cast %120 : vector<1x32x8xf32> to vector<32x8xf32>
    %c2_52 = arith.constant 2 : index
    %c0_53 = arith.constant 0 : index
    %c0_54 = arith.constant 0 : index
    %122 = vector.load %arg4[%c2_52, %c0_53, %c0_54] : memref<10x1x8xf32, #tpu.memory_space<vmem>>, vector<1x1x8xf32>
    %123 = vector.shape_cast %122 : vector<1x1x8xf32> to vector<1x8xf32>
    %c2_55 = arith.constant 2 : index
    %c0_56 = arith.constant 0 : index
    %c0_57 = arith.constant 0 : index
    %124 = vector.load %arg5[%c2_55, %c0_56, %c0_57] : memref<10x1x2xf32, #tpu.memory_space<vmem>>, vector<1x1x2xf32>
    %125 = vector.shape_cast %124 : vector<1x1x2xf32> to vector<1x2xf32>
    %cst_58 = arith.constant dense<0.000000e+00> : vector<16x8xf32>
    %126 = tpu.matmul %119, %121, %cst_58 {dimension_numbers = #tpu.dot_dimension_numbers<[1], [0], [0], [1], [0, 0, 1, 1], [], []>} : vector<16x32xf32>, vector<32x8xf32>, vector<16x8xf32> -> vector<16x8xf32>
    %127 = vector.broadcast %123 : vector<1x8xf32> to vector<16x8xf32>
    %128 = arith.addf %126, %127 : vector<16x8xf32>
    %cst_59 = arith.constant 0.000000e+00 : f32
    %129 = vector.broadcast %cst_59 : f32 to vector<8x8xf32>
    %130 = tpu.concatenate %129, %128, %129 in 0 : vector<8x8xf32>, vector<16x8xf32>, vector<8x8xf32> -> vector<32x8xf32>
    %131 = vector.extract_strided_slice %125 {offsets = [0, 0], sizes = [1, 1], strides = [1, 1]} : vector<1x2xf32> to vector<1x1xf32>
    %132 = vector.extract_strided_slice %130 {offsets = [6, 0], sizes = [16, 1], strides = [1, 1]} : vector<32x8xf32> to vector<16x1xf32>
    %133 = vector.broadcast %131 : vector<1x1xf32> to vector<16x1xf32>
    %134 = arith.addf %133, %132 : vector<16x1xf32>
    %135 = vector.extract_strided_slice %130 {offsets = [7, 1], sizes = [16, 1], strides = [1, 1]} : vector<32x8xf32> to vector<16x1xf32>
    %136 = arith.addf %134, %135 : vector<16x1xf32>
    %137 = vector.extract_strided_slice %130 {offsets = [8, 2], sizes = [16, 1], strides = [1, 1]} : vector<32x8xf32> to vector<16x1xf32>
    %138 = arith.addf %136, %137 : vector<16x1xf32>
    %139 = vector.extract_strided_slice %130 {offsets = [9, 3], sizes = [16, 1], strides = [1, 1]} : vector<32x8xf32> to vector<16x1xf32>
    %140 = arith.addf %138, %139 : vector<16x1xf32>
    %141 = vector.extract_strided_slice %130 {offsets = [10, 4], sizes = [16, 1], strides = [1, 1]} : vector<32x8xf32> to vector<16x1xf32>
    %142 = arith.addf %140, %141 : vector<16x1xf32>
    %143 = vector.extract_strided_slice %125 {offsets = [0, 1], sizes = [1, 1], strides = [1, 1]} : vector<1x2xf32> to vector<1x1xf32>
    %144 = vector.extract_strided_slice %130 {offsets = [7, 5], sizes = [16, 1], strides = [1, 1]} : vector<32x8xf32> to vector<16x1xf32>
    %145 = vector.broadcast %143 : vector<1x1xf32> to vector<16x1xf32>
    %146 = arith.addf %145, %144 : vector<16x1xf32>
    %147 = vector.extract_strided_slice %130 {offsets = [8, 6], sizes = [16, 1], strides = [1, 1]} : vector<32x8xf32> to vector<16x1xf32>
    %148 = arith.addf %146, %147 : vector<16x1xf32>
    %149 = vector.extract_strided_slice %130 {offsets = [9, 7], sizes = [16, 1], strides = [1, 1]} : vector<32x8xf32> to vector<16x1xf32>
    %150 = arith.addf %148, %149 : vector<16x1xf32>
    %151 = arith.negf %142 : vector<16x1xf32>
    %152 = math.exp %151 : vector<16x1xf32>
    %cst_60 = arith.constant 1.000000e+00 : f32
    %153 = vector.broadcast %cst_60 : f32 to vector<16x1xf32>
    %154 = arith.addf %153, %152 : vector<16x1xf32>
    %155 = arith.divf %153, %154 : vector<16x1xf32>
    %156 = arith.negf %150 : vector<16x1xf32>
    %157 = math.exp %156 : vector<16x1xf32>
    %cst_61 = arith.constant 1.000000e+00 : f32
    %158 = vector.broadcast %cst_61 : f32 to vector<16x1xf32>
    %159 = arith.addf %158, %157 : vector<16x1xf32>
    %160 = arith.divf %158, %159 : vector<16x1xf32>
    %161 = arith.mulf %155, %160 : vector<16x1xf32>
    %162 = vector.broadcast %161 : vector<16x1xf32> to vector<16x32xf32>
    %163 = arith.mulf %119, %162 : vector<16x32xf32>
    %cst_62 = arith.constant 1.000000e+00 : f32
    %164 = vector.broadcast %cst_62 : f32 to vector<16x1xf32>
    %165 = arith.subf %164, %161 : vector<16x1xf32>
    %166 = vector.broadcast %165 : vector<16x1xf32> to vector<16x32xf32>
    %167 = vector.broadcast %0 : vector<1x32xf32> to vector<16x32xf32>
    %168 = arith.mulf %166, %167 : vector<16x32xf32>
    %169 = arith.addf %163, %168 : vector<16x32xf32>
    %cst_63 = arith.constant dense<0.000000e+00> : vector<1xf32>
    %170 = vector.multi_reduction <add>, %161, %cst_63 [0] : vector<16x1xf32> to vector<1xf32>
    %171 = vector.shape_cast %170 : vector<1xf32> to vector<1x1xf32>
    %c0_64 = arith.constant 0 : index
    %c2_65 = arith.constant 2 : index
    %c0_66 = arith.constant 0 : index
    %c0_67 = arith.constant 0 : index
    %172 = vector.load %arg7[%c0_64, %c2_65, %c0_66, %c0_67] : memref<1x6x16x32xf32, #tpu.memory_space<vmem>>, vector<1x1x16x32xf32>
    %173 = vector.shape_cast %172 : vector<1x1x16x32xf32> to vector<16x32xf32>
    %174 = vector.shape_cast %169 : vector<16x32xf32> to vector<1x1x16x32xf32>
    tpu.vector_store %arg7[%c0_64, %c2_65, %c0_66, %c0_67], %174 {strides = array<i32>} : memref<1x6x16x32xf32, #tpu.memory_space<vmem>>, vector<1x1x16x32xf32>,
    %175 = arith.addf %117, %171 : vector<1x1xf32>
    %c0_68 = arith.constant 0 : index
    %c3 = arith.constant 3 : index
    %c0_69 = arith.constant 0 : index
    %c0_70 = arith.constant 0 : index
    %176 = vector.load %arg1[%c0_68, %c3, %c0_69, %c0_70] : memref<1x6x16x32xf32, #tpu.memory_space<vmem>>, vector<1x1x16x32xf32>
    %177 = vector.shape_cast %176 : vector<1x1x16x32xf32> to vector<16x32xf32>
    %c3_71 = arith.constant 3 : index
    %c0_72 = arith.constant 0 : index
    %c0_73 = arith.constant 0 : index
    %178 = vector.load %arg3[%c3_71, %c0_72, %c0_73] : memref<10x32x8xf32, #tpu.memory_space<vmem>>, vector<1x32x8xf32>
    %179 = vector.shape_cast %178 : vector<1x32x8xf32> to vector<32x8xf32>
    %c3_74 = arith.constant 3 : index
    %c0_75 = arith.constant 0 : index
    %c0_76 = arith.constant 0 : index
    %180 = vector.load %arg4[%c3_74, %c0_75, %c0_76] : memref<10x1x8xf32, #tpu.memory_space<vmem>>, vector<1x1x8xf32>
    %181 = vector.shape_cast %180 : vector<1x1x8xf32> to vector<1x8xf32>
    %c3_77 = arith.constant 3 : index
    %c0_78 = arith.constant 0 : index
    %c0_79 = arith.constant 0 : index
    %182 = vector.load %arg5[%c3_77, %c0_78, %c0_79] : memref<10x1x2xf32, #tpu.memory_space<vmem>>, vector<1x1x2xf32>
    %183 = vector.shape_cast %182 : vector<1x1x2xf32> to vector<1x2xf32>
    %cst_80 = arith.constant dense<0.000000e+00> : vector<16x8xf32>
    %184 = tpu.matmul %177, %179, %cst_80 {dimension_numbers = #tpu.dot_dimension_numbers<[1], [0], [0], [1], [0, 0, 1, 1], [], []>} : vector<16x32xf32>, vector<32x8xf32>, vector<16x8xf32> -> vector<16x8xf32>
    %185 = vector.broadcast %181 : vector<1x8xf32> to vector<16x8xf32>
    %186 = arith.addf %184, %185 : vector<16x8xf32>
    %cst_81 = arith.constant 0.000000e+00 : f32
    %187 = vector.broadcast %cst_81 : f32 to vector<8x8xf32>
    %188 = tpu.concatenate %187, %186, %187 in 0 : vector<8x8xf32>, vector<16x8xf32>, vector<8x8xf32> -> vector<32x8xf32>
    %189 = vector.extract_strided_slice %183 {offsets = [0, 0], sizes = [1, 1], strides = [1, 1]} : vector<1x2xf32> to vector<1x1xf32>
    %190 = vector.extract_strided_slice %188 {offsets = [6, 0], sizes = [16, 1], strides = [1, 1]} : vector<32x8xf32> to vector<16x1xf32>
    %191 = vector.broadcast %189 : vector<1x1xf32> to vector<16x1xf32>
    %192 = arith.addf %191, %190 : vector<16x1xf32>
    %193 = vector.extract_strided_slice %188 {offsets = [7, 1], sizes = [16, 1], strides = [1, 1]} : vector<32x8xf32> to vector<16x1xf32>
    %194 = arith.addf %192, %193 : vector<16x1xf32>
    %195 = vector.extract_strided_slice %188 {offsets = [8, 2], sizes = [16, 1], strides = [1, 1]} : vector<32x8xf32> to vector<16x1xf32>
    %196 = arith.addf %194, %195 : vector<16x1xf32>
    %197 = vector.extract_strided_slice %188 {offsets = [9, 3], sizes = [16, 1], strides = [1, 1]} : vector<32x8xf32> to vector<16x1xf32>
    %198 = arith.addf %196, %197 : vector<16x1xf32>
    %199 = vector.extract_strided_slice %188 {offsets = [10, 4], sizes = [16, 1], strides = [1, 1]} : vector<32x8xf32> to vector<16x1xf32>
    %200 = arith.addf %198, %199 : vector<16x1xf32>
    %201 = vector.extract_strided_slice %183 {offsets = [0, 1], sizes = [1, 1], strides = [1, 1]} : vector<1x2xf32> to vector<1x1xf32>
    %202 = vector.extract_strided_slice %188 {offsets = [7, 5], sizes = [16, 1], strides = [1, 1]} : vector<32x8xf32> to vector<16x1xf32>
    %203 = vector.broadcast %201 : vector<1x1xf32> to vector<16x1xf32>
    %204 = arith.addf %203, %202 : vector<16x1xf32>
    %205 = vector.extract_strided_slice %188 {offsets = [8, 6], sizes = [16, 1], strides = [1, 1]} : vector<32x8xf32> to vector<16x1xf32>
    %206 = arith.addf %204, %205 : vector<16x1xf32>
    %207 = vector.extract_strided_slice %188 {offsets = [9, 7], sizes = [16, 1], strides = [1, 1]} : vector<32x8xf32> to vector<16x1xf32>
    %208 = arith.addf %206, %207 : vector<16x1xf32>
    %209 = arith.negf %200 : vector<16x1xf32>
    %210 = math.exp %209 : vector<16x1xf32>
    %cst_82 = arith.constant 1.000000e+00 : f32
    %211 = vector.broadcast %cst_82 : f32 to vector<16x1xf32>
    %212 = arith.addf %211, %210 : vector<16x1xf32>
    %213 = arith.divf %211, %212 : vector<16x1xf32>
    %214 = arith.negf %208 : vector<16x1xf32>
    %215 = math.exp %214 : vector<16x1xf32>
    %cst_83 = arith.constant 1.000000e+00 : f32
    %216 = vector.broadcast %cst_83 : f32 to vector<16x1xf32>
    %217 = arith.addf %216, %215 : vector<16x1xf32>
    %218 = arith.divf %216, %217 : vector<16x1xf32>
    %219 = arith.mulf %213, %218 : vector<16x1xf32>
    %220 = vector.broadcast %219 : vector<16x1xf32> to vector<16x32xf32>
    %221 = arith.mulf %177, %220 : vector<16x32xf32>
    %cst_84 = arith.constant 1.000000e+00 : f32
    %222 = vector.broadcast %cst_84 : f32 to vector<16x1xf32>
    %223 = arith.subf %222, %219 : vector<16x1xf32>
    %224 = vector.broadcast %223 : vector<16x1xf32> to vector<16x32xf32>
    %225 = vector.broadcast %0 : vector<1x32xf32> to vector<16x32xf32>
    %226 = arith.mulf %224, %225 : vector<16x32xf32>
    %227 = arith.addf %221, %226 : vector<16x32xf32>
    %cst_85 = arith.constant dense<0.000000e+00> : vector<1xf32>
    %228 = vector.multi_reduction <add>, %219, %cst_85 [0] : vector<16x1xf32> to vector<1xf32>
    %229 = vector.shape_cast %228 : vector<1xf32> to vector<1x1xf32>
    %c0_86 = arith.constant 0 : index
    %c3_87 = arith.constant 3 : index
    %c0_88 = arith.constant 0 : index
    %c0_89 = arith.constant 0 : index
    %230 = vector.load %arg7[%c0_86, %c3_87, %c0_88, %c0_89] : memref<1x6x16x32xf32, #tpu.memory_space<vmem>>, vector<1x1x16x32xf32>
    %231 = vector.shape_cast %230 : vector<1x1x16x32xf32> to vector<16x32xf32>
    %232 = vector.shape_cast %227 : vector<16x32xf32> to vector<1x1x16x32xf32>
    tpu.vector_store %arg7[%c0_86, %c3_87, %c0_88, %c0_89], %232 {strides = array<i32>} : memref<1x6x16x32xf32, #tpu.memory_space<vmem>>, vector<1x1x16x32xf32>,
    %233 = arith.addf %175, %229 : vector<1x1xf32>
    %c0_90 = arith.constant 0 : index
    %c4 = arith.constant 4 : index
    %c0_91 = arith.constant 0 : index
    %c0_92 = arith.constant 0 : index
    %234 = vector.load %arg1[%c0_90, %c4, %c0_91, %c0_92] : memref<1x6x16x32xf32, #tpu.memory_space<vmem>>, vector<1x1x16x32xf32>
    %235 = vector.shape_cast %234 : vector<1x1x16x32xf32> to vector<16x32xf32>
    %c4_93 = arith.constant 4 : index
    %c0_94 = arith.constant 0 : index
    %c0_95 = arith.constant 0 : index
    %236 = vector.load %arg3[%c4_93, %c0_94, %c0_95] : memref<10x32x8xf32, #tpu.memory_space<vmem>>, vector<1x32x8xf32>
    %237 = vector.shape_cast %236 : vector<1x32x8xf32> to vector<32x8xf32>
    %c4_96 = arith.constant 4 : index
    %c0_97 = arith.constant 0 : index
    %c0_98 = arith.constant 0 : index
    %238 = vector.load %arg4[%c4_96, %c0_97, %c0_98] : memref<10x1x8xf32, #tpu.memory_space<vmem>>, vector<1x1x8xf32>
    %239 = vector.shape_cast %238 : vector<1x1x8xf32> to vector<1x8xf32>
    %c4_99 = arith.constant 4 : index
    %c0_100 = arith.constant 0 : index
    %c0_101 = arith.constant 0 : index
    %240 = vector.load %arg5[%c4_99, %c0_100, %c0_101] : memref<10x1x2xf32, #tpu.memory_space<vmem>>, vector<1x1x2xf32>
    %241 = vector.shape_cast %240 : vector<1x1x2xf32> to vector<1x2xf32>
    %cst_102 = arith.constant dense<0.000000e+00> : vector<16x8xf32>
    %242 = tpu.matmul %235, %237, %cst_102 {dimension_numbers = #tpu.dot_dimension_numbers<[1], [0], [0], [1], [0, 0, 1, 1], [], []>} : vector<16x32xf32>, vector<32x8xf32>, vector<16x8xf32> -> vector<16x8xf32>
    %243 = vector.broadcast %239 : vector<1x8xf32> to vector<16x8xf32>
    %244 = arith.addf %242, %243 : vector<16x8xf32>
    %cst_103 = arith.constant 0.000000e+00 : f32
    %245 = vector.broadcast %cst_103 : f32 to vector<8x8xf32>
    %246 = tpu.concatenate %245, %244, %245 in 0 : vector<8x8xf32>, vector<16x8xf32>, vector<8x8xf32> -> vector<32x8xf32>
    %247 = vector.extract_strided_slice %241 {offsets = [0, 0], sizes = [1, 1], strides = [1, 1]} : vector<1x2xf32> to vector<1x1xf32>
    %248 = vector.extract_strided_slice %246 {offsets = [6, 0], sizes = [16, 1], strides = [1, 1]} : vector<32x8xf32> to vector<16x1xf32>
    %249 = vector.broadcast %247 : vector<1x1xf32> to vector<16x1xf32>
    %250 = arith.addf %249, %248 : vector<16x1xf32>
    %251 = vector.extract_strided_slice %246 {offsets = [7, 1], sizes = [16, 1], strides = [1, 1]} : vector<32x8xf32> to vector<16x1xf32>
    %252 = arith.addf %250, %251 : vector<16x1xf32>
    %253 = vector.extract_strided_slice %246 {offsets = [8, 2], sizes = [16, 1], strides = [1, 1]} : vector<32x8xf32> to vector<16x1xf32>
    %254 = arith.addf %252, %253 : vector<16x1xf32>
    %255 = vector.extract_strided_slice %246 {offsets = [9, 3], sizes = [16, 1], strides = [1, 1]} : vector<32x8xf32> to vector<16x1xf32>
    %256 = arith.addf %254, %255 : vector<16x1xf32>
    %257 = vector.extract_strided_slice %246 {offsets = [10, 4], sizes = [16, 1], strides = [1, 1]} : vector<32x8xf32> to vector<16x1xf32>
    %258 = arith.addf %256, %257 : vector<16x1xf32>
    %259 = vector.extract_strided_slice %241 {offsets = [0, 1], sizes = [1, 1], strides = [1, 1]} : vector<1x2xf32> to vector<1x1xf32>
    %260 = vector.extract_strided_slice %246 {offsets = [7, 5], sizes = [16, 1], strides = [1, 1]} : vector<32x8xf32> to vector<16x1xf32>
    %261 = vector.broadcast %259 : vector<1x1xf32> to vector<16x1xf32>
    %262 = arith.addf %261, %260 : vector<16x1xf32>
    %263 = vector.extract_strided_slice %246 {offsets = [8, 6], sizes = [16, 1], strides = [1, 1]} : vector<32x8xf32> to vector<16x1xf32>
    %264 = arith.addf %262, %263 : vector<16x1xf32>
    %265 = vector.extract_strided_slice %246 {offsets = [9, 7], sizes = [16, 1], strides = [1, 1]} : vector<32x8xf32> to vector<16x1xf32>
    %266 = arith.addf %264, %265 : vector<16x1xf32>
    %267 = arith.negf %258 : vector<16x1xf32>
    %268 = math.exp %267 : vector<16x1xf32>
    %cst_104 = arith.constant 1.000000e+00 : f32
    %269 = vector.broadcast %cst_104 : f32 to vector<16x1xf32>
    %270 = arith.addf %269, %268 : vector<16x1xf32>
    %271 = arith.divf %269, %270 : vector<16x1xf32>
    %272 = arith.negf %266 : vector<16x1xf32>
    %273 = math.exp %272 : vector<16x1xf32>
    %cst_105 = arith.constant 1.000000e+00 : f32
    %274 = vector.broadcast %cst_105 : f32 to vector<16x1xf32>
    %275 = arith.addf %274, %273 : vector<16x1xf32>
    %276 = arith.divf %274, %275 : vector<16x1xf32>
    %277 = arith.mulf %271, %276 : vector<16x1xf32>
    %278 = vector.broadcast %277 : vector<16x1xf32> to vector<16x32xf32>
    %279 = arith.mulf %235, %278 : vector<16x32xf32>
    %cst_106 = arith.constant 1.000000e+00 : f32
    %280 = vector.broadcast %cst_106 : f32 to vector<16x1xf32>
    %281 = arith.subf %280, %277 : vector<16x1xf32>
    %282 = vector.broadcast %281 : vector<16x1xf32> to vector<16x32xf32>
    %283 = vector.broadcast %0 : vector<1x32xf32> to vector<16x32xf32>
    %284 = arith.mulf %282, %283 : vector<16x32xf32>
    %285 = arith.addf %279, %284 : vector<16x32xf32>
    %cst_107 = arith.constant dense<0.000000e+00> : vector<1xf32>
    %286 = vector.multi_reduction <add>, %277, %cst_107 [0] : vector<16x1xf32> to vector<1xf32>
    %287 = vector.shape_cast %286 : vector<1xf32> to vector<1x1xf32>
    %c0_108 = arith.constant 0 : index
    %c4_109 = arith.constant 4 : index
    %c0_110 = arith.constant 0 : index
    %c0_111 = arith.constant 0 : index
    %288 = vector.load %arg7[%c0_108, %c4_109, %c0_110, %c0_111] : memref<1x6x16x32xf32, #tpu.memory_space<vmem>>, vector<1x1x16x32xf32>
    %289 = vector.shape_cast %288 : vector<1x1x16x32xf32> to vector<16x32xf32>
    %290 = vector.shape_cast %285 : vector<16x32xf32> to vector<1x1x16x32xf32>
    tpu.vector_store %arg7[%c0_108, %c4_109, %c0_110, %c0_111], %290 {strides = array<i32>} : memref<1x6x16x32xf32, #tpu.memory_space<vmem>>, vector<1x1x16x32xf32>,
    %291 = arith.addf %233, %287 : vector<1x1xf32>
    %c0_112 = arith.constant 0 : index
    %c5 = arith.constant 5 : index
    %c0_113 = arith.constant 0 : index
    %c0_114 = arith.constant 0 : index
    %292 = vector.load %arg1[%c0_112, %c5, %c0_113, %c0_114] : memref<1x6x16x32xf32, #tpu.memory_space<vmem>>, vector<1x1x16x32xf32>
    %293 = vector.shape_cast %292 : vector<1x1x16x32xf32> to vector<16x32xf32>
    %c5_115 = arith.constant 5 : index
    %c0_116 = arith.constant 0 : index
    %c0_117 = arith.constant 0 : index
    %294 = vector.load %arg3[%c5_115, %c0_116, %c0_117] : memref<10x32x8xf32, #tpu.memory_space<vmem>>, vector<1x32x8xf32>
    %295 = vector.shape_cast %294 : vector<1x32x8xf32> to vector<32x8xf32>
    %c5_118 = arith.constant 5 : index
    %c0_119 = arith.constant 0 : index
    %c0_120 = arith.constant 0 : index
    %296 = vector.load %arg4[%c5_118, %c0_119, %c0_120] : memref<10x1x8xf32, #tpu.memory_space<vmem>>, vector<1x1x8xf32>
    %297 = vector.shape_cast %296 : vector<1x1x8xf32> to vector<1x8xf32>
    %c5_121 = arith.constant 5 : index
    %c0_122 = arith.constant 0 : index
    %c0_123 = arith.constant 0 : index
    %298 = vector.load %arg5[%c5_121, %c0_122, %c0_123] : memref<10x1x2xf32, #tpu.memory_space<vmem>>, vector<1x1x2xf32>
    %299 = vector.shape_cast %298 : vector<1x1x2xf32> to vector<1x2xf32>
    %cst_124 = arith.constant dense<0.000000e+00> : vector<16x8xf32>
    %300 = tpu.matmul %293, %295, %cst_124 {dimension_numbers = #tpu.dot_dimension_numbers<[1], [0], [0], [1], [0, 0, 1, 1], [], []>} : vector<16x32xf32>, vector<32x8xf32>, vector<16x8xf32> -> vector<16x8xf32>
    %301 = vector.broadcast %297 : vector<1x8xf32> to vector<16x8xf32>
    %302 = arith.addf %300, %301 : vector<16x8xf32>
    %cst_125 = arith.constant 0.000000e+00 : f32
    %303 = vector.broadcast %cst_125 : f32 to vector<8x8xf32>
    %304 = tpu.concatenate %303, %302, %303 in 0 : vector<8x8xf32>, vector<16x8xf32>, vector<8x8xf32> -> vector<32x8xf32>
    %305 = vector.extract_strided_slice %299 {offsets = [0, 0], sizes = [1, 1], strides = [1, 1]} : vector<1x2xf32> to vector<1x1xf32>
    %306 = vector.extract_strided_slice %304 {offsets = [6, 0], sizes = [16, 1], strides = [1, 1]} : vector<32x8xf32> to vector<16x1xf32>
    %307 = vector.broadcast %305 : vector<1x1xf32> to vector<16x1xf32>
    %308 = arith.addf %307, %306 : vector<16x1xf32>
    %309 = vector.extract_strided_slice %304 {offsets = [7, 1], sizes = [16, 1], strides = [1, 1]} : vector<32x8xf32> to vector<16x1xf32>
    %310 = arith.addf %308, %309 : vector<16x1xf32>
    %311 = vector.extract_strided_slice %304 {offsets = [8, 2], sizes = [16, 1], strides = [1, 1]} : vector<32x8xf32> to vector<16x1xf32>
    %312 = arith.addf %310, %311 : vector<16x1xf32>
    %313 = vector.extract_strided_slice %304 {offsets = [9, 3], sizes = [16, 1], strides = [1, 1]} : vector<32x8xf32> to vector<16x1xf32>
    %314 = arith.addf %312, %313 : vector<16x1xf32>
    %315 = vector.extract_strided_slice %304 {offsets = [10, 4], sizes = [16, 1], strides = [1, 1]} : vector<32x8xf32> to vector<16x1xf32>
    %316 = arith.addf %314, %315 : vector<16x1xf32>
    %317 = vector.extract_strided_slice %299 {offsets = [0, 1], sizes = [1, 1], strides = [1, 1]} : vector<1x2xf32> to vector<1x1xf32>
    %318 = vector.extract_strided_slice %304 {offsets = [7, 5], sizes = [16, 1], strides = [1, 1]} : vector<32x8xf32> to vector<16x1xf32>
    %319 = vector.broadcast %317 : vector<1x1xf32> to vector<16x1xf32>
    %320 = arith.addf %319, %318 : vector<16x1xf32>
    %321 = vector.extract_strided_slice %304 {offsets = [8, 6], sizes = [16, 1], strides = [1, 1]} : vector<32x8xf32> to vector<16x1xf32>
    %322 = arith.addf %320, %321 : vector<16x1xf32>
    %323 = vector.extract_strided_slice %304 {offsets = [9, 7], sizes = [16, 1], strides = [1, 1]} : vector<32x8xf32> to vector<16x1xf32>
    %324 = arith.addf %322, %323 : vector<16x1xf32>
    %325 = arith.negf %316 : vector<16x1xf32>
    %326 = math.exp %325 : vector<16x1xf32>
    %cst_126 = arith.constant 1.000000e+00 : f32
    %327 = vector.broadcast %cst_126 : f32 to vector<16x1xf32>
    %328 = arith.addf %327, %326 : vector<16x1xf32>
    %329 = arith.divf %327, %328 : vector<16x1xf32>
    %330 = arith.negf %324 : vector<16x1xf32>
    %331 = math.exp %330 : vector<16x1xf32>
    %cst_127 = arith.constant 1.000000e+00 : f32
    %332 = vector.broadcast %cst_127 : f32 to vector<16x1xf32>
    %333 = arith.addf %332, %331 : vector<16x1xf32>
    %334 = arith.divf %332, %333 : vector<16x1xf32>
    %335 = arith.mulf %329, %334 : vector<16x1xf32>
    %336 = vector.broadcast %335 : vector<16x1xf32> to vector<16x32xf32>
    %337 = arith.mulf %293, %336 : vector<16x32xf32>
    %cst_128 = arith.constant 1.000000e+00 : f32
    %338 = vector.broadcast %cst_128 : f32 to vector<16x1xf32>
    %339 = arith.subf %338, %335 : vector<16x1xf32>
    %340 = vector.broadcast %339 : vector<16x1xf32> to vector<16x32xf32>
    %341 = vector.broadcast %0 : vector<1x32xf32> to vector<16x32xf32>
    %342 = arith.mulf %340, %341 : vector<16x32xf32>
    %343 = arith.addf %337, %342 : vector<16x32xf32>
    %cst_129 = arith.constant dense<0.000000e+00> : vector<1xf32>
    %344 = vector.multi_reduction <add>, %335, %cst_129 [0] : vector<16x1xf32> to vector<1xf32>
    %345 = vector.shape_cast %344 : vector<1xf32> to vector<1x1xf32>
    %c0_130 = arith.constant 0 : index
    %c5_131 = arith.constant 5 : index
    %c0_132 = arith.constant 0 : index
    %c0_133 = arith.constant 0 : index
    %346 = vector.load %arg7[%c0_130, %c5_131, %c0_132, %c0_133] : memref<1x6x16x32xf32, #tpu.memory_space<vmem>>, vector<1x1x16x32xf32>
    %347 = vector.shape_cast %346 : vector<1x1x16x32xf32> to vector<16x32xf32>
    %348 = vector.shape_cast %343 : vector<16x32xf32> to vector<1x1x16x32xf32>
    tpu.vector_store %arg7[%c0_130, %c5_131, %c0_132, %c0_133], %348 {strides = array<i32>} : memref<1x6x16x32xf32, #tpu.memory_space<vmem>>, vector<1x1x16x32xf32>,
    %349 = arith.addf %291, %345 : vector<1x1xf32>
    %cst_134 = arith.constant 0.000000e+00 : f32
    %350 = vector.broadcast %cst_134 : f32 to vector<1x1xf32>
    %c0_135 = arith.constant 0 : index
    %c0_136 = arith.constant 0 : index
    %c0_137 = arith.constant 0 : index
    %c0_138 = arith.constant 0 : index
    %351 = vector.load %arg2[%c0_135, %c0_136, %c0_137, %c0_138] : memref<1x4x24x32xf32, #tpu.memory_space<vmem>>, vector<1x1x24x32xf32>
    %352 = vector.shape_cast %351 : vector<1x1x24x32xf32> to vector<24x32xf32>
    %c6 = arith.constant 6 : index
    %c0_139 = arith.constant 0 : index
    %c0_140 = arith.constant 0 : index
    %353 = vector.load %arg3[%c6, %c0_139, %c0_140] : memref<10x32x8xf32, #tpu.memory_space<vmem>>, vector<1x32x8xf32>
    %354 = vector.shape_cast %353 : vector<1x32x8xf32> to vector<32x8xf32>
    %c6_141 = arith.constant 6 : index
    %c0_142 = arith.constant 0 : index
    %c0_143 = arith.constant 0 : index
    %355 = vector.load %arg4[%c6_141, %c0_142, %c0_143] : memref<10x1x8xf32, #tpu.memory_space<vmem>>, vector<1x1x8xf32>
    %356 = vector.shape_cast %355 : vector<1x1x8xf32> to vector<1x8xf32>
    %c6_144 = arith.constant 6 : index
    %c0_145 = arith.constant 0 : index
    %c0_146 = arith.constant 0 : index
    %357 = vector.load %arg5[%c6_144, %c0_145, %c0_146] : memref<10x1x2xf32, #tpu.memory_space<vmem>>, vector<1x1x2xf32>
    %358 = vector.shape_cast %357 : vector<1x1x2xf32> to vector<1x2xf32>
    %cst_147 = arith.constant dense<0.000000e+00> : vector<24x8xf32>
    %359 = tpu.matmul %352, %354, %cst_147 {dimension_numbers = #tpu.dot_dimension_numbers<[1], [0], [0], [1], [0, 0, 1, 1], [], []>} : vector<24x32xf32>, vector<32x8xf32>, vector<24x8xf32> -> vector<24x8xf32>
    %360 = vector.broadcast %356 : vector<1x8xf32> to vector<24x8xf32>
    %361 = arith.addf %359, %360 : vector<24x8xf32>
    %cst_148 = arith.constant 0.000000e+00 : f32
    %362 = vector.broadcast %cst_148 : f32 to vector<8x8xf32>
    %363 = tpu.concatenate %362, %361, %362 in 0 : vector<8x8xf32>, vector<24x8xf32>, vector<8x8xf32> -> vector<40x8xf32>
    %364 = vector.extract_strided_slice %358 {offsets = [0, 0], sizes = [1, 1], strides = [1, 1]} : vector<1x2xf32> to vector<1x1xf32>
    %365 = vector.extract_strided_slice %363 {offsets = [6, 0], sizes = [24, 1], strides = [1, 1]} : vector<40x8xf32> to vector<24x1xf32>
    %366 = vector.broadcast %364 : vector<1x1xf32> to vector<24x1xf32>
    %367 = arith.addf %366, %365 : vector<24x1xf32>
    %368 = vector.extract_strided_slice %363 {offsets = [7, 1], sizes = [24, 1], strides = [1, 1]} : vector<40x8xf32> to vector<24x1xf32>
    %369 = arith.addf %367, %368 : vector<24x1xf32>
    %370 = vector.extract_strided_slice %363 {offsets = [8, 2], sizes = [24, 1], strides = [1, 1]} : vector<40x8xf32> to vector<24x1xf32>
    %371 = arith.addf %369, %370 : vector<24x1xf32>
    %372 = vector.extract_strided_slice %363 {offsets = [9, 3], sizes = [24, 1], strides = [1, 1]} : vector<40x8xf32> to vector<24x1xf32>
    %373 = arith.addf %371, %372 : vector<24x1xf32>
    %374 = vector.extract_strided_slice %363 {offsets = [10, 4], sizes = [24, 1], strides = [1, 1]} : vector<40x8xf32> to vector<24x1xf32>
    %375 = arith.addf %373, %374 : vector<24x1xf32>
    %376 = vector.extract_strided_slice %358 {offsets = [0, 1], sizes = [1, 1], strides = [1, 1]} : vector<1x2xf32> to vector<1x1xf32>
    %377 = vector.extract_strided_slice %363 {offsets = [7, 5], sizes = [24, 1], strides = [1, 1]} : vector<40x8xf32> to vector<24x1xf32>
    %378 = vector.broadcast %376 : vector<1x1xf32> to vector<24x1xf32>
    %379 = arith.addf %378, %377 : vector<24x1xf32>
    %380 = vector.extract_strided_slice %363 {offsets = [8, 6], sizes = [24, 1], strides = [1, 1]} : vector<40x8xf32> to vector<24x1xf32>
    %381 = arith.addf %379, %380 : vector<24x1xf32>
    %382 = vector.extract_strided_slice %363 {offsets = [9, 7], sizes = [24, 1], strides = [1, 1]} : vector<40x8xf32> to vector<24x1xf32>
    %383 = arith.addf %381, %382 : vector<24x1xf32>
    %384 = arith.negf %375 : vector<24x1xf32>
    %385 = math.exp %384 : vector<24x1xf32>
    %cst_149 = arith.constant 1.000000e+00 : f32
    %386 = vector.broadcast %cst_149 : f32 to vector<24x1xf32>
    %387 = arith.addf %386, %385 : vector<24x1xf32>
    %388 = arith.divf %386, %387 : vector<24x1xf32>
    %389 = arith.negf %383 : vector<24x1xf32>
    %390 = math.exp %389 : vector<24x1xf32>
    %cst_150 = arith.constant 1.000000e+00 : f32
    %391 = vector.broadcast %cst_150 : f32 to vector<24x1xf32>
    %392 = arith.addf %391, %390 : vector<24x1xf32>
    %393 = arith.divf %391, %392 : vector<24x1xf32>
    %394 = arith.mulf %388, %393 : vector<24x1xf32>
    %395 = vector.broadcast %394 : vector<24x1xf32> to vector<24x32xf32>
    %396 = arith.mulf %352, %395 : vector<24x32xf32>
    %cst_151 = arith.constant 1.000000e+00 : f32
    %397 = vector.broadcast %cst_151 : f32 to vector<24x1xf32>
    %398 = arith.subf %397, %394 : vector<24x1xf32>
    %399 = vector.broadcast %398 : vector<24x1xf32> to vector<24x32xf32>
    %400 = vector.broadcast %0 : vector<1x32xf32> to vector<24x32xf32>
    %401 = arith.mulf %399, %400 : vector<24x32xf32>
    %402 = arith.addf %396, %401 : vector<24x32xf32>
    %cst_152 = arith.constant dense<0.000000e+00> : vector<1xf32>
    %403 = vector.multi_reduction <add>, %394, %cst_152 [0] : vector<24x1xf32> to vector<1xf32>
    %404 = vector.shape_cast %403 : vector<1xf32> to vector<1x1xf32>
    %c0_153 = arith.constant 0 : index
    %c0_154 = arith.constant 0 : index
    %c0_155 = arith.constant 0 : index
    %c0_156 = arith.constant 0 : index
    %405 = vector.load %arg8[%c0_153, %c0_154, %c0_155, %c0_156] : memref<1x4x24x32xf32, #tpu.memory_space<vmem>>, vector<1x1x24x32xf32>
    %406 = vector.shape_cast %405 : vector<1x1x24x32xf32> to vector<24x32xf32>
    %407 = vector.shape_cast %402 : vector<24x32xf32> to vector<1x1x24x32xf32>
    tpu.vector_store %arg8[%c0_153, %c0_154, %c0_155, %c0_156], %407 {strides = array<i32>} : memref<1x4x24x32xf32, #tpu.memory_space<vmem>>, vector<1x1x24x32xf32>,
    %408 = arith.addf %350, %404 : vector<1x1xf32>
    %c0_157 = arith.constant 0 : index
    %c1_158 = arith.constant 1 : index
    %c0_159 = arith.constant 0 : index
    %c0_160 = arith.constant 0 : index
    %409 = vector.load %arg2[%c0_157, %c1_158, %c0_159, %c0_160] : memref<1x4x24x32xf32, #tpu.memory_space<vmem>>, vector<1x1x24x32xf32>
    %410 = vector.shape_cast %409 : vector<1x1x24x32xf32> to vector<24x32xf32>
    %c7 = arith.constant 7 : index
    %c0_161 = arith.constant 0 : index
    %c0_162 = arith.constant 0 : index
    %411 = vector.load %arg3[%c7, %c0_161, %c0_162] : memref<10x32x8xf32, #tpu.memory_space<vmem>>, vector<1x32x8xf32>
    %412 = vector.shape_cast %411 : vector<1x32x8xf32> to vector<32x8xf32>
    %c7_163 = arith.constant 7 : index
    %c0_164 = arith.constant 0 : index
    %c0_165 = arith.constant 0 : index
    %413 = vector.load %arg4[%c7_163, %c0_164, %c0_165] : memref<10x1x8xf32, #tpu.memory_space<vmem>>, vector<1x1x8xf32>
    %414 = vector.shape_cast %413 : vector<1x1x8xf32> to vector<1x8xf32>
    %c7_166 = arith.constant 7 : index
    %c0_167 = arith.constant 0 : index
    %c0_168 = arith.constant 0 : index
    %415 = vector.load %arg5[%c7_166, %c0_167, %c0_168] : memref<10x1x2xf32, #tpu.memory_space<vmem>>, vector<1x1x2xf32>
    %416 = vector.shape_cast %415 : vector<1x1x2xf32> to vector<1x2xf32>
    %cst_169 = arith.constant dense<0.000000e+00> : vector<24x8xf32>
    %417 = tpu.matmul %410, %412, %cst_169 {dimension_numbers = #tpu.dot_dimension_numbers<[1], [0], [0], [1], [0, 0, 1, 1], [], []>} : vector<24x32xf32>, vector<32x8xf32>, vector<24x8xf32> -> vector<24x8xf32>
    %418 = vector.broadcast %414 : vector<1x8xf32> to vector<24x8xf32>
    %419 = arith.addf %417, %418 : vector<24x8xf32>
    %cst_170 = arith.constant 0.000000e+00 : f32
    %420 = vector.broadcast %cst_170 : f32 to vector<8x8xf32>
    %421 = tpu.concatenate %420, %419, %420 in 0 : vector<8x8xf32>, vector<24x8xf32>, vector<8x8xf32> -> vector<40x8xf32>
    %422 = vector.extract_strided_slice %416 {offsets = [0, 0], sizes = [1, 1], strides = [1, 1]} : vector<1x2xf32> to vector<1x1xf32>
    %423 = vector.extract_strided_slice %421 {offsets = [6, 0], sizes = [24, 1], strides = [1, 1]} : vector<40x8xf32> to vector<24x1xf32>
    %424 = vector.broadcast %422 : vector<1x1xf32> to vector<24x1xf32>
    %425 = arith.addf %424, %423 : vector<24x1xf32>
    %426 = vector.extract_strided_slice %421 {offsets = [7, 1], sizes = [24, 1], strides = [1, 1]} : vector<40x8xf32> to vector<24x1xf32>
    %427 = arith.addf %425, %426 : vector<24x1xf32>
    %428 = vector.extract_strided_slice %421 {offsets = [8, 2], sizes = [24, 1], strides = [1, 1]} : vector<40x8xf32> to vector<24x1xf32>
    %429 = arith.addf %427, %428 : vector<24x1xf32>
    %430 = vector.extract_strided_slice %421 {offsets = [9, 3], sizes = [24, 1], strides = [1, 1]} : vector<40x8xf32> to vector<24x1xf32>
    %431 = arith.addf %429, %430 : vector<24x1xf32>
    %432 = vector.extract_strided_slice %421 {offsets = [10, 4], sizes = [24, 1], strides = [1, 1]} : vector<40x8xf32> to vector<24x1xf32>
    %433 = arith.addf %431, %432 : vector<24x1xf32>
    %434 = vector.extract_strided_slice %416 {offsets = [0, 1], sizes = [1, 1], strides = [1, 1]} : vector<1x2xf32> to vector<1x1xf32>
    %435 = vector.extract_strided_slice %421 {offsets = [7, 5], sizes = [24, 1], strides = [1, 1]} : vector<40x8xf32> to vector<24x1xf32>
    %436 = vector.broadcast %434 : vector<1x1xf32> to vector<24x1xf32>
    %437 = arith.addf %436, %435 : vector<24x1xf32>
    %438 = vector.extract_strided_slice %421 {offsets = [8, 6], sizes = [24, 1], strides = [1, 1]} : vector<40x8xf32> to vector<24x1xf32>
    %439 = arith.addf %437, %438 : vector<24x1xf32>
    %440 = vector.extract_strided_slice %421 {offsets = [9, 7], sizes = [24, 1], strides = [1, 1]} : vector<40x8xf32> to vector<24x1xf32>
    %441 = arith.addf %439, %440 : vector<24x1xf32>
    %442 = arith.negf %433 : vector<24x1xf32>
    %443 = math.exp %442 : vector<24x1xf32>
    %cst_171 = arith.constant 1.000000e+00 : f32
    %444 = vector.broadcast %cst_171 : f32 to vector<24x1xf32>
    %445 = arith.addf %444, %443 : vector<24x1xf32>
    %446 = arith.divf %444, %445 : vector<24x1xf32>
    %447 = arith.negf %441 : vector<24x1xf32>
    %448 = math.exp %447 : vector<24x1xf32>
    %cst_172 = arith.constant 1.000000e+00 : f32
    %449 = vector.broadcast %cst_172 : f32 to vector<24x1xf32>
    %450 = arith.addf %449, %448 : vector<24x1xf32>
    %451 = arith.divf %449, %450 : vector<24x1xf32>
    %452 = arith.mulf %446, %451 : vector<24x1xf32>
    %453 = vector.broadcast %452 : vector<24x1xf32> to vector<24x32xf32>
    %454 = arith.mulf %410, %453 : vector<24x32xf32>
    %cst_173 = arith.constant 1.000000e+00 : f32
    %455 = vector.broadcast %cst_173 : f32 to vector<24x1xf32>
    %456 = arith.subf %455, %452 : vector<24x1xf32>
    %457 = vector.broadcast %456 : vector<24x1xf32> to vector<24x32xf32>
    %458 = vector.broadcast %0 : vector<1x32xf32> to vector<24x32xf32>
    %459 = arith.mulf %457, %458 : vector<24x32xf32>
    %460 = arith.addf %454, %459 : vector<24x32xf32>
    %cst_174 = arith.constant dense<0.000000e+00> : vector<1xf32>
    %461 = vector.multi_reduction <add>, %452, %cst_174 [0] : vector<24x1xf32> to vector<1xf32>
    %462 = vector.shape_cast %461 : vector<1xf32> to vector<1x1xf32>
    %c0_175 = arith.constant 0 : index
    %c1_176 = arith.constant 1 : index
    %c0_177 = arith.constant 0 : index
    %c0_178 = arith.constant 0 : index
    %463 = vector.load %arg8[%c0_175, %c1_176, %c0_177, %c0_178] : memref<1x4x24x32xf32, #tpu.memory_space<vmem>>, vector<1x1x24x32xf32>
    %464 = vector.shape_cast %463 : vector<1x1x24x32xf32> to vector<24x32xf32>
    %465 = vector.shape_cast %460 : vector<24x32xf32> to vector<1x1x24x32xf32>
    tpu.vector_store %arg8[%c0_175, %c1_176, %c0_177, %c0_178], %465 {strides = array<i32>} : memref<1x4x24x32xf32, #tpu.memory_space<vmem>>, vector<1x1x24x32xf32>,
    %466 = arith.addf %408, %462 : vector<1x1xf32>
    %c0_179 = arith.constant 0 : index
    %c2_180 = arith.constant 2 : index
    %c0_181 = arith.constant 0 : index
    %c0_182 = arith.constant 0 : index
    %467 = vector.load %arg2[%c0_179, %c2_180, %c0_181, %c0_182] : memref<1x4x24x32xf32, #tpu.memory_space<vmem>>, vector<1x1x24x32xf32>
    %468 = vector.shape_cast %467 : vector<1x1x24x32xf32> to vector<24x32xf32>
    %c8 = arith.constant 8 : index
    %c0_183 = arith.constant 0 : index
    %c0_184 = arith.constant 0 : index
    %469 = vector.load %arg3[%c8, %c0_183, %c0_184] : memref<10x32x8xf32, #tpu.memory_space<vmem>>, vector<1x32x8xf32>
    %470 = vector.shape_cast %469 : vector<1x32x8xf32> to vector<32x8xf32>
    %c8_185 = arith.constant 8 : index
    %c0_186 = arith.constant 0 : index
    %c0_187 = arith.constant 0 : index
    %471 = vector.load %arg4[%c8_185, %c0_186, %c0_187] : memref<10x1x8xf32, #tpu.memory_space<vmem>>, vector<1x1x8xf32>
    %472 = vector.shape_cast %471 : vector<1x1x8xf32> to vector<1x8xf32>
    %c8_188 = arith.constant 8 : index
    %c0_189 = arith.constant 0 : index
    %c0_190 = arith.constant 0 : index
    %473 = vector.load %arg5[%c8_188, %c0_189, %c0_190] : memref<10x1x2xf32, #tpu.memory_space<vmem>>, vector<1x1x2xf32>
    %474 = vector.shape_cast %473 : vector<1x1x2xf32> to vector<1x2xf32>
    %cst_191 = arith.constant dense<0.000000e+00> : vector<24x8xf32>
    %475 = tpu.matmul %468, %470, %cst_191 {dimension_numbers = #tpu.dot_dimension_numbers<[1], [0], [0], [1], [0, 0, 1, 1], [], []>} : vector<24x32xf32>, vector<32x8xf32>, vector<24x8xf32> -> vector<24x8xf32>
    %476 = vector.broadcast %472 : vector<1x8xf32> to vector<24x8xf32>
    %477 = arith.addf %475, %476 : vector<24x8xf32>
    %cst_192 = arith.constant 0.000000e+00 : f32
    %478 = vector.broadcast %cst_192 : f32 to vector<8x8xf32>
    %479 = tpu.concatenate %478, %477, %478 in 0 : vector<8x8xf32>, vector<24x8xf32>, vector<8x8xf32> -> vector<40x8xf32>
    %480 = vector.extract_strided_slice %474 {offsets = [0, 0], sizes = [1, 1], strides = [1, 1]} : vector<1x2xf32> to vector<1x1xf32>
    %481 = vector.extract_strided_slice %479 {offsets = [6, 0], sizes = [24, 1], strides = [1, 1]} : vector<40x8xf32> to vector<24x1xf32>
    %482 = vector.broadcast %480 : vector<1x1xf32> to vector<24x1xf32>
    %483 = arith.addf %482, %481 : vector<24x1xf32>
    %484 = vector.extract_strided_slice %479 {offsets = [7, 1], sizes = [24, 1], strides = [1, 1]} : vector<40x8xf32> to vector<24x1xf32>
    %485 = arith.addf %483, %484 : vector<24x1xf32>
    %486 = vector.extract_strided_slice %479 {offsets = [8, 2], sizes = [24, 1], strides = [1, 1]} : vector<40x8xf32> to vector<24x1xf32>
    %487 = arith.addf %485, %486 : vector<24x1xf32>
    %488 = vector.extract_strided_slice %479 {offsets = [9, 3], sizes = [24, 1], strides = [1, 1]} : vector<40x8xf32> to vector<24x1xf32>
    %489 = arith.addf %487, %488 : vector<24x1xf32>
    %490 = vector.extract_strided_slice %479 {offsets = [10, 4], sizes = [24, 1], strides = [1, 1]} : vector<40x8xf32> to vector<24x1xf32>
    %491 = arith.addf %489, %490 : vector<24x1xf32>
    %492 = vector.extract_strided_slice %474 {offsets = [0, 1], sizes = [1, 1], strides = [1, 1]} : vector<1x2xf32> to vector<1x1xf32>
    %493 = vector.extract_strided_slice %479 {offsets = [7, 5], sizes = [24, 1], strides = [1, 1]} : vector<40x8xf32> to vector<24x1xf32>
    %494 = vector.broadcast %492 : vector<1x1xf32> to vector<24x1xf32>
    %495 = arith.addf %494, %493 : vector<24x1xf32>
    %496 = vector.extract_strided_slice %479 {offsets = [8, 6], sizes = [24, 1], strides = [1, 1]} : vector<40x8xf32> to vector<24x1xf32>
    %497 = arith.addf %495, %496 : vector<24x1xf32>
    %498 = vector.extract_strided_slice %479 {offsets = [9, 7], sizes = [24, 1], strides = [1, 1]} : vector<40x8xf32> to vector<24x1xf32>
    %499 = arith.addf %497, %498 : vector<24x1xf32>
    %500 = arith.negf %491 : vector<24x1xf32>
    %501 = math.exp %500 : vector<24x1xf32>
    %cst_193 = arith.constant 1.000000e+00 : f32
    %502 = vector.broadcast %cst_193 : f32 to vector<24x1xf32>
    %503 = arith.addf %502, %501 : vector<24x1xf32>
    %504 = arith.divf %502, %503 : vector<24x1xf32>
    %505 = arith.negf %499 : vector<24x1xf32>
    %506 = math.exp %505 : vector<24x1xf32>
    %cst_194 = arith.constant 1.000000e+00 : f32
    %507 = vector.broadcast %cst_194 : f32 to vector<24x1xf32>
    %508 = arith.addf %507, %506 : vector<24x1xf32>
    %509 = arith.divf %507, %508 : vector<24x1xf32>
    %510 = arith.mulf %504, %509 : vector<24x1xf32>
    %511 = vector.broadcast %510 : vector<24x1xf32> to vector<24x32xf32>
    %512 = arith.mulf %468, %511 : vector<24x32xf32>
    %cst_195 = arith.constant 1.000000e+00 : f32
    %513 = vector.broadcast %cst_195 : f32 to vector<24x1xf32>
    %514 = arith.subf %513, %510 : vector<24x1xf32>
    %515 = vector.broadcast %514 : vector<24x1xf32> to vector<24x32xf32>
    %516 = vector.broadcast %0 : vector<1x32xf32> to vector<24x32xf32>
    %517 = arith.mulf %515, %516 : vector<24x32xf32>
    %518 = arith.addf %512, %517 : vector<24x32xf32>
    %cst_196 = arith.constant dense<0.000000e+00> : vector<1xf32>
    %519 = vector.multi_reduction <add>, %510, %cst_196 [0] : vector<24x1xf32> to vector<1xf32>
    %520 = vector.shape_cast %519 : vector<1xf32> to vector<1x1xf32>
    %c0_197 = arith.constant 0 : index
    %c2_198 = arith.constant 2 : index
    %c0_199 = arith.constant 0 : index
    %c0_200 = arith.constant 0 : index
    %521 = vector.load %arg8[%c0_197, %c2_198, %c0_199, %c0_200] : memref<1x4x24x32xf32, #tpu.memory_space<vmem>>, vector<1x1x24x32xf32>
    %522 = vector.shape_cast %521 : vector<1x1x24x32xf32> to vector<24x32xf32>
    %523 = vector.shape_cast %518 : vector<24x32xf32> to vector<1x1x24x32xf32>
    tpu.vector_store %arg8[%c0_197, %c2_198, %c0_199, %c0_200], %523 {strides = array<i32>} : memref<1x4x24x32xf32, #tpu.memory_space<vmem>>, vector<1x1x24x32xf32>,
    %524 = arith.addf %466, %520 : vector<1x1xf32>
    %c0_201 = arith.constant 0 : index
    %c3_202 = arith.constant 3 : index
    %c0_203 = arith.constant 0 : index
    %c0_204 = arith.constant 0 : index
    %525 = vector.load %arg2[%c0_201, %c3_202, %c0_203, %c0_204] : memref<1x4x24x32xf32, #tpu.memory_space<vmem>>, vector<1x1x24x32xf32>
    %526 = vector.shape_cast %525 : vector<1x1x24x32xf32> to vector<24x32xf32>
    %c9 = arith.constant 9 : index
    %c0_205 = arith.constant 0 : index
    %c0_206 = arith.constant 0 : index
    %527 = vector.load %arg3[%c9, %c0_205, %c0_206] : memref<10x32x8xf32, #tpu.memory_space<vmem>>, vector<1x32x8xf32>
    %528 = vector.shape_cast %527 : vector<1x32x8xf32> to vector<32x8xf32>
    %c9_207 = arith.constant 9 : index
    %c0_208 = arith.constant 0 : index
    %c0_209 = arith.constant 0 : index
    %529 = vector.load %arg4[%c9_207, %c0_208, %c0_209] : memref<10x1x8xf32, #tpu.memory_space<vmem>>, vector<1x1x8xf32>
    %530 = vector.shape_cast %529 : vector<1x1x8xf32> to vector<1x8xf32>
    %c9_210 = arith.constant 9 : index
    %c0_211 = arith.constant 0 : index
    %c0_212 = arith.constant 0 : index
    %531 = vector.load %arg5[%c9_210, %c0_211, %c0_212] : memref<10x1x2xf32, #tpu.memory_space<vmem>>, vector<1x1x2xf32>
    %532 = vector.shape_cast %531 : vector<1x1x2xf32> to vector<1x2xf32>
    %cst_213 = arith.constant dense<0.000000e+00> : vector<24x8xf32>
    %533 = tpu.matmul %526, %528, %cst_213 {dimension_numbers = #tpu.dot_dimension_numbers<[1], [0], [0], [1], [0, 0, 1, 1], [], []>} : vector<24x32xf32>, vector<32x8xf32>, vector<24x8xf32> -> vector<24x8xf32>
    %534 = vector.broadcast %530 : vector<1x8xf32> to vector<24x8xf32>
    %535 = arith.addf %533, %534 : vector<24x8xf32>
    %cst_214 = arith.constant 0.000000e+00 : f32
    %536 = vector.broadcast %cst_214 : f32 to vector<8x8xf32>
    %537 = tpu.concatenate %536, %535, %536 in 0 : vector<8x8xf32>, vector<24x8xf32>, vector<8x8xf32> -> vector<40x8xf32>
    %538 = vector.extract_strided_slice %532 {offsets = [0, 0], sizes = [1, 1], strides = [1, 1]} : vector<1x2xf32> to vector<1x1xf32>
    %539 = vector.extract_strided_slice %537 {offsets = [6, 0], sizes = [24, 1], strides = [1, 1]} : vector<40x8xf32> to vector<24x1xf32>
    %540 = vector.broadcast %538 : vector<1x1xf32> to vector<24x1xf32>
    %541 = arith.addf %540, %539 : vector<24x1xf32>
    %542 = vector.extract_strided_slice %537 {offsets = [7, 1], sizes = [24, 1], strides = [1, 1]} : vector<40x8xf32> to vector<24x1xf32>
    %543 = arith.addf %541, %542 : vector<24x1xf32>
    %544 = vector.extract_strided_slice %537 {offsets = [8, 2], sizes = [24, 1], strides = [1, 1]} : vector<40x8xf32> to vector<24x1xf32>
    %545 = arith.addf %543, %544 : vector<24x1xf32>
    %546 = vector.extract_strided_slice %537 {offsets = [9, 3], sizes = [24, 1], strides = [1, 1]} : vector<40x8xf32> to vector<24x1xf32>
    %547 = arith.addf %545, %546 : vector<24x1xf32>
    %548 = vector.extract_strided_slice %537 {offsets = [10, 4], sizes = [24, 1], strides = [1, 1]} : vector<40x8xf32> to vector<24x1xf32>
    %549 = arith.addf %547, %548 : vector<24x1xf32>
    %550 = vector.extract_strided_slice %532 {offsets = [0, 1], sizes = [1, 1], strides = [1, 1]} : vector<1x2xf32> to vector<1x1xf32>
    %551 = vector.extract_strided_slice %537 {offsets = [7, 5], sizes = [24, 1], strides = [1, 1]} : vector<40x8xf32> to vector<24x1xf32>
    %552 = vector.broadcast %550 : vector<1x1xf32> to vector<24x1xf32>
    %553 = arith.addf %552, %551 : vector<24x1xf32>
    %554 = vector.extract_strided_slice %537 {offsets = [8, 6], sizes = [24, 1], strides = [1, 1]} : vector<40x8xf32> to vector<24x1xf32>
    %555 = arith.addf %553, %554 : vector<24x1xf32>
    %556 = vector.extract_strided_slice %537 {offsets = [9, 7], sizes = [24, 1], strides = [1, 1]} : vector<40x8xf32> to vector<24x1xf32>
    %557 = arith.addf %555, %556 : vector<24x1xf32>
    %558 = arith.negf %549 : vector<24x1xf32>
    %559 = math.exp %558 : vector<24x1xf32>
    %cst_215 = arith.constant 1.000000e+00 : f32
    %560 = vector.broadcast %cst_215 : f32 to vector<24x1xf32>
    %561 = arith.addf %560, %559 : vector<24x1xf32>
    %562 = arith.divf %560, %561 : vector<24x1xf32>
    %563 = arith.negf %557 : vector<24x1xf32>
    %564 = math.exp %563 : vector<24x1xf32>
    %cst_216 = arith.constant 1.000000e+00 : f32
    %565 = vector.broadcast %cst_216 : f32 to vector<24x1xf32>
    %566 = arith.addf %565, %564 : vector<24x1xf32>
    %567 = arith.divf %565, %566 : vector<24x1xf32>
    %568 = arith.mulf %562, %567 : vector<24x1xf32>
    %569 = vector.broadcast %568 : vector<24x1xf32> to vector<24x32xf32>
    %570 = arith.mulf %526, %569 : vector<24x32xf32>
    %cst_217 = arith.constant 1.000000e+00 : f32
    %571 = vector.broadcast %cst_217 : f32 to vector<24x1xf32>
    %572 = arith.subf %571, %568 : vector<24x1xf32>
    %573 = vector.broadcast %572 : vector<24x1xf32> to vector<24x32xf32>
    %574 = vector.broadcast %0 : vector<1x32xf32> to vector<24x32xf32>
    %575 = arith.mulf %573, %574 : vector<24x32xf32>
    %576 = arith.addf %570, %575 : vector<24x32xf32>
    %cst_218 = arith.constant dense<0.000000e+00> : vector<1xf32>
    %577 = vector.multi_reduction <add>, %568, %cst_218 [0] : vector<24x1xf32> to vector<1xf32>
    %578 = vector.shape_cast %577 : vector<1xf32> to vector<1x1xf32>
    %c0_219 = arith.constant 0 : index
    %c3_220 = arith.constant 3 : index
    %c0_221 = arith.constant 0 : index
    %c0_222 = arith.constant 0 : index
    %579 = vector.load %arg8[%c0_219, %c3_220, %c0_221, %c0_222] : memref<1x4x24x32xf32, #tpu.memory_space<vmem>>, vector<1x1x24x32xf32>
    %580 = vector.shape_cast %579 : vector<1x1x24x32xf32> to vector<24x32xf32>
    %581 = vector.shape_cast %576 : vector<24x32xf32> to vector<1x1x24x32xf32>
    tpu.vector_store %arg8[%c0_219, %c3_220, %c0_221, %c0_222], %581 {strides = array<i32>} : memref<1x4x24x32xf32, #tpu.memory_space<vmem>>, vector<1x1x24x32xf32>,
    %582 = arith.addf %524, %578 : vector<1x1xf32>
    %c0_223 = arith.constant 0 : index
    %c0_224 = arith.constant 0 : index
    %c0_225 = arith.constant 0 : index
    %583 = vector.load %arg9[%c0_223, %c0_224, %c0_225] : memref<1x1x1xf32, #tpu.memory_space<vmem>>, vector<1x1x1xf32>
    %584 = vector.shape_cast %583 : vector<1x1x1xf32> to vector<1x1xf32>
    %585 = vector.shape_cast %349 : vector<1x1xf32> to vector<1x1x1xf32>
    tpu.vector_store %arg9[%c0_223, %c0_224, %c0_225], %585 {strides = array<i32>} : memref<1x1x1xf32, #tpu.memory_space<vmem>>, vector<1x1x1xf32>,
    %c0_226 = arith.constant 0 : index
    %c0_227 = arith.constant 0 : index
    %c0_228 = arith.constant 0 : index
    %586 = vector.load %arg10[%c0_226, %c0_227, %c0_228] : memref<1x1x1xf32, #tpu.memory_space<vmem>>, vector<1x1x1xf32>
    %587 = vector.shape_cast %586 : vector<1x1x1xf32> to vector<1x1xf32>
    %588 = vector.shape_cast %582 : vector<1x1xf32> to vector<1x1x1xf32>
    tpu.vector_store %arg10[%c0_226, %c0_227, %c0_228], %588 {strides = array<i32>} : memref<1x1x1xf32, #tpu.memory_space<vmem>>, vector<1x1x1xf32>,
    return
  }
  func.func @transform_0(%arg0: i32) -> (i32, i32, i32, i32) {
    %c0_i32 = arith.constant 0 : i32
    %c0_i32_0 = arith.constant 0 : i32
    %c0_i32_1 = arith.constant 0 : i32
    %c0_i32_2 = arith.constant 0 : i32
    return %arg0, %c0_i32, %c0_i32_0, %c0_i32_1 : i32, i32, i32, i32
  }
  func.func @transform_1(%arg0: i32) -> (i32, i32, i32, i32) {
    %c0_i32 = arith.constant 0 : i32
    %c0_i32_0 = arith.constant 0 : i32
    %c0_i32_1 = arith.constant 0 : i32
    %c0_i32_2 = arith.constant 0 : i32
    return %arg0, %c0_i32, %c0_i32_0, %c0_i32_1 : i32, i32, i32, i32
  }
  func.func @transform_2(%arg0: i32) -> (i32, i32, i32) {
    %c0_i32 = arith.constant 0 : i32
    %c0_i32_0 = arith.constant 0 : i32
    %c0_i32_1 = arith.constant 0 : i32
    %c0_i32_2 = arith.constant 0 : i32
    return %c0_i32, %c0_i32_0, %c0_i32_1 : i32, i32, i32
  }
  func.func @transform_3(%arg0: i32) -> (i32, i32, i32) {
    %c0_i32 = arith.constant 0 : i32
    %c0_i32_0 = arith.constant 0 : i32
    %c0_i32_1 = arith.constant 0 : i32
    %c0_i32_2 = arith.constant 0 : i32
    return %c0_i32, %c0_i32_0, %c0_i32_1 : i32, i32, i32
  }
  func.func @transform_4(%arg0: i32) -> (i32, i32, i32) {
    %c0_i32 = arith.constant 0 : i32
    %c0_i32_0 = arith.constant 0 : i32
    %c0_i32_1 = arith.constant 0 : i32
    %c0_i32_2 = arith.constant 0 : i32
    return %c0_i32, %c0_i32_0, %c0_i32_1 : i32, i32, i32
  }
  func.func @transform_5(%arg0: i32) -> (i32, i32) {
    %c0_i32 = arith.constant 0 : i32
    %c0_i32_0 = arith.constant 0 : i32
    %c0_i32_1 = arith.constant 0 : i32
    return %c0_i32, %c0_i32_0 : i32, i32
  }
  func.func @transform_6(%arg0: i32) -> (i32, i32, i32, i32) {
    %c0_i32 = arith.constant 0 : i32
    %c0_i32_0 = arith.constant 0 : i32
    %c0_i32_1 = arith.constant 0 : i32
    %c0_i32_2 = arith.constant 0 : i32
    return %arg0, %c0_i32, %c0_i32_0, %c0_i32_1 : i32, i32, i32, i32
  }
  func.func @transform_7(%arg0: i32) -> (i32, i32, i32, i32) {
    %c0_i32 = arith.constant 0 : i32
    %c0_i32_0 = arith.constant 0 : i32
    %c0_i32_1 = arith.constant 0 : i32
    %c0_i32_2 = arith.constant 0 : i32
    return %arg0, %c0_i32, %c0_i32_0, %c0_i32_1 : i32, i32, i32, i32
  }
  func.func @transform_8(%arg0: i32) -> (i32, i32, i32) {
    %c0_i32 = arith.constant 0 : i32
    %c0_i32_0 = arith.constant 0 : i32
    %c0_i32_1 = arith.constant 0 : i32
    return %arg0, %c0_i32, %c0_i32_0 : i32, i32, i32
  }
  func.func @transform_9(%arg0: i32) -> (i32, i32, i32) {
    %c0_i32 = arith.constant 0 : i32
    %c0_i32_0 = arith.constant 0 : i32
    %c0_i32_1 = arith.constant 0 : i32
    return %arg0, %c0_i32, %c0_i32_0 : i32, i32, i32
  }
}

</mosaic_0001>

<bundles_post_ra>
// kernel: tpu_custom_call.1
= control target key start
LH: loop header
LB: loop body
LE: loop exit
PB: predicated region body
PF: predicated region fallthrough
CT: control target
= control target key end

     0   :  { %s7574_s0 = inlined_call_operand.vmem [shape: f32[2,6,16,32], index: 0, kind: input, shape index: {}]   ;;  %s7575_s1 = inlined_call_operand.vmem [shape: f32[2,4,24,32], index: 1, kind: input, shape index: {}]   ;;  %s7576_s2 = inlined_call_operand.vmem [shape: f32[10,32,8], index: 2, kind: input, shape index: {}]   ;;  %s7577_s3 = inlined_call_operand.vmem [shape: f32[10,1,8], index: 3, kind: input, shape index: {}]   ;;  %s7578_s4 = inlined_call_operand.vmem [shape: f32[10,1,2], index: 4, kind: input, shape index: {}]   ;;  %s7579_s5 = inlined_call_operand.vmem [shape: f32[1,32], index: 5, kind: input, shape index: {}]   ;;  %s7580_s6 = inlined_call_operand.hbm [shape: f32[2,6,16,32], index: 6, kind: output, shape index: {0}]   ;;  %s7581_s7 = inlined_call_operand.hbm [shape: f32[2,4,24,32], index: 7, kind: output, shape index: {1}]   ;;  %s7582_s8 = inlined_call_operand.vmem [shape: f32[2,1,1], index: 8, kind: output, shape index: {2}]   ;;  %s7583_s9 = inlined_call_operand.vmem [shape: f32[2,1,1], index: 9, kind: output, shape index: {3}]  }
   0x1   :  { %7621 = sst [smem:[#allocation113_spill]] %s7574_s0 }
   0x2   :  { %7622 = sst [smem:[#allocation114_spill]] %s7575_s1 }
   0x3   :  { %7623 = sst [smem:[#allocation115_spill]] %s7576_s2 }
   0x4   :  { %15 = vsyncpa [#allocation3], 0 }
   0x5   :  { %17 = vsyncpa [#allocation3 + $0x1], 0 }
   0x6   :  { %18 = vsyncpa [#allocation5], 0 }
   0x7   :  { %20 = vsyncpa [#allocation5 + $0x1], 0  ;;  %s5145_s30 = smov 0   ;;  %s5147_s10 = smov 0  }
   0x8   :  { %s5149_s11 = smov 0   ;;  %s5151_s12 = smov 0  }
   0x9 LB: > { %s5166_s13 = sadd.s32 4294967295, %s5079_s12   ;;  %s4191_s14 = sadd.s32 4294967294, %s5079_s12   ;;  %s5079_s12 = sphi %s5151_s12, %s7886_s12   ;;  %s5075_s11 = sphi %s5149_s11, %s7885_s11   ;;  %s5071_s10 = sphi %s5147_s10, %s7884_s10   ;;  %s5067_s30 = sphi %s5145_s30, %s7883_s30  }
   0xa   : > { %s5170_s15 = sadd.s32 1, %s5079_s12   ;;  %s169_s16 = sadd.s32 1, %s5075_s11 }
   0xb   : > { %s166_s17 = ssub.s32 %s5079_s12, %s5170_s15  ;;  %p179_p0 = scmp.ne.s32.totalorder %s5075_s11, %s5071_s10 }
   0xc   : > { %p167_p1 = scmp.eq.s32.totalorder %s166_s17, 0  ;;  %p180_p2 = scmp.eq.s32.totalorder %s5166_s13, 1 }
   0xd   : > { %p185_p3 = scmp.ne.s32.totalorder %s5071_s10, %s5067_s30  ;;  %p186_p4 = scmp.eq.s32.totalorder %s4191_s14, 1 }
   0xe   : > { %s5181_s18 = scalar_select %p167_p1, %s5075_s11, %s169_s16  }
   0xf   : > { %p5183_p5 = por %p180_p2, %p179_p0  ;;  %p5187_p6 = por %p186_p4, %p185_p3 }
  0x10   : > { %p4194_p7 = scmp.ge.s32.totalorder %s5079_s12, 1  ;;  %p310_p8 = scmp.lt.s32.totalorder %s5079_s12, 3 }
  0x12   : > { %p311_p9 = pnand %p4194_p7, %p310_p8 }
  0x14   : > { %314 = sbr.rel (%p311_p9) target bundleno = 1227 (0x4cb), region = 44 }
  0x1b   : > { %s7626_s2 = sld [smem:[#allocation115_spill]]  ;;  %p362_p10 = scmp.lt.s32.totalorder %s5166_s13, 1  ;;  %vm393_vm0 = vcmask 261120   ;;  %v5081_v51 = vmov 0.0|0.0   ;;  %vm5082_vm1 = vmmov 0   ;;  %v5083_v55 = vmov 0.0  }
  0x1c   : > { %s7627_s0 = sld [smem:[#allocation113_spill]]  ;;  %s7628_s1 = sld [smem:[#allocation114_spill]]  ;;  %vm521_vm2 = vcmask 1044480   ;;  %vm539_vm3 = vcmask 1043456   ;;  %vm487_vm4 = vcmask 1046528   ;;  %vm505_vm5 = vcmask 1045504  }
  0x1d   : > { %s5213_s21 = scalar_select %p362_p10, %s5166_s13, 1  ;;  %vm557_vm6 = vcmask 1040384   ;;  %vm647_vm7 = vcmask 1041408   ;;  %vm703_vm8 = vcmask 7168   ;;  %vm3997_vm9 = vcmask 0  }
  0x1e   : > { %s5084_s25 = smov 123   ;;  %s5085_s16 = smov 127  }
  0x1f   : > { %s4667_s23 = smul.u32 96, %s5213_s21  ;;  %s7588_s17 = smov 126  }
  0x20   : > { %s7612_s22 = smov 125   ;;  %s5089_s27 = smov 122  }
  0x21   : > { %v381_v0 = vld [vmem:[%s7626_s2] sm:$0xff]  ;;  %v382_v1 = vld [vmem:[%s7626_s2 + $0x8] sm:$0xff]  ;;  %v383_v5 = vld [vmem:[%s7626_s2 + $0x10] sm:$0xff]  ;;  %s377_s28 = scalar_lea.vmem %s7583_s9, %s5213_s21 }
  0x22   : > { %v4209_v2 = vld [vmem:[%s7626_s2 + $0x20] sm:$0xff]  ;;  %v4594_v3 = vpack.c.bf16 %v382_v1, %v381_v0  ;;  %v4210_v4 = vld [vmem:[%s7626_s2 + $0x28] sm:$0xff]  ;;  %v384_v6 = vld [vmem:[%s7626_s2 + $0x18] sm:$0xff]  ;;  %s5239_s26 = scalar_lea.vmem %s7627_s0, %s4667_s23  ;;  %s5318_s24 = scalar_lea.vmem %s7628_s1, %s4667_s23 }
  0x23   : > { %v4602_v7 = vpack.c.bf16 %v4210_v4, %v4209_v2  ;;  %v4598_v8 = vpack.c.bf16 %v384_v6, %v383_v5  ;;  %v4211_v9 = vld [vmem:[%s7626_s2 + $0x30] sm:$0xff]  ;;  %v4212_v10 = vld [vmem:[%s7626_s2 + $0x38] sm:$0xff]  ;;  %v4247_v11 = vld [vmem:[%s7626_s2 + $0x60] sm:$0xff]  ;;  %s5088_s23 = smov 124  }
  0x24   : > { %4595 = vmatprep.subr.bf16.mxu0 %v4594_v3  ;;  %v4606_v12 = vpack.c.bf16 %v4212_v10, %v4211_v9  ;;  %v4248_v13 = vld [vmem:[%s7626_s2 + $0x68] sm:$0xff]  ;;  %v4228_v14 = vld [vmem:[%s7626_s2 + $0x40] sm:$0xff]  ;;  %v4249_v18 = vld [vmem:[%s7626_s2 + $0x70] sm:$0xff] }
  0x25   : > { %v4229_v15 = vld [vmem:[%s7626_s2 + $0x48] sm:$0xff]  ;;  %4597 = vmatpush3.bf16.msra.mxu0 %v4594_v3  ;;  %4603 = vmatprep.subr.bf16.mxu1 %v4602_v7  ;;  %v4618_v16 = vpack.c.bf16 %v4248_v13, %v4247_v11  ;;  %v4230_v19 = vld [vmem:[%s7626_s2 + $0x50] sm:$0xff]  ;;  %v4231_v20 = vld [vmem:[%s7626_s2 + $0x58] sm:$0xff] }
  0x26   : > { %4599 = vmatprep.subr.bf16.mxu0 %v4598_v8  ;;  %4605 = vmatpush3.bf16.msra.mxu1 %v4602_v7  ;;  %v4610_v17 = vpack.c.bf16 %v4229_v15, %v4228_v14  ;;  %v379_v21 = vld [vmem:[%s5239_s26] sm:$0xff]  ;;  %v4207_v22 = vld [vmem:[%s5239_s26 + $0x10] sm:$0xff]  ;;  %v4250_v23 = vld [vmem:[%s7626_s2 + $0x78] sm:$0xff]  ;;  %v4614_v26 = vpack.c.bf16 %v4231_v20, %v4230_v19 }
  0x27   : > { %4607 = vmatprep.subr.bf16.mxu1 %v4606_v12  ;;  %4468 = vmatprep.mubr.msk.f32.mxu0 %vm393_vm0, %v379_v21  ;;  %v380_v24 = vld [vmem:[%s5239_s26 + $0x8] sm:$0xff]  ;;  %v4208_v25 = vld [vmem:[%s5239_s26 + $0x18] sm:$0xff]  ;;  %v4622_v27 = vpack.c.bf16 %v4250_v23, %v4249_v18  ;;  %v4266_v28 = vld [vmem:[%s7626_s2 + $0x80] sm:$0xff] }
  0x28   : > { %4479 = vmatprep.mubr.msk.f32.mxu1 %vm393_vm0, %v4207_v22  ;;  %v4267_v29 = vld [vmem:[%s7626_s2 + $0x88] sm:$0xff]  ;;  %v4245_v30 = vld [vmem:[%s5239_s26 + $0x30] sm:$0xff]  ;;  %v4285_v31 = vld [vmem:[%s7626_s2 + $0xa0] sm:$0xff] }
  0x29   : > { %4601 = vmatpush3.bf16.msra.mxu0 %v4598_v8  ;;  %v4286_v32 = vld [vmem:[%s7626_s2 + $0xa8] sm:$0xff]  ;;  %v4226_v33 = vld [vmem:[%s5239_s26 + $0x20] sm:$0xff]  ;;  %v4626_v34 = vpack.c.bf16 %v4267_v29, %v4266_v28  ;;  %v4268_v36 = vld [vmem:[%s7626_s2 + $0x90] sm:$0xff] }
  0x2a   : > { %4609 = vmatpush3.bf16.msra.mxu1 %v4606_v12  ;;  %4611 = vmatprep.subr.bf16.mxu0 %v4610_v17  ;;  %v4634_v35 = vpack.c.bf16 %v4286_v32, %v4285_v31  ;;  %v4269_v37 = vld [vmem:[%s7626_s2 + $0x98] sm:$0xff]  ;;  %v4287_v38 = vld [vmem:[%s7626_s2 + $0xb0] sm:$0xff]  ;;  %v4227_v40 = vld [vmem:[%s5239_s26 + $0x28] sm:$0xff] }
  0x2b   : > { %4619 = vmatprep.subr.bf16.mxu1 %v4618_v16  ;;  %v4288_v39 = vld [vmem:[%s7626_s2 + $0xb8] sm:$0xff]  ;;  %v4630_v42 = vpack.c.bf16 %v4269_v37, %v4268_v36  ;;  %v4283_v44 = vld [vmem:[%s5239_s26 + $0x50] sm:$0xff]  ;;  %v4264_v45 = vld [vmem:[%s5239_s26 + $0x40] sm:$0xff] }
  0x2c   : > { %4469 = vmatmul.mubr.msk.f32.vlgmr.msra.gmra.mrb[0].mxu0 %vm393_vm0, %v380_v24  ;;  %v4246_v41 = vld [vmem:[%s5239_s26 + $0x38] sm:$0xff]  ;;  %v4638_v43 = vpack.c.bf16 %v4288_v39, %v4287_v38  ;;  %v4302_v46 = vld [vmem:[%s7626_s2 + $0xc0] sm:$0xff]  ;;  %v4303_v47 = vld [vmem:[%s7626_s2 + $0xc8] sm:$0xff] }
  0x2d   : > { %4480 = vmatmul.mubr.msk.f32.vlgmr.msra.gmra.mrb[0].mxu1 %vm393_vm0, %v4208_v25  ;;  %4613 = vmatpush3.bf16.msra.mxu0 %v4610_v17  ;;  %v4265_v48 = vld [vmem:[%s5239_s26 + $0x48] sm:$0xff]  ;;  %v4643_v49 = vpack.c.bf16 %v4303_v47, %v4302_v46  ;;  %v4284_v50 = vld [vmem:[%s5239_s26 + $0x58] sm:$0xff]  ;;  %v4304_v52 = vld [vmem:[%s7626_s2 + $0xd0] sm:$0xff] }
  0x2e   : > { %4621 = vmatpush3.bf16.msra.mxu1 %v4618_v16  ;;  %4615 = vmatprep.subr.bf16.mxu0 %v4614_v26  ;;  %v4305_v53 = vld [vmem:[%s7626_s2 + $0xd8] sm:$0xff]  ;;  %v2331_v56 = vld [vmem:[%s5318_s24] sm:$0xff]  ;;  %v2332_v57 = vld [vmem:[%s5318_s24 + $0x8] sm:$0xff] }
  0x2f   : > { %4623 = vmatprep.subr.bf16.mxu1 %v4622_v27  ;;  %4501 = vmatprep.mubr.msk.f32.mxu1 %vm393_vm0, %v4245_v30  ;;  %v4646_v54 = vpack.c.bf16 %v4305_v53, %v4304_v52  ;;  %v2333_v58 = vld [vmem:[%s5318_s24 + $0x10] sm:$0xff]  ;;  %v4323_v59 = vld [vmem:[%s7626_s2 + $0xe0] sm:$0xff]  ;;  %v4324_v60 = vld [vmem:[%s7626_s2 + $0xe8] sm:$0xff] }
  0x30   : > { %4490 = vmatprep.mubr.msk.f32.mxu0 %vm393_vm0, %v4226_v33  ;;  %v4649_v61 = vpack.c.bf16 %v4324_v60, %v4323_v59  ;;  %v4325_v62 = vld [vmem:[%s7626_s2 + $0xf0] sm:$0xff]  ;;  %v4326_v63 = vld [vmem:[%s7626_s2 + $0xf8] sm:$0xff]  ;;  %v4321_v2 = vld [vmem:[%s5318_s24 + $0x20] sm:$0xff] }
  0x31   : > { %4617 = vmatpush3.bf16.msra.mxu0 %v4614_v26  ;;  %v4652_v0 = vpack.c.bf16 %v4326_v63, %v4325_v62  ;;  %v4320_v1 = vld [vmem:[%s5318_s24 + $0x18] sm:$0xff]  ;;  %v4322_v3 = vld [vmem:[%s5318_s24 + $0x28] sm:$0xff]  ;;  %v4347_v4 = vld [vmem:[%s7626_s2 + $0x100] sm:$0xff] }
  0x32   : > { %4625 = vmatpush3.bf16.msra.mxu1 %v4622_v27  ;;  %4627 = vmatprep.subr.bf16.mxu0 %v4626_v34  ;;  %v4348_v5 = vld [vmem:[%s7626_s2 + $0x108] sm:$0xff]  ;;  %v4349_v7 = vld [vmem:[%s7626_s2 + $0x110] sm:$0xff]  ;;  %v4350_v8 = vld [vmem:[%s7626_s2 + $0x118] sm:$0xff] }
  0x33   : > { %4635 = vmatprep.subr.bf16.mxu1 %v4634_v35  ;;  %v4655_v6 = vpack.c.bf16 %v4348_v5, %v4347_v4  ;;  %v4658_v9 = vpack.c.bf16 %v4350_v8, %v4349_v7  ;;  %v4371_v10 = vld [vmem:[%s7626_s2 + $0x120] sm:$0xff]  ;;  %v4372_v11 = vld [vmem:[%s7626_s2 + $0x128] sm:$0xff]  ;;  %v4344_v13 = vld [vmem:[%s5318_s24 + $0x30] sm:$0xff] }
  0x34   : > { %4491 = vmatmul.mubr.msk.f32.vlgmr.msra.gmra.mrb[2].mxu0 %vm393_vm0, %v4227_v40  ;;  %v4661_v12 = vpack.c.bf16 %v4372_v11, %v4371_v10  ;;  %v4373_v14 = vld [vmem:[%s7626_s2 + $0x130] sm:$0xff]  ;;  %v4374_v15 = vld [vmem:[%s7626_s2 + $0x138] sm:$0xff]  ;;  %v4368_v18 = vld [vmem:[%s5318_s24 + $0x48] sm:$0xff] }
  0x35   : > { %4502 = vmatmul.mubr.msk.f32.vlgmr.msra.gmra.mrb[2].mxu1 %vm393_vm0, %v4246_v41  ;;  %4629 = vmatpush3.bf16.msra.mxu0 %v4626_v34  ;;  %v4345_v16 = vld [vmem:[%s5318_s24 + $0x38] sm:$0xff]  ;;  %v4664_v17 = vpack.c.bf16 %v4374_v15, %v4373_v14  ;;  %v4346_v19 = vld [vmem:[%s5318_s24 + $0x40] sm:$0xff]  ;;  %v4369_v20 = vld [vmem:[%s5318_s24 + $0x50] sm:$0xff] }
  0x36   : > { %4637 = vmatpush3.bf16.msra.mxu1 %v4634_v35  ;;  %4631 = vmatprep.subr.bf16.mxu0 %v4630_v42  ;;  %v4370_v21 = vld [vmem:[%s5318_s24 + $0x58] sm:$0xff]  ;;  %v4197_v22 = vld [vmem:[%s7577_s3] ss:$0 sm:$0xff]  ;;  %v4215_v23 = vld [vmem:[%s7577_s3 + $0x1] ss:$0 sm:$0xff] }
  0x37   : > { %4639 = vmatprep.subr.bf16.mxu1 %v4638_v43  ;;  %4523 = vmatprep.mubr.msk.f32.mxu1 %vm393_vm0, %v4283_v44  ;;  %v4234_v62 = vld [vmem:[%s7577_s3 + $0x2] ss:$0 sm:$0xff] }
  0x38   : > { %4512 = vmatprep.mubr.msk.f32.mxu0 %vm393_vm0, %v4264_v45 }
  0x39   : > { %4633 = vmatpush3.bf16.msra.mxu0 %v4630_v42 }
  0x3a   : > { %4641 = vmatpush3.bf16.msra.mxu1 %v4638_v43  ;;  %4642 = vmatprep.subr.bf16.mxu0 %v5081_v51 }
  0x3b   : > { %4648 = vmatprep.subr.bf16.mxu1 %v5081_v51 }
  0x3c   : > { %4513 = vmatmul.mubr.msk.f32.vlgmr.msra.gmra.mrb[4].mxu0 %vm393_vm0, %v4265_v48 }
  0x3d   : > { %4524 = vmatmul.mubr.msk.f32.vlgmr.msra.gmra.mrb[4].mxu1 %vm393_vm0, %v4284_v50  ;;  %4644 = vmatpush3.bf16.msra.mxu0 %v4643_v49 }
  0x3e   : > { %4645 = vmatprep.subr.bf16.mxu0 %v5081_v51  ;;  %4534 = vmatprep.mubr.msk.f32.mxu0 %vm5082_vm1, %v5083_v55 }
  0x3f   : > { %4551 = vmatprep.mubr.msk.f32.mxu1 %vm5082_vm1, %v5083_v55  ;;  %4650 = vmatpush3.bf16.msra.mxu1 %v4649_v61 }
  0x40   : > { %4651 = vmatprep.subr.bf16.mxu1 %v5081_v51 }
  0x41   : > { %4647 = vmatpush3.bf16.msra.mxu0 %v4646_v54  ;;  %v4253_v54 = vld [vmem:[%s7577_s3 + $0x3] ss:$0 sm:$0xff] }
  0x42   : > { %4654 = vmatprep.subr.bf16.mxu0 %v5081_v51 }
  0x43   : > { %4653 = vmatpush3.bf16.msra.mxu1 %v4652_v0 }
  0x44   : > { %4535 = vmatmul.mubr.msk.f32.vlgmr.msra.gmra.mrb[6].mxu0 %vm393_vm0, %v2331_v56  ;;  %4660 = vmatprep.subr.bf16.mxu1 %v5081_v51 }
  0x45   : > { %4537 = vmatprep.mubr.msk.f32.mxu0 %vm5082_vm1, %v5083_v55  ;;  %4656 = vmatpush3.bf16.msra.mxu0 %v4655_v6 }
  0x46   : > { %4552 = vmatmul.mubr.msk.f32.vlgmr.msra.gmra.mrb[6].mxu1 %vm393_vm0, %v4320_v1  ;;  %4657 = vmatprep.subr.bf16.mxu0 %v5081_v51  ;;  %v5502_v1 = vrot.slane %v5083_v55, 3 }
  0x47   : > { %4554 = vmatprep.mubr.msk.f32.mxu1 %vm5082_vm1, %v5083_v55  ;;  %4662 = vmatpush3.bf16.msra.mxu1 %v4661_v12 }
  0x48   : > { %4538 = vmatmul.mubr.msk.f32.gmra.mrb[8].mxu0 %vm393_vm0, %v2332_v57  ;;  %4663 = vmatprep.subr.bf16.mxu1 %v5081_v51  ;;  %7630 = vst [vmem:[#allocation9_spill] sm:$0xff] %v5502_v1 }
  0x49   : > { %4540 = vmatprep.mubr.msk.f32.mxu0 %vm5082_vm1, %v5083_v55  ;;  %4659 = vmatpush3.bf16.msra.mxu0 %v4658_v9 }
  0x4a   : > { %4555 = vmatmul.mubr.msk.f32.gmra.mrb[8].mxu1 %vm393_vm0, %v4321_v2 }
  0x4b   : > { %4557 = vmatprep.mubr.msk.f32.mxu1 %vm5082_vm1, %v5083_v55  ;;  %4665 = vmatpush3.bf16.msra.mxu1 %v4664_v17 }
  0x4c   : > { %4541 = vmatmul.mubr.msk.f32.gmra.mrb[10].mxu0 %vm393_vm0, %v2333_v58 }
  0x4d   : > { %4568 = vmatprep.mubr.msk.f32.mxu0 %vm5082_vm1, %v5083_v55 }
  0x4e   : > { %4558 = vmatmul.mubr.msk.f32.gmra.mrb[10].mxu1 %vm393_vm0, %v4322_v3 }
  0x4f   : > { %4585 = vmatprep.mubr.msk.f32.mxu1 %vm5082_vm1, %v5083_v55 }
  0x50   : > { %4569 = vmatmul.mubr.msk.f32.vlgmr.msra.gmra.mrb[12].mxu0 %vm393_vm0, %v4344_v13 }
  0x51   : > { %4571 = vmatprep.mubr.msk.f32.mxu0 %vm5082_vm1, %v5083_v55 }
  0x52   : > { %4586 = vmatmul.mubr.msk.f32.vlgmr.msra.gmra.mrb[12].mxu1 %vm393_vm0, %v4368_v18 }
  0x53   : > { %4588 = vmatprep.mubr.msk.f32.mxu1 %vm5082_vm1, %v5083_v55 }
  0x54   : > { %4572 = vmatmul.mubr.msk.f32.gmra.mrb[14].mxu0 %vm393_vm0, %v4345_v16 }
  0x55   : > { %4574 = vmatprep.mubr.msk.f32.mxu0 %vm5082_vm1, %v5083_v55 }
  0x56   : > { %4589 = vmatmul.mubr.msk.f32.gmra.mrb[14].mxu1 %vm393_vm0, %v4369_v20 }
  0x57   : > { %4591 = vmatprep.mubr.msk.f32.mxu1 %vm5082_vm1, %v5083_v55 }
  0x58   : > { %4575 = vmatmul.mubr.msk.f32.gmra.mrb[16].mxu0 %vm393_vm0, %v4346_v19 }
  0x5a   : > { %4592 = vmatmul.mubr.msk.f32.gmra.mrb[16].mxu1 %vm393_vm0, %v4370_v21 }
  0xff   : > { %v4470_v24 = vpop.f32.mrb[0].mxu0 }
 0x100   : > { %v5410_v25 = vadd.f32 %v4470_v24, %v4197_v22  ;;  %v466_v26 = vpop.f32.mrb[1].mxu0  ;;  %v4481_v27 = vpop.f32.mrb[0].mxu1 }
 0x101   : > { %v5412_v28 = vadd.f32 %v4197_v22, %v466_v26  ;;  %v5414_v29 = vadd.f32 %v4481_v27, %v4215_v23  ;;  %v806_v30 = vpop.f32.mrb[1].mxu1 }
 0x102   : > { %573 = vrot.lane.b32.xlu1 %v5410_v25, %s5084_s25  ;;  %v5418_v31 = vadd.f32 %v4215_v23, %v806_v30  ;;  %v507_v32 = vrot.slane %v5410_v25, 2  ;;  %v5424_v33 = vrot.slane %v5410_v25, 1  ;;  %v523_v37 = vrot.slane %v5410_v25, 3 }
 0x103   : > { %571 = vrot.lane.b32.xlu0 %v5412_v28, %s5084_s25  ;;  %v506_v34 = vrot.slane %v5412_v28, 2  ;;  %v522_v35 = vrot.slane %v5412_v28, 3  ;;  %v843_v36 = vrot.slane %v5414_v29, 2  ;;  %v540_v38 = vrot.slane %v5412_v28, 4 }
 0x104   : > { %7629 = vst [vmem:[#allocation8_spill] sm:$0xff] %v5418_v31  ;;  %v857_v39 = vrot.slane %v5418_v31, 3  ;;  %v541_v40 = vrot.slane %v5410_v25, 4  ;;  %v489_v41 = vrot.slane %v5412_v28, 1  ;;  %v842_v42 = vrot.slane %v5418_v31, 2 }
 0x105   : > { %v858_v43 = vrot.slane %v5414_v29, 3  ;;  %v5441_v44 = vsel %vm505_vm5, %v506_v34, %v507_v32  ;;  %v873_v45 = vrot.slane %v5418_v31, 4  ;;  %v874_v46 = vrot.slane %v5414_v29, 4 }
 0x106   : > { %903 = vrot.lane.b32.xlu1 %v5414_v29, %s5084_s25  ;;  %v5448_v47 = vrot.slane %v5414_v29, 1  ;;  %v5454_v48 = vsel %vm487_vm4, %v489_v41, %v5424_v33  ;;  %v5461_v49 = vsel %vm539_vm3, %v540_v38, %v541_v40  ;;  %v559_v51 = vrot.slane %v5412_v28, 7 }
 0x107   : > { %901 = vrot.lane.b32.xlu0 %v5418_v31, %s5084_s25  ;;  %v4492_v50 = vpop.f32.mrb[2].mxu0  ;;  %v5465_v52 = vsel %vm521_vm2, %v522_v35, %v523_v37  ;;  %v826_v57 = vrot.slane %v5418_v31, 1  ;;  %v561_v58 = vrot.slane %v5410_v25, 7  ;;  %v5477_v59 = vsel %vm505_vm5, %v842_v42, %v843_v36 }
 0x108   : > { %v4503_v53 = vpop.f32.mrb[2].mxu1  ;;  %v1129_v56 = vpop.f32.mrb[3].mxu0  ;;  %v5484_v60 = vsel %vm539_vm3, %v873_v45, %v874_v46  ;;  %v5496_v63 = vsel %vm521_vm2, %v857_v39, %v858_v43  ;;  %v889_v0 = vrot.slane %v5418_v31, 7  ;;  %v891_v4 = vrot.slane %v5414_v29, 7 }
 0x109   : > { %v1452_v61 = vpop.f32.mrb[3].mxu1  ;;  %v5507_v2 = vsel %vm557_vm6, %v559_v51, %v561_v58  ;;  %v5513_v3 = vsel %vm487_vm4, %v826_v57, %v5448_v47  ;;  %v5516_v5 = vadd.f32 %v4503_v53, %v4253_v54  ;;  %v5518_v6 = vadd.f32 %v4492_v50, %v4234_v62 }
 0x10a   : > { %497 = vrot.lane.b32.xlu1 %v5424_v33, %s5085_s16  ;;  %v5520_v7 = vadd.f32 %v4234_v62, %v1129_v56  ;;  %v5525_v8 = vsel %vm557_vm6, %v889_v0, %v891_v4  ;;  %v5527_v9 = vadd.f32 %v4253_v54, %v1452_v61  ;;  %v526_v13 = vsel %vm521_vm2, %v523_v37, %v5502_v1 }
 0x10b   : > { %834 = vrot.lane.b32.xlu0 %v5448_v47, %s5085_s16  ;;  %7631 = vst [vmem:[#allocation10_spill] sm:$0xff] %v5516_v5  ;;  %7632 = vst [vmem:[#allocation11_spill] sm:$0xff] %v5518_v6  ;;  %v1166_v10 = vrot.slane %v5518_v6, 2  ;;  %v1181_v14 = vrot.slane %v5518_v6, 3  ;;  %v1197_v16 = vrot.slane %v5518_v6, 4  ;;  %v5542_v18 = vrot.slane %v5518_v6, 1 }
 0x10c   : > { %7633 = vst [vmem:[#allocation12_spill] sm:$0xff] %v5520_v7  ;;  %7634 = vst [vmem:[#allocation13_spill] sm:$0xff] %v5527_v9  ;;  %v1180_v11 = vrot.slane %v5520_v7, 3  ;;  %v1165_v12 = vrot.slane %v5520_v7, 2  ;;  %v1196_v15 = vrot.slane %v5520_v7, 4  ;;  %v1489_v19 = vrot.slane %v5516_v5, 2 }
 0x10d   : > { %v5546_v20 = vrot.slane %v5516_v5, 1  ;;  %v1520_v21 = vrot.slane %v5516_v5, 4  ;;  %v1488_v23 = vrot.slane %v5527_v9, 2  ;;  %v1519_v24 = vrot.slane %v5527_v9, 4 }
 0x10e   : > { %513 = vrot.lane.b32.xlu1 %v507_v32, %s7588_s17  ;;  %v1503_v26 = vrot.slane %v5527_v9, 3  ;;  %v1504_v27 = vrot.slane %v5516_v5, 3  ;;  %v7586_v32 = vrot.slane %v5520_v7, 1  ;;  %v5573_v37 = vsel %vm521_vm2, %v1180_v11, %v1181_v14 }
 0x10f   : > { %527 = vrot.lane.b32.xlu0 %v522_v35, %s7612_s22  ;;  %v5539_v17 = vpop.f32.mrb[4].mxu0  ;;  %v5566_v35 = vsel %vm505_vm5, %v1165_v12, %v1166_v10  ;;  %v7584_v50 = vrot.slane %v5520_v7, 7  ;;  %v1214_v53 = vrot.slane %v5518_v6, 7  ;;  %v7585_v56 = vrot.slane %v5527_v9, 1 }
 0x110   : > { %v5549_v22 = vpop.f32.mrb[4].mxu1  ;;  %v5589_v54 = vsel %vm487_vm4, %v7586_v32, %v5542_v18  ;;  %v5602_v61 = vsel %vm505_vm5, %v1488_v23, %v1489_v19  ;;  %v5609_v62 = vsel %vm539_vm3, %v1519_v24, %v1520_v21  ;;  %v5641_v32 = vrot.slane %v5083_v55, 1 }
 0x111   : > { %v5555_v30 = vpop.f32.mrb[5].mxu1  ;;  %v5595_v58 = vsel %vm557_vm6, %v7584_v50, %v1214_v53  ;;  %v5618_v4 = vsel %vm487_vm4, %v7585_v56, %v5546_v20  ;;  %v7587_v53 = vrot.slane %v5527_v9, 7  ;;  %v5633_v50 = vrot.slane %v5083_v55, 4 }
 0x112   : > { %849 = vrot.lane.b32.xlu1 %v843_v36, %s7588_s17  ;;  %v5580_v36 = vsel %vm539_vm3, %v1196_v15, %v1197_v16 }
 0x113   : > { %531 = vrot.lane.b32.xlu0 %v526_v13, %s7612_s22  ;;  %v5625_v13 = vsel %vm521_vm2, %v1503_v26, %v1504_v27  ;;  %7635 = vst [vmem:[#allocation14_spill] sm:$0xff] %v5633_v50 }
 0x116   : > { %509 = vrot.lane.b32.xlu1 %v506_v34, %s7588_s17  ;;  %v1537_v34 = vrot.slane %v5516_v5, 7 }
 0x117   : > { %861 = vrot.lane.b32.xlu0 %v857_v39, %s7612_s22  ;;  %v860_v39 = vsel %vm521_vm2, %v858_v43, %v5502_v1  ;;  %v5665_v43 = vpop.f32.mrb[5].mxu0 }
 0x118   : > { %v5638_v56 = vsel %vm557_vm6, %v7587_v53, %v1537_v34  ;;  %v544_v34 = vsel %vm539_vm3, %v541_v40, %v5633_v50  ;;  %v490_v53 = vsel %vm487_vm4, %v5641_v32, %v489_v41  ;;  %v876_v40 = vsel %vm539_vm3, %v874_v46, %v5633_v50 }
 0x11a   : > { %545 = vrot.lane.b32.xlu1 %v540_v38, %s5088_s23  ;;  %v579_v38 = vsel %vm487_vm4, %v5424_v33, %v5641_v32  ;;  %v5678_v33 = vrot.slane %v5083_v55, 7  ;;  %v909_v55 = vsel %vm487_vm4, %v5448_v47, %v5641_v32 }
 0x11b   : > { %865 = vrot.lane.b32.xlu0 %v860_v39, %s7612_s22 }
 0x11c   : > { %v560_v41 = vsel %vm557_vm6, %v5678_v33, %v559_v51  ;;  %v1199_v51 = vsel %vm539_vm3, %v1197_v16, %v5633_v50  ;;  %v7638_v16 = vrot.slane %v5520_v7, 7 }
 0x11e   : > { %549 = vrot.lane.b32.xlu1 %v544_v34, %s5088_s23 }
 0x11f   : > { %493 = vrot.lane.b32.xlu0 %v490_v53, %s5085_s16 }
 0x122   : > { %582 = vrot.lane.b32.xlu1 %v579_v38, %s5089_s27  ;;  %v5882_v38 = vpop.f32.mrb[6].mxu1 }
 0x123   : > { %495 = vrot.lane.b32.xlu0 %v5454_v48, %s5085_s16 }
 0x126   : > { %845 = vrot.lane.b32.xlu1 %v842_v42, %s7588_s17  ;;  %v827_v42 = vsel %vm487_vm4, %v5641_v32, %v826_v57 }
 0x127   : > { %511 = vrot.lane.b32.xlu0 %v5441_v44, %s7588_s17  ;;  %v890_v44 = vsel %vm557_vm6, %v5678_v33, %v889_v0  ;;  %v1506_v0 = vsel %vm521_vm2, %v1504_v27, %v5502_v1 }
 0x12a   : > { %877 = vrot.lane.b32.xlu1 %v873_v45, %s5088_s23  ;;  %v5734_v45 = vpop.f32.mrb[6].mxu0 }
 0x12b   : > { %547 = vrot.lane.b32.xlu0 %v5461_v49, %s5088_s23  ;;  %v4536_v46 = vpop.f32.mrb[7].mxu0  ;;  %v1183_v49 = vsel %vm521_vm2, %v1181_v14, %v5502_v1 }
 0x12c   : > { %v5739_v47 = vpop.f32.mrb[8].mxu0 }
 0x12e   : > { %881 = vrot.lane.b32.xlu1 %v876_v40, %s5088_s23 }
 0x12f   : > { %563 = vrot.lane.b32.xlu0 %v560_v41, %s5088_s23 }
 0x132   : > { %912 = vrot.lane.b32.xlu1 %v909_v55, %s5089_s27 }
 0x133   : > { %580 = vrot.lane.b32.xlu0 %v5454_v48, %s5089_s27  ;;  %v4539_v48 = vpop.f32.mrb[9].mxu0 }
 0x134   : > { %v5775_v57 = vpop.f32.mrb[10].mxu0 }
 0x136   : > { %529 = vrot.lane.b32.xlu1 %v5465_v52, %s7612_s22  ;;  %v1232_v52 = vsel %vm487_vm4, %v5542_v18, %v5641_v32 }
 0x137   : > { %830 = vrot.lane.b32.xlu0 %v827_v42, %s5085_s16 }
 0x13a   : > { %565 = vrot.lane.b32.xlu1 %v5507_v2, %s5088_s23  ;;  %v7636_v2 = vrot.slane %v5520_v7, 1 }
 0x13b   : > { %847 = vrot.lane.b32.xlu0 %v5477_v59, %s7588_s17  ;;  %v4542_v59 = vpop.f32.mrb[11].mxu0 }
 0x13e   : > { %832 = vrot.lane.b32.xlu1 %v5513_v3, %s5085_s16 }
 0x13f   : > { %879 = vrot.lane.b32.xlu0 %v5484_v60, %s5088_s23  ;;  %v1522_v60 = vsel %vm539_vm3, %v1520_v21, %v5633_v50 }
 0x142   : > { %863 = vrot.lane.b32.xlu1 %v5496_v63, %s7612_s22  ;;  %v1555_v63 = vsel %vm487_vm4, %v5546_v20, %v5641_v32 }
 0x143   : > { %893 = vrot.lane.b32.xlu0 %v890_v44, %s5088_s23 }
 0x146   : > { %895 = vrot.lane.b32.xlu1 %v5525_v8, %s5088_s23 }
 0x147   : > { %910 = vrot.lane.b32.xlu0 %v5513_v3, %s5089_s27  ;;  %v1150_v3 = vsel %vm487_vm4, %v5641_v32, %v7636_v2 }
 0x14a   : > { %1549 = vrot.lane.b32.xlu1 %v5516_v5, %s5084_s25 }
 0x14b   : > { %1226 = vrot.lane.b32.xlu0 %v5518_v6, %s5084_s25 }
 0x14e   : > { %1224 = vrot.lane.b32.xlu1 %v5520_v7, %s5084_s25 }
 0x14f   : > { %1547 = vrot.lane.b32.xlu0 %v5527_v9, %s5084_s25 }
 0x152   : > { %1157 = vrot.lane.b32.xlu1 %v5542_v18, %s5085_s16  ;;  %v1213_v18 = vsel %vm557_vm6, %v5678_v33, %v7638_v16 }
 0x153   : > { %1172 = vrot.lane.b32.xlu0 %v1166_v10, %s7588_s17 }
 0x156   : > { %1495 = vrot.lane.b32.xlu1 %v1489_v19, %s7588_s17  ;;  %v7639_v19 = vrot.slane %v5527_v9, 1 }
 0x157   : > { %1480 = vrot.lane.b32.xlu0 %v5546_v20, %s5085_s16 }
 0x158   : > { %v1473_v20 = vsel %vm487_vm4, %v5641_v32, %v7639_v19 }
 0x15a   : > { %1184 = vrot.lane.b32.xlu1 %v1180_v11, %s7612_s22 }
 0x15b   : > { %1168 = vrot.lane.b32.xlu0 %v1165_v12, %s7588_s17 }
 0x15e   : > { %1188 = vrot.lane.b32.xlu1 %v1183_v49, %s7612_s22 }
 0x15f   : > { %1200 = vrot.lane.b32.xlu0 %v1196_v15, %s5088_s23 }
 0x162   : > { %1491 = vrot.lane.b32.xlu1 %v1488_v23, %s7588_s17 }
 0x163   : > { %1204 = vrot.lane.b32.xlu0 %v1199_v51, %s5088_s23 }
 0x166   : > { %1523 = vrot.lane.b32.xlu1 %v1519_v24, %s5088_s23 }
 0x167   : > { %1235 = vrot.lane.b32.xlu0 %v1232_v52, %s5089_s27 }
 0x16a   : > { %1527 = vrot.lane.b32.xlu1 %v1522_v60, %s5088_s23 }
 0x16b   : > { %1507 = vrot.lane.b32.xlu0 %v1503_v26, %s7612_s22 }
 0x16e   : > { %1558 = vrot.lane.b32.xlu1 %v1555_v63, %s5089_s27 }
 0x16f   : > { %1511 = vrot.lane.b32.xlu0 %v1506_v0, %s7612_s22 }
 0x172   : > { %1153 = vrot.lane.b32.xlu1 %v1150_v3, %s5085_s16 }
 0x173   : > { %1155 = vrot.lane.b32.xlu0 %v5589_v54, %s5085_s16 }
 0x174   : > { %v5801_v8 = vpop.permute.xlu1 %573 }
 0x175   : > { %v5803_v10 = vpop.permute.xlu0 %571 }
 0x176   : > { %1170 = vrot.lane.b32.xlu1 %v5566_v35, %s7588_s17 }
 0x177   : > { %1186 = vrot.lane.b32.xlu0 %v5573_v37, %s7612_s22  ;;  %v7645_v37 = vrot.slane %v5527_v9, 7 }
 0x178   : > { %v5809_v11 = vpop.permute.xlu1 %903 }
 0x179   : > { %v5811_v12 = vpop.permute.xlu0 %901 }
 0x17a   : > { %1202 = vrot.lane.b32.xlu1 %v5580_v36, %s5088_s23  ;;  %v1536_v36 = vsel %vm557_vm6, %v5678_v33, %v7645_v37 }
 0x17b   : > { %1218 = vrot.lane.b32.xlu0 %v5595_v58, %s5088_s23 }
 0x17c   : > { %v5817_v14 = vpop.permute.xlu1 %497 }
 0x17d   : > { %v5819_v15 = vpop.permute.xlu0 %834 }
 0x17e   : > { %7637 = vst [vmem:[#allocation15_spill] sm:$0xff] %v5819_v15  ;;  %1216 = vrot.lane.b32.xlu1 %v1213_v18, %s5088_s23 }
 0x17f   : > { %1476 = vrot.lane.b32.xlu0 %v1473_v20, %s5085_s16 }
 0x180   : > { %v5831_v21 = vpop.permute.xlu1 %513 }
 0x181   : > { %7640 = vst [vmem:[#allocation16_spill] sm:$0xff] %v5831_v21  ;;  %v5833_v23 = vpop.permute.xlu0 %527 }
 0x182   : > { %7641 = vst [vmem:[#allocation17_spill] sm:$0xff] %v5833_v23  ;;  %1233 = vrot.lane.b32.xlu1 %v5589_v54, %s5089_s27  ;;  %v4291_v54 = vld [vmem:[%s7577_s3 + $0x5] ss:$0 sm:$0xff] }
 0x183   : > { %1493 = vrot.lane.b32.xlu0 %v5602_v61, %s7588_s17  ;;  %v4272_v61 = vld [vmem:[%s7577_s3 + $0x4] ss:$0 sm:$0xff]  ;;  %s7656_s17 = smov 126  }
 0x184   : > { %v5839_v24 = vpop.permute.xlu1 %849  ;;  %v5876_v53 = vadd.f32 %v5539_v17, %v4272_v61  ;;  %v5894_v17 = vadd.f32 %v4291_v54, %v5555_v30 }
 0x185   : > { %7642 = vst [vmem:[#allocation18_spill] sm:$0xff] %v5839_v24  ;;  %v5841_v26 = vpop.permute.xlu0 %531 }
 0x186   : > { %7643 = vst [vmem:[#allocation19_spill] sm:$0xff] %v5841_v26  ;;  %1478 = vrot.lane.b32.xlu1 %v5618_v4, %s5085_s16  ;;  %7649 = vst [vmem:[#allocation24_spill] sm:$0xff] %v5876_v53  ;;  %v1812_v30 = vrot.slane %v5876_v53, 2  ;;  %v1827_v3 = vrot.slane %v5876_v53, 3  ;;  %v1843_v37 = vrot.slane %v5876_v53, 4  ;;  %v7598_v5 = vrot.slane %v5894_v17, 3 }
 0x187   : > { %1525 = vrot.lane.b32.xlu0 %v5609_v62, %s5088_s23  ;;  %7652 = vst [vmem:[#allocation27_spill] sm:$0xff] %v5894_v17 }
 0x188   : > { %v5847_v27 = vpop.permute.xlu1 %509  ;;  %v1829_v19 = vsel %vm521_vm2, %v1827_v3, %v5502_v1 }
 0x189   : > { %v5849_v35 = vpop.permute.xlu0 %861 }
 0x18a   : > { %7644 = vst [vmem:[#allocation20_spill] sm:$0xff] %v5849_v35  ;;  %1509 = vrot.lane.b32.xlu1 %v5625_v13, %s7612_s22  ;;  %v5869_v13 = vadd.f32 %v5549_v22, %v4291_v54  ;;  %v4553_v22 = vpop.f32.mrb[7].mxu1  ;;  %v7591_v54 = vrot.slane %v5894_v17, 2 }
 0x18b   : > { %1539 = vrot.lane.b32.xlu0 %v1536_v36, %s5088_s23  ;;  %v5900_v41 = vpop.f32.mrb[8].mxu1  ;;  %v1845_v22 = vsel %vm539_vm3, %v1843_v37, %v5633_v50 }
 0x18c   : > { %v5861_v58 = vpop.permute.xlu1 %545  ;;  %7648 = vst [vmem:[#allocation23_spill] sm:$0xff] %v5869_v13  ;;  %v4556_v55 = vpop.f32.mrb[9].mxu1  ;;  %v7590_v51 = vrot.slane %v5869_v13, 2  ;;  %v5920_v59 = vrot.slane %v5869_v13, 1 }
 0x18d   : > { %7646 = vst [vmem:[#allocation21_spill] sm:$0xff] %v5861_v58  ;;  %v5866_v62 = vpop.permute.xlu0 %865  ;;  %v5907_v44 = vpop.f32.mrb[10].mxu1 }
 0x18e   : > { %7647 = vst [vmem:[#allocation22_spill] sm:$0xff] %v5866_v62  ;;  %1541 = vrot.lane.b32.xlu1 %v5638_v56, %s5088_s23  ;;  %v5889_v56 = vadd.f32 %v4272_v61, %v5665_v43  ;;  %v1797_v43 = vrot.slane %v5876_v53, 1  ;;  %v4559_v48 = vpop.f32.mrb[11].mxu1 }
 0x18f   : > { %1556 = vrot.lane.b32.xlu0 %v5618_v4, %s5089_s27  ;;  %v7595_v48 = vrot.slane %v5894_v17, 4 }
 0x190   : > { %v5878_v39 = vpop.permute.xlu1 %549  ;;  %7651 = vst [vmem:[#allocation26_spill] sm:$0xff] %v5889_v56  ;;  %v1826_v63 = vrot.slane %v5889_v56, 3  ;;  %v1811_v2 = vrot.slane %v5889_v56, 2  ;;  %v1842_v20 = vrot.slane %v5889_v56, 4 }
 0x191   : > { %7650 = vst [vmem:[#allocation25_spill] sm:$0xff] %v5878_v39  ;;  %v5880_v34 = vpop.permute.xlu0 %493 }
 0x192   : > { %2195 = vrot.lane.b32.xlu1 %v5869_v13, %s5084_s25  ;;  %v1828_v35 = vsel %vm521_vm2, %v1826_v63, %v1827_v3 }
 0x193   : > { %1872 = vrot.lane.b32.xlu0 %v5876_v53, %s5084_s25 }
 0x194   : > { %v5891_v4 = vpop.permute.xlu1 %582 }
 0x195   : > { %v5896_v40 = vpop.permute.xlu0 %495 }
 0x196   : > { %7653 = vst [vmem:[#allocation28_spill] sm:$0xff] %v5896_v40  ;;  %1870 = vrot.lane.b32.xlu1 %v5889_v56, %s5084_s25 }
 0x197   : > { %2193 = vrot.lane.b32.xlu0 %v5894_v17, %s5084_s25 }
 0x198   : > { %v5904_v42 = vpop.permute.xlu1 %845 }
 0x199   : > { %7654 = vst [vmem:[#allocation29_spill] sm:$0xff] %v5904_v42  ;;  %v5909_v46 = vpop.permute.xlu0 %511 }
 0x19a   : > { %7655 = vst [vmem:[#allocation30_spill] sm:$0xff] %v5909_v46  ;;  %1803 = vrot.lane.b32.xlu1 %v1797_v43, %s5085_s16 }
 0x19b   : > { %1818 = vrot.lane.b32.xlu0 %v1812_v30, %s7656_s17 }
 0x19c   : > { %v5914_v49 = vpop.permute.xlu1 %877 }
 0x19d   : > { %7657 = vst [vmem:[#allocation31_spill] sm:$0xff] %v5914_v49  ;;  %v5917_v52 = vpop.permute.xlu0 %547 }
 0x19e   : > { %7658 = vst [vmem:[#allocation32_spill] sm:$0xff] %v5917_v52  ;;  %2141 = vrot.lane.b32.xlu1 %v7590_v51, %s7656_s17  ;;  %v7597_v51 = vrot.slane %v5869_v13, 4 }
 0x19f   : > { %2126 = vrot.lane.b32.xlu0 %v5920_v59, %s5085_s16 }
 0x1a0   : > { %v5927_v60 = vpop.permute.xlu1 %881  ;;  %v2168_v6 = vsel %vm539_vm3, %v7597_v51, %v5633_v50  ;;  %v1795_v51 = vrot.slane %v5889_v56, 1 }
 0x1a1   : > { %7659 = vst [vmem:[#allocation33_spill] sm:$0xff] %v5927_v60  ;;  %v5930_v0 = vpop.permute.xlu0 %563  ;;  %v1858_v60 = vrot.slane %v5889_v56, 7 }
 0x1a2   : > { %1830 = vrot.lane.b32.xlu1 %v1826_v63, %s7612_s22  ;;  %v1796_v49 = vsel %vm487_vm4, %v5641_v32, %v1795_v51 }
 0x1a3   : > { %1814 = vrot.lane.b32.xlu0 %v1811_v2, %s7656_s17 }
 0x1a4   : > { %v5936_v16 = vpop.permute.xlu1 %912 }
 0x1a5   : > { %v5938_v18 = vpop.permute.xlu0 %580 }
 0x1a6   : > { %1834 = vrot.lane.b32.xlu1 %v1829_v19, %s7612_s22 }
 0x1a7   : > { %1846 = vrot.lane.b32.xlu0 %v1842_v20, %s5088_s23 }
 0x1a8   : > { %v5946_v36 = vpop.permute.xlu1 %529 }
 0x1a9   : > { %7660 = vst [vmem:[#allocation34_spill] sm:$0xff] %v5946_v36  ;;  %v5949_v61 = vpop.permute.xlu0 %830 }
 0x1aa   : > { %2137 = vrot.lane.b32.xlu1 %v7591_v54, %s7656_s17  ;;  %v1878_v54 = vsel %vm487_vm4, %v1797_v43, %v5641_v32 }
 0x1ab   : > { %1850 = vrot.lane.b32.xlu0 %v1845_v22, %s5088_s23 }
 0x1ac   : > { %v5957_v55 = vpop.permute.xlu1 %565 }
 0x1ad   : > { %v5960_v19 = vpop.permute.xlu0 %847 }
 0x1ae   : > { %7661 = vst [vmem:[#allocation35_spill] sm:$0xff] %v5960_v19  ;;  %2169 = vrot.lane.b32.xlu1 %v7595_v48, %s5088_s23  ;;  %v7599_v48 = vrot.slane %v5869_v13, 3  ;;  %v1798_v19 = vsel %vm487_vm4, %v1795_v51, %v1797_v43 }
 0x1af   : > { %1881 = vrot.lane.b32.xlu0 %v1878_v54, %s5089_s27 }
 0x1b0   : > { %v5969_v7 = vpop.permute.xlu1 %832 }
 0x1b1   : > { %7662 = vst [vmem:[#allocation36_spill] sm:$0xff] %v5969_v7  ;;  %v5971_v22 = vpop.permute.xlu0 %879 }
 0x1b2   : > { %7663 = vst [vmem:[#allocation37_spill] sm:$0xff] %v5971_v22  ;;  %2173 = vrot.lane.b32.xlu1 %v2168_v6, %s5088_s23  ;;  %v2201_v22 = vsel %vm487_vm4, %v5920_v59, %v5641_v32  ;;  %v2152_v6 = vsel %vm521_vm2, %v7599_v48, %v5502_v1  ;;  %v1813_v48 = vsel %vm505_vm5, %v1811_v2, %v1812_v30  ;;  %v2118_v2 = vrot.slane %v5894_v17, 1 }
 0x1b3   : > { %2153 = vrot.lane.b32.xlu0 %v7598_v5, %s7612_s22  ;;  %v1844_v30 = vsel %vm539_vm3, %v1842_v20, %v1843_v37 }
 0x1b4   : > { %v5983_v54 = vpop.permute.xlu1 %863  ;;  %v2119_v20 = vsel %vm487_vm4, %v5641_v32, %v2118_v2 }
 0x1b5   : > { %7664 = vst [vmem:[#allocation38_spill] sm:$0xff] %v5983_v54  ;;  %v5985_v9 = vpop.permute.xlu0 %893 }
 0x1b6   : > { %2204 = vrot.lane.b32.xlu1 %v2201_v22, %s5089_s27 }
 0x1b7   : > { %2157 = vrot.lane.b32.xlu0 %v2152_v6, %s7612_s22  ;;  %v6011_v6 = vpop.f32.mrb[12].mxu0 }
 0x1b8   : > { %v5997_v5 = vpop.permute.xlu1 %895  ;;  %v4570_v7 = vpop.f32.mrb[13].mxu0 }
 0x1b9   : > { %v5999_v54 = vpop.permute.xlu0 %910  ;;  %v6018_v43 = vpop.f32.mrb[14].mxu0 }
 0x1ba   : > { %1799 = vrot.lane.b32.xlu1 %v1796_v49, %s5085_s16  ;;  %v1860_v49 = vrot.slane %v5876_v53, 7  ;;  %v4573_v36 = vpop.f32.mrb[15].mxu0 }
 0x1bb   : > { %1801 = vrot.lane.b32.xlu0 %v1798_v19, %s5085_s16  ;;  %v1859_v36 = vsel %vm557_vm6, %v5678_v33, %v1858_v60 }
 0x1bc   : > { %v6006_v22 = vpop.permute.xlu1 %1549  ;;  %v1861_v63 = vsel %vm557_vm6, %v1858_v60, %v1860_v49  ;;  %v7669_v60 = vrot.slane %v5869_v13, 2 }
 0x1bd   : > { %v6008_v52 = vpop.permute.xlu0 %1226 }
 0x1be   : > { %1816 = vrot.lane.b32.xlu1 %v1813_v48, %s7656_s17  ;;  %v6037_v48 = vpop.f32.mrb[12].mxu1 }
 0x1bf   : > { %1832 = vrot.lane.b32.xlu0 %v1828_v35, %s7612_s22  ;;  %v6031_v35 = vpop.f32.mrb[16].mxu0  ;;  %v4587_v37 = vpop.f32.mrb[13].mxu1 }
 0x1c0   : > { %v6020_v51 = vpop.permute.xlu1 %1224  ;;  %v4576_v49 = vpop.f32.mrb[17].mxu0 }
 0x1c1   : > { %v6022_v58 = vpop.permute.xlu0 %1547 }
 0x1c2   : > { %1848 = vrot.lane.b32.xlu1 %v1844_v30, %s5088_s23  ;;  %v6043_v30 = vpop.f32.mrb[14].mxu1 }
 0x1c3   : > { %1864 = vrot.lane.b32.xlu0 %v1861_v63, %s5088_s23  ;;  %v4590_v56 = vpop.f32.mrb[15].mxu1 }
 0x1c4   : > { %v6029_v7 = vpop.permute.xlu1 %1157  ;;  %v6056_v37 = vpop.f32.mrb[16].mxu1  ;;  %v2121_v56 = vsel %vm487_vm4, %v2118_v2, %v5920_v59  ;;  %v7677_v59 = vrot.slane %v5869_v13, 3  ;;  %v7678_v2 = vrot.slane %v5894_v17, 3 }
 0x1c5   : > { %7665 = vst [vmem:[#allocation39_spill] sm:$0xff] %v6029_v7  ;;  %v6033_v3 = vpop.permute.xlu0 %1172  ;;  %v4593_v49 = vpop.f32.mrb[17].mxu1 }
 0x1c6   : > { %7666 = vst [vmem:[#allocation40_spill] sm:$0xff] %v6033_v3  ;;  %1862 = vrot.lane.b32.xlu1 %v1859_v36, %s5088_s23  ;;  %v7670_v36 = vrot.slane %v5894_v17, 2 }
 0x1c7   : > { %2122 = vrot.lane.b32.xlu0 %v2119_v20, %s5085_s16 }
 0x1c8   : > { %v6045_v63 = vpop.permute.xlu1 %1495  ;;  %v2136_v7 = vsel %vm505_vm5, %v7670_v36, %v7669_v60  ;;  %v4308_v36 = vld [vmem:[%s7577_s3 + $0x6] ss:$0 sm:$0xff] }
 0x1c9   : > { %7667 = vst [vmem:[#allocation41_spill] sm:$0xff] %v6045_v63  ;;  %v6047_v3 = vpop.permute.xlu0 %1480  ;;  %v7674_v63 = vrot.slane %v5894_v17, 4 }
 0x1ca   : > { %7668 = vst [vmem:[#allocation42_spill] sm:$0xff] %v6047_v3  ;;  %1879 = vrot.lane.b32.xlu1 %v1798_v19, %s5089_s27  ;;  %v7673_v19 = vrot.slane %v5869_v13, 4 }
 0x1cb   : > { %2139 = vrot.lane.b32.xlu0 %v2136_v7, %s7656_s17  ;;  %v2181_v7 = vrot.slane %v5894_v17, 7 }
 0x1cc   : > { %v6058_v20 = vpop.permute.xlu1 %1184  ;;  %v2167_v60 = vsel %vm539_vm3, %v7674_v63, %v7673_v19  ;;  %v2183_v63 = vrot.slane %v5869_v13, 7  ;;  %v6087_v19 = vadd.f32 %v4308_v36, %v5734_v45 }
 0x1cd   : > { %7671 = vst [vmem:[#allocation43_spill] sm:$0xff] %v6058_v20  ;;  %v6060_v53 = vpop.permute.xlu0 %1168 }
 0x1ce   : > { %7672 = vst [vmem:[#allocation44_spill] sm:$0xff] %v6060_v53  ;;  %2124 = vrot.lane.b32.xlu1 %v2121_v56, %s5085_s16  ;;  %v2151_v53 = vsel %vm521_vm2, %v7678_v2, %v7677_v59  ;;  %7679 = vst [vmem:[#allocation47_spill] sm:$0xff] %v6087_v19  ;;  %v2184_v17 = vsel %vm557_vm6, %v2181_v7, %v2183_v63  ;;  %v6098_v59 = vadd.f32 %v4308_v36, %v5739_v47 }
 0x1cf   : > { %2171 = vrot.lane.b32.xlu0 %v2167_v60, %s5088_s23  ;;  %v2182_v60 = vsel %vm557_vm6, %v5678_v33, %v2181_v7  ;;  %v2538_v31 = vrot.slane %v6087_v19, 7 }
 0x1d0   : > { %v6075_v49 = vpop.permute.xlu1 %1188  ;;  %7682 = vst [vmem:[#allocation50_spill] sm:$0xff] %v6098_v59  ;;  %v2474_v63 = vrot.slane %v6098_v59, 2  ;;  %v2517_v42 = vrot.slane %v6098_v59, 4 }
 0x1d1   : > { %7675 = vst [vmem:[#allocation45_spill] sm:$0xff] %v6075_v49  ;;  %v6077_v20 = vpop.permute.xlu0 %1200 }
 0x1d2   : > { %7676 = vst [vmem:[#allocation46_spill] sm:$0xff] %v6077_v20  ;;  %2155 = vrot.lane.b32.xlu1 %v2151_v53, %s7612_s22  ;;  %v2473_v53 = vrot.slane %v6087_v19, 2 }
 0x1d3   : > { %2185 = vrot.lane.b32.xlu0 %v2182_v60, %s5088_s23  ;;  %v2451_v60 = vrot.slane %v6087_v19, 1 }
 0x1d4   : > { %v6092_v49 = vpop.permute.xlu1 %1491 }
 0x1d5   : > { %7680 = vst [vmem:[#allocation48_spill] sm:$0xff] %v6092_v49  ;;  %v6094_v20 = vpop.permute.xlu0 %1204  ;;  %v2452_v62 = vsel %vm487_vm4, %v5641_v32, %v2451_v60 }
 0x1d6   : > { %7681 = vst [vmem:[#allocation49_spill] sm:$0xff] %v6094_v20  ;;  %2187 = vrot.lane.b32.xlu1 %v2184_v17, %s5088_s23  ;;  %v2453_v20 = vrot.slane %v6098_v59, 1  ;;  %v2494_v17 = vrot.slane %v6087_v19, 3 }
 0x1d7   : > { %2202 = vrot.lane.b32.xlu0 %v2121_v56, %s5089_s27 }
 0x1d8   : > { %v6103_v45 = vpop.permute.xlu1 %1523  ;;  %v2454_v56 = vsel %vm487_vm4, %v2451_v60, %v2453_v20 }
 0x1d9   : > { %7683 = vst [vmem:[#allocation51_spill] sm:$0xff] %v6103_v45  ;;  %v6105_v2 = vpop.permute.xlu0 %1235  ;;  %v2516_v45 = vrot.slane %v6087_v19, 4 }
 0x1da   : > { %2478 = vrot.lane.b32.xlu1 %v2473_v53, %s7656_s17 }
 0x1db   : > { %2556 = vrot.lane.b32.xlu0 %v6087_v19, %s5084_s25  ;;  %v2518_v60 = vsel %vm539_vm3, %v2516_v45, %v2517_v42  ;;  %v2540_v19 = vrot.slane %v6098_v59, 7 }
 0x1dc   : > { %v6112_v47 = vpop.permute.xlu1 %1527 }
 0x1dd   : > { %7684 = vst [vmem:[#allocation52_spill] sm:$0xff] %v6112_v47  ;;  %v6115_v7 = vpop.permute.xlu0 %1507  ;;  %v2475_v47 = vsel %vm505_vm5, %v2473_v53, %v2474_v63 }
 0x1de   : > { %7685 = vst [vmem:[#allocation53_spill] sm:$0xff] %v6115_v7  ;;  %2500 = vrot.lane.b32.xlu1 %v2494_v17, %s7612_s22  ;;  %v2495_v7 = vrot.slane %v6098_v59, 3 }
 0x1df   : > { %2459 = vrot.lane.b32.xlu0 %v2454_v56, %s5085_s16 }
 0x1e0   : > { %v6121_v13 = vpop.permute.xlu1 %1558 }
 0x1e1   : > { %v6124_v3 = vpop.permute.xlu0 %1511 }
 0x1e2   : > { %7686 = vst [vmem:[#allocation54_spill] sm:$0xff] %v6124_v3  ;;  %2522 = vrot.lane.b32.xlu1 %v2516_v45, %s5088_s23  ;;  %v2496_v3 = vsel %vm521_vm2, %v2494_v17, %v2495_v7  ;;  %v6154_v17 = vadd.f32 %v4308_v36, %v5775_v57 }
 0x1e3   : > { %2480 = vrot.lane.b32.xlu0 %v2475_v47, %s7656_s17 }
 0x1e4   : > { %v6130_v49 = vpop.permute.xlu1 %1153  ;;  %7692 = vst [vmem:[#allocation60_spill] sm:$0xff] %v6154_v17 }
 0x1e5   : > { %7687 = vst [vmem:[#allocation55_spill] sm:$0xff] %v6130_v49  ;;  %v6132_v39 = vpop.permute.xlu0 %1155 }
 0x1e6   : > { %7688 = vst [vmem:[#allocation56_spill] sm:$0xff] %v6132_v39  ;;  %2457 = vrot.lane.b32.xlu1 %v2452_v62, %s5085_s16  ;;  %v2539_v39 = vsel %vm557_vm6, %v5678_v33, %v2538_v31 }
 0x1e7   : > { %2502 = vrot.lane.b32.xlu0 %v2496_v3, %s7612_s22 }
 0x1e8   : > { %v6141_v53 = vpop.permute.xlu1 %1170 }
 0x1e9   : > { %7689 = vst [vmem:[#allocation57_spill] sm:$0xff] %v6141_v53  ;;  %v6143_v47 = vpop.permute.xlu0 %1186  ;;  %v2497_v53 = vrot.slane %v6154_v17, 3 }
 0x1ea   : > { %7690 = vst [vmem:[#allocation58_spill] sm:$0xff] %v6143_v47  ;;  %2544 = vrot.lane.b32.xlu1 %v2539_v39, %s5088_s23  ;;  %v2541_v47 = vsel %vm557_vm6, %v2538_v31, %v2540_v19  ;;  %v2476_v31 = vrot.slane %v6154_v17, 2 }
 0x1eb   : > { %2524 = vrot.lane.b32.xlu0 %v2518_v60, %s5088_s23  ;;  %v2455_v60 = vrot.slane %v6154_v17, 1  ;;  %v2498_v49 = vsel %vm521_vm2, %v2495_v7, %v2497_v53  ;;  %v2542_v7 = vrot.slane %v6154_v17, 7 }
 0x1ec   : > { %v6151_v62 = vpop.permute.xlu1 %1202 }
 0x1ed   : > { %7691 = vst [vmem:[#allocation59_spill] sm:$0xff] %v6151_v62  ;;  %v6156_v3 = vpop.permute.xlu0 %1218 }
 0x1ee   : > { %2558 = vrot.lane.b32.xlu1 %v6098_v59, %s5084_s25  ;;  %v2456_v59 = vsel %vm487_vm4, %v2453_v20, %v2455_v60 }
 0x1ef   : > { %2546 = vrot.lane.b32.xlu0 %v2541_v47, %s5088_s23 }
 0x1f0   : > { %v6162_v39 = vpop.permute.xlu1 %1216 }
 0x1f1   : > { %v6164_v45 = vpop.permute.xlu0 %1476 }
 0x1f2   : > { %7693 = vst [vmem:[#allocation61_spill] sm:$0xff] %v6164_v45  ;;  %2569 = vrot.lane.b32.xlu1 %v2454_v56, %s5089_s27  ;;  %v2477_v56 = vsel %vm505_vm5, %v2474_v63, %v2476_v31  ;;  %v2519_v45 = vrot.slane %v6154_v17, 4  ;;  %v4329_v63 = vld [vmem:[%s7577_s3 + $0x7] ss:$0 sm:$0xff] }
 0x1f3   : > { %2560 = vrot.lane.b32.xlu0 %v6154_v17, %s5084_s25  ;;  %v6221_v17 = vadd.f32 %v4329_v63, %v5907_v44 }
 0x1f4   : > { %v6170_v57 = vpop.permute.xlu1 %1233 }
 0x1f5   : > { %v6172_v36 = vpop.permute.xlu0 %1493  ;;  %7700 = vst [vmem:[#allocation68_spill] sm:$0xff] %v6221_v17 }
 0x1f6   : > { %7694 = vst [vmem:[#allocation62_spill] sm:$0xff] %v6172_v36  ;;  %2461 = vrot.lane.b32.xlu1 %v2456_v59, %s5085_s16 }
 0x1f7   : > { %2463 = vrot.lane.b32.xlu0 %v2455_v60, %s5085_s16 }
 0x1f8   : > { %v6178_v47 = vpop.permute.xlu1 %1478 }
 0x1f9   : > { %7695 = vst [vmem:[#allocation63_spill] sm:$0xff] %v6178_v47  ;;  %v6180_v62 = vpop.permute.xlu0 %1525  ;;  %v6206_v47 = vadd.f32 %v4329_v63, %v5882_v38 }
 0x1fa   : > { %7696 = vst [vmem:[#allocation64_spill] sm:$0xff] %v6180_v62  ;;  %2482 = vrot.lane.b32.xlu1 %v2477_v56, %s7656_s17  ;;  %v2499_v62 = vsel %vm521_vm2, %v2497_v53, %v5502_v1 }
 0x1fb   : > { %2484 = vrot.lane.b32.xlu0 %v2476_v31, %s7656_s17  ;;  %7698 = vst [vmem:[#allocation66_spill] sm:$0xff] %v6206_v47  ;;  %v2867_v38 = vrot.slane %v6206_v47, 1  ;;  %v2910_v40 = vrot.slane %v6206_v47, 3 }
 0x1fc   : > { %v6186_v36 = vpop.permute.xlu1 %1509 }
 0x1fd   : > { %7697 = vst [vmem:[#allocation65_spill] sm:$0xff] %v6186_v36  ;;  %v6188_v20 = vpop.permute.xlu0 %1539  ;;  %v2520_v36 = vsel %vm539_vm3, %v2517_v42, %v2519_v45  ;;  %v2543_v42 = vsel %vm557_vm6, %v2540_v19, %v2542_v7  ;;  %v2868_v44 = vsel %vm487_vm4, %v5641_v32, %v2867_v38  ;;  %v6237_v19 = vrot.slane %v6221_v17, 1 }
 0x1fe   : > { %2504 = vrot.lane.b32.xlu1 %v2498_v49, %s7612_s22  ;;  %v2521_v49 = vsel %vm539_vm3, %v2519_v45, %v5633_v50 }
 0x1ff   : > { %2506 = vrot.lane.b32.xlu0 %v2499_v62, %s7612_s22  ;;  %v6215_v62 = vadd.f32 %v4329_v63, %v5900_v41  ;;  %v2568_v41 = vsel %vm487_vm4, %v2455_v60, %v5641_v32 }
 0x200   : > { %v6199_v31 = vpop.permute.xlu1 %1541 }
 0x201   : > { %v6201_v56 = vpop.permute.xlu0 %1556  ;;  %7699 = vst [vmem:[#allocation67_spill] sm:$0xff] %v6215_v62  ;;  %v2911_v23 = vrot.slane %v6215_v62, 3 }
 0x202   : > { %2526 = vrot.lane.b32.xlu1 %v2520_v36, %s5088_s23 }
 0x203   : > { %2528 = vrot.lane.b32.xlu0 %v2521_v49, %s5088_s23  ;;  %v2869_v49 = vrot.slane %v6215_v62, 1 }
 0x204   : > { %v6212_v53 = vpop.permute.xlu1 %2195 }
 0x205   : > { %v6217_v46 = vpop.permute.xlu0 %1872  ;;  %v6245_v7 = vsel %vm487_vm4, %v2867_v38, %v2869_v49  ;;  %v6251_v60 = vsel %vm487_vm4, %v2869_v49, %v6237_v19  ;;  %v2892_v38 = vrot.slane %v6221_v17, 2 }
 0x206   : > { %2548 = vrot.lane.b32.xlu1 %v2543_v42, %s5088_s23 }
 0x207   : > { %2571 = vrot.lane.b32.xlu0 %v2456_v59, %s5089_s27 }
 0x208   : > { %v6226_v45 = vpop.permute.xlu1 %1870 }
 0x209   : > { %v6228_v36 = vpop.permute.xlu0 %2193 }
 0x20a   : > { %2573 = vrot.lane.b32.xlu1 %v2568_v41, %s5089_s27 }
 0x20b   : > { %2873 = vrot.lane.b32.xlu0 %v2868_v44, %s5085_s16  ;;  %v2889_v44 = vrot.slane %v6206_v47, 2 }
 0x20c   : > { %v6240_v59 = vpop.permute.xlu1 %1803 }
 0x20d   : > { %7701 = vst [vmem:[#allocation69_spill] sm:$0xff] %v6240_v59  ;;  %v6242_v63 = vpop.permute.xlu0 %1818 }
 0x20e   : > { %7702 = vst [vmem:[#allocation70_spill] sm:$0xff] %v6242_v63  ;;  %2875 = vrot.lane.b32.xlu1 %v6245_v7, %s5085_s16  ;;  %v2890_v63 = vrot.slane %v6215_v62, 2 }
 0x20f   : > { %2877 = vrot.lane.b32.xlu0 %v6251_v60, %s5085_s16 }
 0x210   : > { %v6255_v42 = vpop.permute.xlu1 %2141  ;;  %v2891_v26 = vsel %vm505_vm5, %v2889_v44, %v2890_v63 }
 0x211   : > { %7703 = vst [vmem:[#allocation71_spill] sm:$0xff] %v6255_v42  ;;  %v6257_v41 = vpop.permute.xlu0 %2126  ;;  %v2893_v42 = vsel %vm505_vm5, %v2890_v63, %v2892_v38  ;;  %v2912_v63 = vsel %vm521_vm2, %v2910_v40, %v2911_v23 }
 0x212   : > { %7704 = vst [vmem:[#allocation72_spill] sm:$0xff] %v6257_v41  ;;  %2879 = vrot.lane.b32.xlu1 %v6237_v19, %s5085_s16 }
 0x213   : > { %2894 = vrot.lane.b32.xlu0 %v2889_v44, %s7656_s17 }
 0x214   : > { %v6265_v49 = vpop.permute.xlu1 %1830 }
 0x215   : > { %7705 = vst [vmem:[#allocation73_spill] sm:$0xff] %v6265_v49  ;;  %v6267_v59 = vpop.permute.xlu0 %1814  ;;  %v2913_v49 = vrot.slane %v6221_v17, 3 }
 0x216   : > { %7706 = vst [vmem:[#allocation74_spill] sm:$0xff] %v6267_v59  ;;  %2896 = vrot.lane.b32.xlu1 %v2891_v26, %s7656_s17 }
 0x217   : > { %2898 = vrot.lane.b32.xlu0 %v2893_v42, %s7656_s17  ;;  %v2914_v42 = vsel %vm521_vm2, %v2911_v23, %v2913_v49 }
 0x218   : > { %v6273_v41 = vpop.permute.xlu1 %1834 }
 0x219   : > { %7707 = vst [vmem:[#allocation75_spill] sm:$0xff] %v6273_v41  ;;  %v6275_v24 = vpop.permute.xlu0 %1846  ;;  %v2932_v41 = vrot.slane %v6206_v47, 4 }
 0x21a   : > { %7708 = vst [vmem:[#allocation76_spill] sm:$0xff] %v6275_v24  ;;  %2900 = vrot.lane.b32.xlu1 %v2892_v38, %s7656_s17  ;;  %v2915_v38 = vsel %vm521_vm2, %v2913_v49, %v5502_v1  ;;  %v2954_v1 = vrot.slane %v6206_v47, 7 }
 0x21b   : > { %2916 = vrot.lane.b32.xlu0 %v2910_v40, %s7612_s22  ;;  %v2935_v40 = vrot.slane %v6221_v17, 4 }
 0x21c   : > { %v6282_v44 = vpop.permute.xlu1 %2137 }
 0x21d   : > { %7709 = vst [vmem:[#allocation77_spill] sm:$0xff] %v6282_v44  ;;  %v6284_v26 = vpop.permute.xlu0 %1850  ;;  %v2933_v44 = vrot.slane %v6215_v62, 4 }
 0x21e   : > { %7710 = vst [vmem:[#allocation78_spill] sm:$0xff] %v6284_v26  ;;  %2918 = vrot.lane.b32.xlu1 %v2912_v63, %s7612_s22  ;;  %v2937_v26 = vsel %vm539_vm3, %v2935_v40, %v5633_v50 }
 0x21f   : > { %2920 = vrot.lane.b32.xlu0 %v2914_v42, %s7612_s22  ;;  %v2934_v42 = vsel %vm539_vm3, %v2932_v41, %v2933_v44  ;;  %v2936_v49 = vsel %vm539_vm3, %v2933_v44, %v2935_v40  ;;  %v2955_v44 = vsel %vm557_vm6, %v5678_v33, %v2954_v1 }
 0x220   : > { %v6290_v24 = vpop.permute.xlu1 %2169 }
 0x221   : > { %7711 = vst [vmem:[#allocation79_spill] sm:$0xff] %v6290_v24  ;;  %v6292_v59 = vpop.permute.xlu0 %1881 }
 0x222   : > { %2922 = vrot.lane.b32.xlu1 %v2915_v38, %s7612_s22  ;;  %s7835_s22 = smov 125  }
 0x223   : > { %2938 = vrot.lane.b32.xlu0 %v2932_v41, %s5088_s23  ;;  %v4353_v41 = vld [vmem:[%s7577_s3 + $0x8] ss:$0 sm:$0xff] }
 0x224   : > { %v6301_v23 = vpop.permute.xlu1 %2173 }
 0x225   : > { %7712 = vst [vmem:[#allocation80_spill] sm:$0xff] %v6301_v23  ;;  %v6303_v63 = vpop.permute.xlu0 %2153  ;;  %v2956_v23 = vrot.slane %v6215_v62, 7 }
 0x226   : > { %7713 = vst [vmem:[#allocation81_spill] sm:$0xff] %v6303_v63  ;;  %2940 = vrot.lane.b32.xlu1 %v2934_v42, %s5088_s23  ;;  %v2958_v42 = vrot.slane %v6221_v17, 7  ;;  %v6328_v63 = vadd.f32 %v4353_v41, %v6011_v6  ;;  %v6345_v6 = vadd.f32 %v4353_v41, %v6031_v35 }
 0x227   : > { %2942 = vrot.lane.b32.xlu0 %v2936_v49, %s5088_s23  ;;  %v2957_v50 = vsel %vm557_vm6, %v2954_v1, %v2956_v23 }
 0x228   : > { %v6310_v24 = vpop.permute.xlu1 %2204  ;;  %v3371_v1 = vrot.slane %v6328_v63, 7 }
 0x229   : > { %v6312_v38 = vpop.permute.xlu0 %2157 }
 0x22a   : > { %7714 = vst [vmem:[#allocation82_spill] sm:$0xff] %v6312_v38  ;;  %2944 = vrot.lane.b32.xlu1 %v2937_v26, %s5088_s23  ;;  %v6334_v38 = vadd.f32 %v4353_v41, %v6018_v43  ;;  %v2959_v26 = vsel %vm557_vm6, %v2956_v23, %v2958_v42 }
 0x22b   : > { %2960 = vrot.lane.b32.xlu0 %v2955_v44, %s5088_s23  ;;  %v4377_v44 = vld [vmem:[%s7577_s3 + $0x9] ss:$0 sm:$0xff] }
 0x22c   : > { %v6325_v49 = vpop.permute.xlu1 %1799  ;;  %v6356_v43 = vadd.f32 %v4377_v44, %v6037_v48  ;;  %v3373_v23 = vrot.slane %v6334_v38, 7  ;;  %v6368_v42 = vadd.f32 %v4377_v44, %v6043_v30  ;;  %v3372_v48 = vsel %vm557_vm6, %v5678_v33, %v3371_v1 }
 0x22d   : > { %7715 = vst [vmem:[#allocation83_spill] sm:$0xff] %v6325_v49  ;;  %v6330_v40 = vpop.permute.xlu0 %1801 }
 0x22e   : > { %7716 = vst [vmem:[#allocation84_spill] sm:$0xff] %v6330_v40  ;;  %2962 = vrot.lane.b32.xlu1 %v2957_v50, %s5088_s23  ;;  %v6353_v50 = vld [vmem:[%s7578_s4] ss:$0 sm:$0xff] }
 0x22f   : > { %2964 = vrot.lane.b32.xlu0 %v2959_v26, %s5088_s23  ;;  %v569_v35 = vadd.f32 %v6353_v50, %v5930_v0  ;;  %v3374_v0 = vsel %vm557_vm6, %v3371_v1, %v3373_v23  ;;  %v570_v30 = vadd.f32 %v6353_v50, %v5957_v55 }
 0x230   : > { %v6342_v49 = vpop.permute.xlu1 %1816 }
 0x231   : > { %7717 = vst [vmem:[#allocation85_spill] sm:$0xff] %v6342_v49  ;;  %v6347_v40 = vpop.permute.xlu0 %1832 }
 0x232   : > { %7718 = vst [vmem:[#allocation86_spill] sm:$0xff] %v6347_v40  ;;  %2972 = vrot.lane.b32.xlu1 %v6206_v47, %s5084_s25  ;;  %v3375_v47 = vrot.slane %v6345_v6, 7  ;;  %v6376_v40 = vadd.f32 %v4377_v44, %v6056_v37  ;;  %v3790_v37 = vrot.slane %v6368_v42, 7  ;;  %v6392_v44 = vld [vmem:[%s7578_s4 + $0x1] ss:$0 sm:$0xff] }
 0x233   : > { %2974 = vrot.lane.b32.xlu0 %v6215_v62, %s5084_s25  ;;  %v3788_v62 = vrot.slane %v6356_v43, 7 }
 0x234   : > { %v6365_v41 = vpop.permute.xlu1 %1848  ;;  %v3376_v15 = vsel %vm557_vm6, %v3373_v23, %v3375_v47  ;;  %v3792_v55 = vrot.slane %v6376_v40, 7  ;;  %v900_v47 = vadd.f32 %v6392_v44, %v5997_v5 }
 0x235   : > { %7719 = vst [vmem:[#allocation87_spill] sm:$0xff] %v6365_v41  ;;  %v6370_v26 = vpop.permute.xlu0 %1864  ;;  %v577_v41 = vadd.f32 %v5803_v10, %v569_v35  ;;  %v3789_v10 = vsel %vm557_vm6, %v5678_v33, %v3788_v62  ;;  %v578_v35 = vadd.f32 %v5801_v8, %v570_v30  ;;  %v3791_v33 = vsel %vm557_vm6, %v3788_v62, %v3790_v37 }
 0x236   : > { %3377 = vrot.lane.b32.xlu1 %v3372_v48, %s5088_s23  ;;  %v899_v48 = vadd.f32 %v6392_v44, %v5985_v9  ;;  %v3793_v5 = vsel %vm557_vm6, %v3790_v37, %v3792_v55 }
 0x237   : > { %3379 = vrot.lane.b32.xlu0 %v3374_v0, %s5088_s23  ;;  %v586_v1 = vadd.f32 %v5938_v18, %v577_v41  ;;  %v6413_v18 = vld [vmem:[%s7578_s4 + $0x2] ss:$0 sm:$0xff]  ;;  %v587_v41 = vadd.f32 %v5891_v4, %v578_v35  ;;  %v908_v0 = vadd.f32 %v5809_v11, %v900_v47 }
 0x238   : > { %v1863_v49 = vpop.permute.xlu1 %1862  ;;  %v1222_v9 = vadd.f32 %v6413_v18, %v6162_v39  ;;  %v907_v30 = vadd.f32 %v5811_v12, %v899_v48  ;;  %v6439_v12 = vld [vmem:[%s7578_s4 + $0x3] ss:$0 sm:$0xff] }
 0x239   : > { %v6385_v21 = vpop.permute.xlu0 %2122  ;;  %v4204_v8 = vmul.f32 -1.442695, %v586_v1  ;;  %v4205_v37 = vmul.f32 -1.442695, %v587_v41  ;;  %v917_v4 = vadd.f32 %v5936_v16, %v908_v0  ;;  %v1223_v1 = vadd.f32 %v6413_v18, %v6156_v3 }
 0x23a   : > { %3381 = vrot.lane.b32.xlu1 %v3376_v15, %s5088_s23  ;;  %v1230_v11 = vadd.f32 %v6020_v51, %v1222_v9  ;;  %v916_v55 = vadd.f32 %v5999_v54, %v907_v30  ;;  %v1545_v16 = vadd.f32 %v6439_v12, %v6188_v20  ;;  %v1546_v54 = vadd.f32 %v6439_v12, %v6199_v31  ;;  %v6464_v31 = vld [vmem:[%s7578_s4 + $0x4] ss:$0 sm:$0xff] }
 0x23b   : > { %3794 = vrot.lane.b32.xlu0 %v3789_v10, %s5088_s23  ;;  %4728 = vpow2.f32 %v4204_v8  ;;  %v4223_v51 = vmul.f32 -1.442695, %v917_v4  ;;  %v1231_v3 = vadd.f32 %v6008_v52, %v1223_v1  ;;  %v1868_v0 = vadd.f32 %v6464_v31, %v1863_v49 }
 0x23c   : > { %v6403_v23 = vpop.permute.xlu1 %1879  ;;  %4730 = vpow2.f32 %v4205_v37  ;;  %v1239_v47 = vadd.f32 %v6170_v57, %v1230_v11  ;;  %v1553_v20 = vadd.f32 %v6022_v58, %v1545_v16  ;;  %v1554_v57 = vadd.f32 %v6006_v22, %v1546_v54 }
 0x23d   : > { %v6407_v15 = vpop.permute.xlu0 %2139  ;;  %4732 = vpow2.f32 %v4223_v51  ;;  %v1240_v58 = vadd.f32 %v6105_v2, %v1231_v3  ;;  %v3284_v2 = vrot.slane %v6328_v63, 1  ;;  %v3286_v49 = vrot.slane %v6334_v38, 1 }
 0x23e   : > { %3796 = vrot.lane.b32.xlu1 %v3791_v33, %s5088_s23  ;;  %v4222_v33 = vmul.f32 -1.442695, %v916_v55  ;;  %v4241_v8 = vmul.f32 -1.442695, %v1239_v47  ;;  %v1562_v22 = vadd.f32 %v6201_v56, %v1553_v20  ;;  %v1563_v30 = vadd.f32 %v6121_v13, %v1554_v57  ;;  %v6485_v56 = vld [vmem:[%s7578_s4 + $0x5] ss:$0 sm:$0xff] }
 0x23f   : > { %3798 = vrot.lane.b32.xlu0 %v3793_v5, %s5088_s23  ;;  %v4242_v55 = vmul.f32 -1.442695, %v1240_v58  ;;  %v1869_v13 = vadd.f32 %v6464_v31, %v6370_v26  ;;  %v1876_v1 = vadd.f32 %v6226_v45, %v1868_v0  ;;  %v6493_v16 = vrot.slane %v6345_v6, 1 }
 0x240   : > { %v6422_v62 = vpop.permute.xlu1 %2124  ;;  %4734 = vpow2.f32 %v4222_v33  ;;  %v4260_v51 = vmul.f32 -1.442695, %v1562_v22  ;;  %v2984_v54 = vsel %vm487_vm4, %v6237_v19, %v5641_v32  ;;  %v4261_v33 = vmul.f32 -1.442695, %v1563_v30 }
 0x241   : > { %v6425_v10 = vpop.permute.xlu0 %2171  ;;  %4736 = vpow2.f32 %v4241_v8  ;;  %v1885_v8 = vadd.f32 %v6403_v23, %v1876_v1  ;;  %v3703_v58 = vrot.slane %v6368_v42, 1 }
 0x242   : > { %2976 = vrot.lane.b32.xlu1 %v6221_v17, %s5084_s25 }
 0x243   : > { %3389 = vrot.lane.b32.xlu0 %v6328_v63, %s5084_s25 }
 0x244   : > { %v6433_v39 = vpop.permute.xlu1 %2155 }
 0x245   : > { %v2186_v35 = vpop.permute.xlu0 %2185  ;;  %v4729_v41 = vpop.eup %4728 }
 0x246   : > { %3391 = vrot.lane.b32.xlu1 %v6334_v38, %s5084_s25  ;;  %v612_v37 = vadd.f32 1.0, %v4729_v41  ;;  %v4731_v11 = vpop.eup %4730  ;;  %v2191_v47 = vadd.f32 %v6485_v56, %v2186_v35  ;;  %v3287_v35 = vsel %vm487_vm4, %v3284_v2, %v3286_v49  ;;  %v7616_v41 = vrot.slane %v6356_v43, 1 }
 0x247   : > { %3393 = vrot.lane.b32.xlu0 %v6345_v6, %s5084_s25  ;;  %v613_v45 = vadd.f32 1.0, %v4731_v11  ;;  %v4733_v20 = vpop.eup %4732  ;;  %v3401_v11 = vsel %vm487_vm4, %v6493_v16, %v5641_v32 }
 0x248   : > { %v2188_v48 = vpop.permute.xlu1 %2187  ;;  %4738 = vrcp.f32 %v612_v37  ;;  %v2199_v57 = vadd.f32 %v6228_v36, %v2191_v47  ;;  %v943_v23 = vadd.f32 1.0, %v4733_v20  ;;  %v4279_v37 = vmul.f32 -1.442695, %v1885_v8 }
 0x249   : > { %v6453_v5 = vpop.permute.xlu0 %2202  ;;  %v2192_v26 = vadd.f32 %v6485_v56, %v2188_v48  ;;  %4740 = vpow2.f32 %v4242_v55  ;;  %v6514_v48 = vsel %vm487_vm4, %v3286_v49, %v6493_v16  ;;  %v6532_v55 = vrot.slane %v6376_v40, 1 }
 0x24a   : > { %3806 = vrot.lane.b32.xlu1 %v6356_v43, %s5084_s25  ;;  %4742 = vpow2.f32 %v4260_v51  ;;  %v4735_v0 = vpop.eup %4734  ;;  %v6539_v1 = vsel %vm487_vm4, %v7616_v41, %v3703_v58 }
 0x24b   : > { %3808 = vrot.lane.b32.xlu0 %v6368_v42, %s5084_s25  ;;  %4744 = vpow2.f32 %v4261_v33  ;;  %v4737_v30 = vpop.eup %4736 }
 0x24c   : > { %v6466_v52 = vpop.permute.xlu1 %2478  ;;  %4746 = vrcp.f32 %v613_v45  ;;  %v1265_v51 = vadd.f32 1.0, %v4737_v30  ;;  %v3285_v30 = vsel %vm487_vm4, %v5641_v32, %v3284_v2 }
 0x24d   : > { %v6470_v9 = vpop.permute.xlu0 %2556  ;;  %4748 = vrcp.f32 %v943_v23 }
 0x24e   : > { %3810 = vrot.lane.b32.xlu1 %v6376_v40, %s5084_s25  ;;  %4750 = vpow2.f32 %v4279_v37  ;;  %s374_s25 = scalar_lea.vmem %s7582_s8, %s5213_s21  ;;  %s5091_s21 = smov [#allocation2]  }
 0x24f   : > { %2985 = vrot.lane.b32.xlu0 %v6245_v7, %s5089_s27  ;;  %s4989_s14 = sshll.u32 %s5091_s21, 4  ;;  %s4990_s14 = int_to_ptr.vmem [resolvable:$false] %s4989_s14 }
 0x250   : > { %v6478_v4 = vpop.permute.xlu1 %2500 }
 0x251   : > { %v6490_v7 = vpop.permute.xlu0 %2459 }
 0x252   : > { %7720 = vst [vmem:[#allocation88_spill] sm:$0xff] %v6490_v7  ;;  %2987 = vrot.lane.b32.xlu1 %v6251_v60, %s5089_s27  ;;  %v1877_v60 = vadd.f32 %v6217_v46, %v1869_v13  ;;  %v2200_v46 = vadd.f32 %v6212_v53, %v2192_v26  ;;  %v942_v53 = vadd.f32 1.0, %v4735_v0  ;;  %v2208_v13 = vadd.f32 %v6453_v5, %v2199_v57  ;;  %v4739_v26 = vpop.eup %4738  ;;  %v6559_v57 = vld [vmem:[%s7578_s4 + $0x6] ss:$0 sm:$0xff] }
 0x253   : > { %2989 = vrot.lane.b32.xlu0 %v2984_v54, %s5089_s27  ;;  %v6548_v5 = vsel %vm487_vm4, %v3703_v58, %v6532_v55  ;;  %v4741_v20 = vpop.eup %4740 }
 0x254   : > { %v6503_v3 = vpop.permute.xlu1 %2522  ;;  %v1886_v36 = vadd.f32 %v6292_v59, %v1877_v60  ;;  %v2209_v59 = vadd.f32 %v6310_v24, %v2200_v46  ;;  %4752 = vrcp.f32 %v942_v53  ;;  %v4298_v45 = vmul.f32 -1.442695, %v2208_v13  ;;  %v4743_v8 = vpop.eup %4742 }
 0x255   : > { %v6510_v19 = vpop.permute.xlu0 %2480  ;;  %v3818_v24 = vsel %vm487_vm4, %v6532_v55, %v5641_v32  ;;  %4754 = vrcp.f32 %v1265_v51  ;;  %v4745_v0 = vpop.eup %4744  ;;  %v1266_v37 = vadd.f32 1.0, %v4741_v20 }
 0x256   : > { %7721 = vst [vmem:[#allocation89_spill] sm:$0xff] %v6510_v19  ;;  %3402 = vrot.lane.b32.xlu1 %v3287_v35, %s5089_s27  ;;  %v4280_v54 = vmul.f32 -1.442695, %v1886_v36  ;;  %v4299_v60 = vmul.f32 -1.442695, %v2209_v59  ;;  %v4747_v36 = vpop.eup %4746  ;;  %v1589_v53 = vadd.f32 1.0, %v4745_v0 }
 0x257   : > { %3404 = vrot.lane.b32.xlu0 %v6514_v48, %s5089_s27  ;;  %v7753_v19 = vld [vmem:[#allocation8_spill] sm:$0xff] }
 0x258   : > { %v6523_v22 = vpop.permute.xlu1 %2457  ;;  %4756 = vpow2.f32 %v4280_v54  ;;  %v621_v54 = vrot.slane %v4747_v36, 2 }
 0x259   : > { %v6526_v49 = vpop.permute.xlu0 %2502  ;;  %4758 = vpow2.f32 %v4298_v45 }
 0x25a   : > { %7722 = vst [vmem:[#allocation90_spill] sm:$0xff] %v6526_v49  ;;  %3406 = vrot.lane.b32.xlu1 %v3401_v11, %s5089_s27  ;;  %v1588_v11 = vadd.f32 1.0, %v4743_v8  ;;  %4760 = vpow2.f32 %v4299_v60  ;;  %v7750_v49 = vld [vmem:[#allocation19_spill] sm:$0xff] }
 0x25b   : > { %3819 = vrot.lane.b32.xlu0 %v6539_v1, %s5089_s27  ;;  %4762 = vrcp.f32 %v1266_v37 }
 0x25c   : > { %v2545_v47 = vpop.permute.xlu1 %2544  ;;  %4764 = vrcp.f32 %v1588_v11 }
 0x25d   : > { %v6544_v33 = vpop.permute.xlu0 %2524  ;;  %v2553_v46 = vadd.f32 %v6559_v57, %v2545_v47  ;;  %v620_v47 = vrot.slane %v4739_v26, 2  ;;  %4766 = vrcp.f32 %v1589_v53 }
 0x25e   : > { %7723 = vst [vmem:[#allocation91_spill] sm:$0xff] %v6544_v33  ;;  %3821 = vrot.lane.b32.xlu1 %v6548_v5, %s5089_s27 }
 0x25f   : > { %3823 = vrot.lane.b32.xlu0 %v3818_v24, %s5089_s27  ;;  %v2565_v59 = vadd.f32 %v6470_v9, %v2553_v46  ;;  %v4749_v24 = vpop.eup %4748  ;;  %v622_v9 = vsel %vm505_vm5, %v620_v47, %v621_v54 }
 0x260   : > { %v6561_v58 = vpop.permute.xlu1 %2558  ;;  %v4751_v2 = vpop.eup %4750  ;;  %v951_v26 = vrot.slane %v4749_v24, 2 }
 0x261   : > { %v6564_v23 = vpop.permute.xlu0 %2546  ;;  %v4753_v20 = vpop.eup %4752  ;;  %v1911_v0 = vadd.f32 1.0, %v4751_v2 }
 0x262   : > { %3290 = vrot.lane.b32.xlu1 %v3285_v30, %s5085_s16  ;;  %v4755_v8 = vpop.eup %4754  ;;  %v950_v30 = vrot.slane %v4753_v20, 2 }
 0x263   : > { %3292 = vrot.lane.b32.xlu0 %v3287_v35, %s5085_s16  ;;  %v4757_v46 = vpop.eup %4756  ;;  %4768 = vrcp.f32 %v1911_v0 }
 0x264   : > { %v2570_v13 = vpop.permute.xlu1 %2569  ;;  %v4759_v36 = vpop.eup %4758 }
 0x265   : > { %v6573_v51 = vpop.permute.xlu0 %2560  ;;  %v2578_v45 = vadd.f32 %v2570_v13, %v2565_v59  ;;  %v4761_v11 = vpop.eup %4760  ;;  %v952_v13 = vsel %vm505_vm5, %v950_v30, %v951_v26  ;;  %v1912_v59 = vadd.f32 1.0, %v4757_v46 }
 0x266   : > { %3294 = vrot.lane.b32.xlu1 %v6514_v48, %s5085_s16  ;;  %v4763_v24 = vpop.eup %4762  ;;  %v2235_v2 = vadd.f32 1.0, %v4761_v11 }
 0x267   : > { %623 = vrot.lane.b32.xlu0 %v620_v47, %s5085_s16  ;;  %v4317_v48 = vmul.f32 -1.442695, %v2578_v45  ;;  %v2234_v47 = vadd.f32 1.0, %v4759_v36  ;;  %v1273_v45 = vrot.slane %v4755_v8, 2  ;;  %v4765_v20 = vpop.eup %4764  ;;  %v1274_v46 = vrot.slane %v4763_v24, 2 }
 0x268   : > { %v6578_v35 = vpop.permute.xlu1 %2461  ;;  %v4767_v41 = vpop.eup %4766 }
 0x269   : > { %7724 = vst [vmem:[#allocation92_spill] sm:$0xff] %v6578_v35  ;;  %v6580_v60 = vpop.permute.xlu0 %2463  ;;  %4770 = vpow2.f32 %v4317_v48  ;;  %v1597_v36 = vrot.slane %v4767_v41, 2  ;;  %v482_v35 = vadd.f32 %v6353_v50, %v5412_v28  ;;  %v7751_v28 = vld [vmem:[#allocation30_spill] sm:$0xff] }
 0x26a   : > { %7725 = vst [vmem:[#allocation93_spill] sm:$0xff] %v6580_v60  ;;  %625 = vrot.lane.b32.xlu1 %v622_v9, %s5085_s16  ;;  %4772 = vrcp.f32 %v1912_v59 }
 0x26b   : > { %627 = vrot.lane.b32.xlu0 %v621_v54, %s5085_s16  ;;  %4774 = vrcp.f32 %v2234_v47 }
 0x26c   : > { %v6585_v37 = vpop.permute.xlu1 %2482  ;;  %4776 = vrcp.f32 %v2235_v2 }
 0x26d   : > { %7726 = vst [vmem:[#allocation94_spill] sm:$0xff] %v6585_v37  ;;  %v6587_v53 = vpop.permute.xlu0 %2484  ;;  %v4769_v8 = vpop.eup %4768 }
 0x26e   : > { %7727 = vst [vmem:[#allocation95_spill] sm:$0xff] %v6587_v53  ;;  %955 = vrot.lane.b32.xlu1 %v952_v13, %s5085_s16  ;;  %v1919_v41 = vrot.slane %v4769_v8, 2 }
 0x26f   : > { %953 = vrot.lane.b32.xlu0 %v950_v30, %s5085_s16  ;;  %v1596_v30 = vrot.slane %v4765_v20, 2 }
 0x270   : > { %v6592_v54 = vpop.permute.xlu1 %2504 }
 0x271   : > { %7728 = vst [vmem:[#allocation96_spill] sm:$0xff] %v6592_v54  ;;  %v6594_v9 = vpop.permute.xlu0 %2506  ;;  %v1275_v54 = vsel %vm505_vm5, %v1273_v45, %v1274_v46 }
 0x272   : > { %7729 = vst [vmem:[#allocation97_spill] sm:$0xff] %v6594_v9  ;;  %1276 = vrot.lane.b32.xlu1 %v1273_v45, %s5085_s16 }
 0x273   : > { %957 = vrot.lane.b32.xlu0 %v951_v26, %s5085_s16  ;;  %v4771_v13 = vpop.eup %4770  ;;  %v1598_v26 = vsel %vm505_vm5, %v1596_v30, %v1597_v36 }
 0x274   : > { %v6598_v0 = vpop.permute.xlu1 %2526  ;;  %v4773_v47 = vpop.eup %4772  ;;  %v2614_v24 = vadd.f32 1.0, %v4771_v13 }
 0x275   : > { %7730 = vst [vmem:[#allocation98_spill] sm:$0xff] %v6598_v0  ;;  %v6600_v48 = vpop.permute.xlu0 %2528  ;;  %v4775_v20 = vpop.eup %4774 }
 0x276   : > { %7731 = vst [vmem:[#allocation99_spill] sm:$0xff] %v6600_v48  ;;  %1280 = vrot.lane.b32.xlu1 %v1274_v46, %s5085_s16  ;;  %v4777_v48 = vpop.eup %4776  ;;  %4778 = vrcp.f32 %v2614_v24  ;;  %v2242_v13 = vrot.slane %v4775_v20, 2 }
 0x277   : > { %1599 = vrot.lane.b32.xlu0 %v1596_v30, %s5085_s16  ;;  %v2243_v9 = vrot.slane %v4777_v48, 2 }
 0x278   : > { %v6604_v11 = vpop.permute.xlu1 %2548 }
 0x279   : > { %v6606_v59 = vpop.permute.xlu0 %2571  ;;  %v2244_v45 = vsel %vm505_vm5, %v2242_v13, %v2243_v9 }
 0x27a   : > { %1601 = vrot.lane.b32.xlu1 %v1598_v26, %s5085_s16  ;;  %v1920_v26 = vrot.slane %v4773_v47, 2 }
 0x27b   : > { %1603 = vrot.lane.b32.xlu0 %v1597_v36, %s5085_s16 }
 0x27c   : > { %v6611_v2 = vpop.permute.xlu1 %2573  ;;  %v1921_v48 = vsel %vm505_vm5, %v1919_v41, %v1920_v26 }
 0x27d   : > { %v6613_v0 = vpop.permute.xlu0 %2873 }
 0x27e   : > { %1922 = vrot.lane.b32.xlu1 %v1919_v41, %s5085_s16  ;;  %v5090_v41 = vmov 0  }
 0x27f   : > { %1278 = vrot.lane.b32.xlu0 %v1275_v54, %s5085_s16  ;;  %4726 = vset.pattern.permute.xlu1 %v5090_v41 }
 0x280   : > { %v6618_v30 = vpop.permute.xlu1 %2875  ;;  %v6635_v47 = vpop.eup %4778  ;;  %4727 = vset.pattern.permute.xlu0 %v5090_v41  ;;  %v823_v41 = vadd.f32 %v6392_v44, %v5414_v29 }
 0x281   : > { %v6620_v36 = vpop.permute.xlu0 %2877 }
 0x282   : > { %7732 = vst [vmem:[#allocation100_spill] sm:$0xff] %v6620_v36  ;;  %1926 = vrot.lane.b32.xlu1 %v1920_v26, %s5085_s16 }
 0x283   : > { %2245 = vrot.lane.b32.xlu0 %v2242_v13, %s5085_s16  ;;  %v7617_v13 = vrot.slane %v6635_v47, 2 }
 0x284   : > { %v6624_v8 = vpop.permute.xlu1 %2879 }
 0x285   : > { %7733 = vst [vmem:[#allocation101_spill] sm:$0xff] %v6624_v8  ;;  %v6626_v37 = vpop.permute.xlu0 %2894 }
 0x286   : > { %2247 = vrot.lane.b32.xlu1 %v2244_v45, %s5085_s16 }
 0x287   : > { %2249 = vrot.lane.b32.xlu0 %v2243_v9, %s5085_s16 }
 0x288   : > { %v6631_v54 = vpop.permute.xlu1 %2896 }
 0x289   : > { %7734 = vst [vmem:[#allocation102_spill] sm:$0xff] %v6631_v54  ;;  %v6633_v46 = vpop.permute.xlu0 %2898 }
 0x28a   : > { %7735 = vst [vmem:[#allocation103_spill] sm:$0xff] %v6633_v46 }
 0x28b   : > { %1924 = vrot.lane.b32.xlu0 %v1921_v48, %s5085_s16  ;;  %v502_v48 = vadd.f32 %v6353_v50, %v5880_v34  ;;  %v839_v34 = vadd.f32 %v6392_v44, %v5949_v61 }
 0x28c   : > { %v6639_v24 = vpop.permute.xlu1 %2900 }
 0x28d   : > { %7736 = vst [vmem:[#allocation104_spill] sm:$0xff] %v6639_v24  ;;  %v6641_v20 = vpop.permute.xlu0 %2916 }
 0x28e   : > { %7737 = vst [vmem:[#allocation105_spill] sm:$0xff] %v6641_v20 }
 0x28f   : > { %2631 = vrot.lane.b32.xlu0 %v7617_v13, %s5085_s16  ;;  %v483_v13 = vadd.f32 %v6353_v50, %v5410_v25  ;;  %v7746_v25 = vld [vmem:[#allocation16_spill] sm:$0xff] }
 0x290   : > { %v6647_v9 = vpop.permute.xlu1 %2918 }
 0x291   : > { %7738 = vst [vmem:[#allocation106_spill] sm:$0xff] %v6647_v9  ;;  %v6649_v45 = vpop.permute.xlu0 %2920  ;;  %v504_v53 = vadd.f32 %v5817_v14, %v483_v13  ;;  %v7749_v13 = vld [vmem:[#allocation18_spill] sm:$0xff]  ;;  %v7752_v9 = vld [vmem:[#allocation29_spill] sm:$0xff] }
 0x292   : > { %7739 = vst [vmem:[#allocation107_spill] sm:$0xff] %v6649_v45  ;;  %v518_v45 = vadd.f32 %v5847_v27, %v502_v48  ;;  %v7747_v27 = vld [vmem:[#allocation17_spill] sm:$0xff]  ;;  %v854_v61 = vadd.f32 %v7752_v9, %v839_v34  ;;  %v7760_v9 = vld [vmem:[#allocation20_spill] sm:$0xff] }
 0x293   : > { %v520_v33 = vadd.f32 %v7746_v25, %v504_v53  ;;  %v7754_v53 = vld [vmem:[#allocation22_spill] sm:$0xff]  ;;  %v7755_v25 = vld [vmem:[#allocation25_spill] sm:$0xff] }
 0x294   : > { %v6651_v46 = vpop.permute.xlu1 %2922  ;;  %v536_v48 = vadd.f32 %v7747_v27, %v518_v45  ;;  %v7757_v27 = vld [vmem:[#allocation34_spill] sm:$0xff]  ;;  %v870_v34 = vadd.f32 %v7760_v9, %v854_v61 }
 0x295   : > { %7740 = vst [vmem:[#allocation108_spill] sm:$0xff] %v6651_v46  ;;  %v6653_v36 = vpop.permute.xlu0 %2938 }
 0x296   : > { %7741 = vst [vmem:[#allocation109_spill] sm:$0xff] %v6653_v36  ;;  %v538_v36 = vadd.f32 %v7750_v49, %v520_v33  ;;  %v7759_v33 = vld [vmem:[#allocation33_spill] sm:$0xff] }
 0x298   : > { %v6655_v26 = vpop.permute.xlu1 %2940  ;;  %v556_v20 = vadd.f32 %v7755_v25, %v538_v36 }
 0x299   : > { %7742 = vst [vmem:[#allocation110_spill] sm:$0xff] %v6655_v26  ;;  %v6659_v24 = vpop.permute.xlu0 %2942  ;;  %v7748_v26 = vld [vmem:[#allocation28_spill] sm:$0xff] }
 0x29a   : > { %7743 = vst [vmem:[#allocation111_spill] sm:$0xff] %v6659_v24  ;;  %v7745_v24 = vld [vmem:[#allocation15_spill] sm:$0xff]  ;;  %v503_v60 = vadd.f32 %v7748_v26, %v482_v35  ;;  %v7756_v35 = vld [vmem:[#allocation21_spill] sm:$0xff] }
 0x29b   : > { %v841_v17 = vadd.f32 %v7745_v24, %v823_v41  ;;  %v822_v24 = vadd.f32 %v6392_v44, %v7753_v19  ;;  %v554_v26 = vadd.f32 %v7756_v35, %v536_v48 }
 0x29c   : > { %v6663_v8 = vpop.permute.xlu1 %2944  ;;  %v519_v50 = vadd.f32 %v7751_v28, %v503_v60  ;;  %v4203_v28 = vmul.f32 -1.442695, %v556_v20 }
 0x29d   : > { %7744 = vst [vmem:[#allocation112_spill] sm:$0xff] %v6663_v8  ;;  %v6666_v46 = vpop.permute.xlu0 %2960  ;;  %v856_v29 = vadd.f32 %v7749_v13, %v841_v17  ;;  %v7758_v17 = vld [vmem:[#allocation36_spill] sm:$0xff]  ;;  %v4201_v19 = vmul.f32 -1.442695, %v554_v26 }
 0x29e   : > { %v537_v54 = vadd.f32 %v7757_v27, %v519_v50  ;;  %v840_v13 = vadd.f32 %v7758_v17, %v822_v24  ;;  %v7765_v50 = vld [vmem:[#allocation31_spill] sm:$0xff]  ;;  %4780 = vpow2.f32 %v4203_v28  ;;  %v7767_v27 = vld [vmem:[#allocation38_spill] sm:$0xff] }
 0x29f   : > { %v872_v41 = vadd.f32 %v7754_v53, %v856_v29  ;;  %v7762_v29 = vld [vmem:[#allocation32_spill] sm:$0xff]  ;;  %v7763_v53 = vld [vmem:[#allocation35_spill] sm:$0xff]  ;;  %v886_v35 = vadd.f32 %v7765_v50, %v870_v34  ;;  %4782 = vpow2.f32 %v4201_v19  ;;  %v2554_v34 = vadd.f32 %v6559_v57, %v6564_v23 }
 0x2a0   : > { %v6677_v8 = vpop.permute.xlu1 %2962  ;;  %v555_v36 = vadd.f32 %v7762_v29, %v537_v54  ;;  %v855_v25 = vadd.f32 %v7763_v53, %v840_v13  ;;  %v7770_v54 = vld [vmem:[#allocation37_spill] sm:$0xff]  ;;  %v7773_v29 = vld [vmem:[#allocation48_spill] sm:$0xff] }
 0x2a1   : > { %v6681_v14 = vpop.permute.xlu0 %2964  ;;  %v888_v60 = vadd.f32 %v7759_v33, %v872_v41  ;;  %v4219_v26 = vmul.f32 -1.442695, %v886_v35  ;;  %v7771_v33 = vld [vmem:[#allocation61_spill] sm:$0xff]  ;;  %v2566_v50 = vadd.f32 %v6561_v58, %v2554_v34 }
 0x2a2   : > { %v4202_v41 = vmul.f32 -1.442695, %v555_v36  ;;  %v871_v61 = vadd.f32 %v7767_v27, %v855_v25 }
 0x2a3   : > { %v4221_v48 = vmul.f32 -1.442695, %v888_v60  ;;  %v1485_v60 = vadd.f32 %v6439_v12, %v7771_v33  ;;  %v2579_v33 = vadd.f32 %v6606_v59, %v2566_v50  ;;  %v7785_v50 = vld [vmem:[#allocation24_spill] sm:$0xff] }
 0x2a4   : > { %v6691_v45 = vpop.permute.xlu1 %2972  ;;  %v887_v13 = vadd.f32 %v7770_v54, %v871_v61  ;;  %v2555_v61 = vadd.f32 %v6559_v57, %v6604_v11  ;;  %v7777_v54 = vld [vmem:[#allocation53_spill] sm:$0xff]  ;;  %v7781_v57 = vld [vmem:[#allocation55_spill] sm:$0xff] }
 0x2a5   : > { %v6696_v49 = vpop.permute.xlu0 %2974  ;;  %4784 = vpow2.f32 %v4221_v48  ;;  %v1500_v36 = vadd.f32 %v7773_v29, %v1485_v60  ;;  %v1162_v11 = vadd.f32 %v6413_v18, %v7781_v57 }
 0x2a6   : > { %4786 = vpow2.f32 %v4202_v41  ;;  %v4220_v19 = vmul.f32 -1.442695, %v887_v13  ;;  %v7775_v41 = vld [vmem:[#allocation13_spill] sm:$0xff] }
 0x2a7   : > { %4788 = vpow2.f32 %v4219_v26  ;;  %v1468_v27 = vadd.f32 %v6439_v12, %v7775_v41  ;;  %v1516_v13 = vadd.f32 %v7777_v54, %v1500_v36  ;;  %v7780_v41 = vld [vmem:[#allocation11_spill] sm:$0xff]  ;;  %v7784_v54 = vld [vmem:[#allocation12_spill] sm:$0xff] }
 0x2a8   : > { %v6700_v44 = vpop.permute.xlu1 %3377  ;;  %v4781_v25 = vpop.eup %4780  ;;  %4790 = vpow2.f32 %v4220_v19  ;;  %v1145_v59 = vadd.f32 %v6413_v18, %v7784_v54  ;;  %v7793_v54 = vld [vmem:[#allocation62_spill] sm:$0xff] }
 0x2a9   : > { %7761 = vst [vmem:[#allocation15_spill] sm:$0xff] %v6700_v44  ;;  %v6704_v7 = vpop.permute.xlu0 %3379  ;;  %v4783_v48 = vpop.eup %4782  ;;  %v599_v23 = vadd.f32 1.0, %v4781_v25  ;;  %v7782_v25 = vld [vmem:[#allocation63_spill] sm:$0xff] }
 0x2aa   : > { %7764 = vst [vmem:[#allocation16_spill] sm:$0xff] %v6704_v7  ;;  %v597_v29 = vadd.f32 1.0, %v4783_v48  ;;  %v1486_v19 = vadd.f32 %v7782_v25, %v1468_v27  ;;  %v1792_v48 = vadd.f32 %v6464_v31, %v7785_v50  ;;  %v4318_v27 = vmul.f32 -1.442695, %v2579_v33 }
 0x2ab   : > { %4792 = vrcp.f32 %v599_v23 }
 0x2ac   : > { %v6707_v24 = vpop.permute.xlu1 %3381  ;;  %4794 = vrcp.f32 %v597_v29  ;;  %v1501_v50 = vadd.f32 %v7793_v54, %v1486_v19  ;;  %v7801_v54 = vld [vmem:[#allocation57_spill] sm:$0xff] }
 0x2ad   : > { %7766 = vst [vmem:[#allocation17_spill] sm:$0xff] %v6707_v24  ;;  %v6710_v20 = vpop.permute.xlu0 %3794  ;;  %v7788_v24 = vld [vmem:[#allocation23_spill] sm:$0xff] }
 0x2ae   : > { %7768 = vst [vmem:[#allocation28_spill] sm:$0xff] %v6710_v20  ;;  %v1146_v20 = vadd.f32 %v6413_v18, %v7780_v41  ;;  %v7787_v41 = vld [vmem:[#allocation51_spill] sm:$0xff]  ;;  %v2115_v57 = vadd.f32 %v6485_v56, %v7788_v24  ;;  %v7792_v24 = vld [vmem:[#allocation44_spill] sm:$0xff] }
 0x2af   : > { %v4785_v35 = vpop.eup %4784  ;;  %v1177_v33 = vadd.f32 %v7792_v24, %v1162_v11 }
 0x2b0   : > { %v6712_v17 = vpop.permute.xlu1 %3796  ;;  %v4787_v34 = vpop.eup %4786 }
 0x2b1   : > { %7769 = vst [vmem:[#allocation18_spill] sm:$0xff] %v6712_v17  ;;  %v6717_v9 = vpop.permute.xlu0 %3798  ;;  %v929_v17 = vadd.f32 1.0, %v4785_v35  ;;  %v4789_v35 = vpop.eup %4788 }
 0x2b2   : > { %7772 = vst [vmem:[#allocation19_spill] sm:$0xff] %v6717_v9  ;;  %v7779_v9 = vld [vmem:[#allocation10_spill] sm:$0xff] }
 0x2b3   : > { %v1469_v58 = vadd.f32 %v6439_v12, %v7779_v9  ;;  %v2567_v12 = vadd.f32 %v6573_v51, %v2555_v61  ;;  %v7790_v51 = vld [vmem:[#allocation27_spill] sm:$0xff]  ;;  %4796 = vrcp.f32 %v929_v17  ;;  %v7796_v17 = vld [vmem:[#allocation54_spill] sm:$0xff] }
 0x2b4   : > { %v6721_v28 = vpop.permute.xlu1 %2976  ;;  %v2114_v61 = vadd.f32 %v6485_v56, %v7790_v51  ;;  %v7795_v51 = vld [vmem:[#allocation56_spill] sm:$0xff]  ;;  %4798 = vpow2.f32 %v4318_v27 }
 0x2b5   : > { %v6724_v53 = vpop.permute.xlu0 %3389 }
 0x2b6   : > { %7774 = vst [vmem:[#allocation30_spill] sm:$0xff] %v6724_v53  ;;  %v1163_v53 = vadd.f32 %v7795_v51, %v1145_v59 }
 0x2b8   : > { %v6731_v26 = vpop.permute.xlu1 %3391 }
 0x2b9   : > { %7776 = vst [vmem:[#allocation29_spill] sm:$0xff] %v6731_v26  ;;  %v6735_v60 = vpop.permute.xlu0 %3393  ;;  %v7783_v26 = vld [vmem:[#allocation42_spill] sm:$0xff] }
 0x2ba   : > { %7778 = vst [vmem:[#allocation8_spill] sm:$0xff] %v6735_v60  ;;  %v1487_v36 = vadd.f32 %v7783_v26, %v1469_v58  ;;  %v1532_v60 = vadd.f32 %v7787_v41, %v1516_v13  ;;  %v6758_v26 = vld [vmem:[%s7578_s4 + $0x7] ss:$0 sm:$0xff]  ;;  %v598_v58 = vadd.f32 1.0, %v4787_v34  ;;  %v7791_v13 = vld [vmem:[#allocation39_spill] sm:$0xff]  ;;  %v927_v41 = vadd.f32 1.0, %v4789_v35 }
 0x2bb   : > { %v2969_v23 = vadd.f32 %v6758_v26, %v6666_v46  ;;  %v1164_v25 = vadd.f32 %v7791_v13, %v1146_v20  ;;  %v2970_v46 = vadd.f32 %v6758_v26, %v6677_v8  ;;  %v2971_v19 = vadd.f32 %v6758_v26, %v6681_v14 }
 0x2bc   : > { %v6750_v9 = vpop.permute.xlu1 %3806  ;;  %v4257_v44 = vmul.f32 -1.442695, %v1532_v60  ;;  %4800 = vrcp.f32 %v598_v58  ;;  %v1178_v14 = vadd.f32 %v7801_v54, %v1163_v53  ;;  %v7806_v53 = vld [vmem:[#allocation69_spill] sm:$0xff] }
 0x2bd   : > { %7786 = vst [vmem:[#allocation22_spill] sm:$0xff] %v6750_v9  ;;  %v6760_v18 = vpop.permute.xlu0 %3808  ;;  %v7794_v9 = vld [vmem:[#allocation41_spill] sm:$0xff]  ;;  %v2981_v29 = vadd.f32 %v6691_v45, %v2969_v23  ;;  %v2982_v60 = vadd.f32 %v6696_v49, %v2970_v46  ;;  %4802 = vrcp.f32 %v927_v41  ;;  %v2983_v8 = vadd.f32 %v6721_v28, %v2971_v19  ;;  %v7804_v41 = vld [vmem:[#allocation46_spill] sm:$0xff]  ;;  %v7805_v46 = vld [vmem:[#allocation64_spill] sm:$0xff] }
 0x2be   : > { %7789 = vst [vmem:[#allocation25_spill] sm:$0xff] %v6760_v18  ;;  %v1502_v7 = vadd.f32 %v7794_v9, %v1487_v36  ;;  %v2580_v18 = vadd.f32 %v6611_v2, %v2567_v12  ;;  %v4791_v2 = vpop.eup %4790  ;;  %v7797_v12 = vld [vmem:[#allocation40_spill] sm:$0xff]  ;;  %v7798_v9 = vld [vmem:[#allocation43_spill] sm:$0xff]  ;;  %v7799_v23 = vld [vmem:[#allocation65_spill] sm:$0xff]  ;;  %4804 = vpow2.f32 %v4257_v44  ;;  %v1810_v44 = vadd.f32 %v7806_v53, %v1792_v48 }
 0x2bf   : > { %v1179_v45 = vadd.f32 %v7797_v12, %v1164_v25  ;;  %v1193_v35 = vadd.f32 %v7798_v9, %v1177_v33  ;;  %v1517_v59 = vadd.f32 %v7799_v23, %v1501_v50  ;;  %v928_v25 = vadd.f32 1.0, %v4791_v2  ;;  %v7803_v49 = vld [vmem:[#allocation49_spill] sm:$0xff]  ;;  %v7807_v23 = vld [vmem:[#allocation58_spill] sm:$0xff]  ;;  %v7809_v48 = vld [vmem:[#allocation83_spill] sm:$0xff] }
 0x2c0   : > { %v6772_v34 = vpop.permute.xlu1 %3810  ;;  %v1518_v11 = vadd.f32 %v7796_v17, %v1502_v7  ;;  %v4319_v27 = vmul.f32 -1.442695, %v2580_v18  ;;  %v7800_v7 = vld [vmem:[#allocation45_spill] sm:$0xff]  ;;  %v6788_v17 = vpop.eup %4792  ;;  %v2131_v2 = vadd.f32 %v6485_v56, %v6385_v21  ;;  %v7810_v21 = vld [vmem:[#allocation26_spill] sm:$0xff] }
 0x2c1   : > { %v2986_v20 = vpop.permute.xlu0 %2985  ;;  %v1195_v24 = vadd.f32 %v7800_v7, %v1179_v45  ;;  %v1209_v28 = vadd.f32 %v7804_v41, %v1193_v35  ;;  %v1533_v19 = vadd.f32 %v7805_v46, %v1517_v59  ;;  %v6793_v12 = vpop.eup %4794  ;;  %v2132_v59 = vadd.f32 %v6422_v62, %v2114_v61  ;;  %v7812_v62 = vld [vmem:[#allocation84_spill] sm:$0xff]  ;;  %v7815_v46 = vld [vmem:[#allocation71_spill] sm:$0xff] }
 0x2c2   : > { %v2994_v36 = vadd.f32 %v2986_v20, %v2981_v29  ;;  %v7802_v20 = vld [vmem:[#allocation52_spill] sm:$0xff]  ;;  %v6800_v9 = vpop.eup %4796  ;;  %v1808_v7 = vadd.f32 %v6464_v31, %v7809_v48  ;;  %v1791_v56 = vadd.f32 %v6464_v31, %v7810_v21  ;;  %v7820_v21 = vld [vmem:[#allocation85_spill] sm:$0xff] }
 0x2c3   : > { %v1534_v33 = vadd.f32 %v7802_v20, %v1518_v11  ;;  %v1211_v18 = vadd.f32 %v7803_v49, %v1195_v24  ;;  %v4238_v24 = vmul.f32 -1.442695, %v1209_v28  ;;  %v7814_v49 = vld [vmem:[#allocation59_spill] sm:$0xff] }
 0x2c4   : > { %v4338_v58 = vmul.f32 -1.442695, %v2994_v36  ;;  %v2988_v13 = vpop.permute.xlu1 %2987  ;;  %v1809_v61 = vadd.f32 %v7812_v62, %v1791_v56  ;;  %v7822_v62 = vld [vmem:[#allocation73_spill] sm:$0xff] }
 0x2c5   : > { %v2995_v29 = vadd.f32 %v2988_v13, %v2982_v60  ;;  %v2990_v51 = vpop.permute.xlu0 %2989  ;;  %v1194_v60 = vadd.f32 %v7807_v23, %v1178_v14  ;;  %v4259_v13 = vmul.f32 -1.442695, %v1534_v33  ;;  %v4258_v14 = vmul.f32 -1.442695, %v1533_v19  ;;  %v7816_v19 = vld [vmem:[#allocation75_spill] sm:$0xff] }
 0x2c6   : > { %4806 = vpow2.f32 %v4338_v58  ;;  %v2996_v50 = vadd.f32 %v2990_v51, %v2983_v8  ;;  %v7808_v8 = vld [vmem:[#allocation72_spill] sm:$0xff]  ;;  %v7813_v51 = vld [vmem:[#allocation77_spill] sm:$0xff] }
 0x2c7   : > { %v4339_v36 = vmul.f32 -1.442695, %v2995_v29  ;;  %4808 = vpow2.f32 %v4319_v27  ;;  %v2133_v35 = vadd.f32 %v7808_v8, %v2115_v57  ;;  %v4799_v27 = vpop.eup %4798  ;;  %v7811_v57 = vld [vmem:[#allocation70_spill] sm:$0xff]  ;;  %v2146_v20 = vadd.f32 %v7813_v51, %v2131_v2 }
 0x2c8   : > { %v4340_v11 = vmul.f32 -1.442695, %v2996_v50  ;;  %v6798_v45 = vpop.permute.xlu1 %3402  ;;  %v6811_v54 = vpop.eup %4800  ;;  %v1825_v29 = vadd.f32 %v7811_v57, %v1810_v44  ;;  %v4240_v50 = vmul.f32 -1.442695, %v1211_v18  ;;  %v1210_v41 = vadd.f32 %v7814_v49, %v1194_v60  ;;  %v7817_v44 = vld [vmem:[#allocation74_spill] sm:$0xff] }
 0x2c9   : > { %4810 = vpow2.f32 %v4339_v36  ;;  %v6805_v58 = vpop.permute.xlu0 %3404  ;;  %v2148_v31 = vadd.f32 %v7815_v46, %v2133_v35  ;;  %v2147_v36 = vadd.f32 %v6407_v15, %v2132_v59  ;;  %v6823_v28 = vpop.eup %4802  ;;  %v2615_v23 = vadd.f32 1.0, %v4799_v27  ;;  %v7818_v8 = vld [vmem:[#allocation82_spill] sm:$0xff]  ;;  %v7821_v59 = vld [vmem:[#allocation81_spill] sm:$0xff]  ;;  %v7823_v46 = vld [vmem:[#allocation80_spill] sm:$0xff] }
 0x2ca   : > { %4812 = vpow2.f32 %v4340_v11  ;;  %v1841_v53 = vadd.f32 %v7816_v19, %v1825_v29  ;;  %v1823_v11 = vadd.f32 %v7817_v44, %v1808_v7  ;;  %v4805_v2 = vpop.eup %4804  ;;  %v7819_v60 = vld [vmem:[#allocation78_spill] sm:$0xff]  ;;  %v1824_v15 = vadd.f32 %v7820_v21, %v1809_v61  ;;  %v7829_v21 = vld [vmem:[#allocation87_spill] sm:$0xff] }
 0x2cb   : > { %4814 = vrcp.f32 %v928_v25  ;;  %v2164_v18 = vadd.f32 %v7818_v8, %v2148_v31  ;;  %v2162_v56 = vadd.f32 %v7821_v59, %v2146_v20  ;;  %v2163_v29 = vadd.f32 %v6433_v39, %v2147_v36  ;;  %v7824_v19 = vld [vmem:[#allocation86_spill] sm:$0xff] }
 0x2cc   : > { %v6816_v33 = vpop.permute.xlu1 %3406  ;;  %4816 = vpow2.f32 %v4259_v13  ;;  %v1857_v35 = vadd.f32 %v7819_v60, %v1841_v53  ;;  %v4239_v13 = vmul.f32 -1.442695, %v1210_v41  ;;  %v1839_v51 = vadd.f32 %v7822_v62, %v1823_v11 }
 0x2cd   : > { %v6821_v25 = vpop.permute.xlu0 %3819  ;;  %4818 = vpow2.f32 %v4238_v24  ;;  %v1573_v49 = vadd.f32 1.0, %v4805_v2  ;;  %v2180_v31 = vadd.f32 %v7823_v46, %v2164_v18  ;;  %v1840_v53 = vadd.f32 %v7824_v19, %v1824_v15  ;;  %v7828_v2 = vld [vmem:[#allocation76_spill] sm:$0xff] }
 0x2ce   : > { %4820 = vpow2.f32 %v4258_v14  ;;  %v4278_v20 = vmul.f32 -1.442695, %v1857_v35  ;;  %v2179_v8 = vadd.f32 %v6425_v10, %v2163_v29 }
 0x2cf   : > { %4822 = vpow2.f32 %v4240_v50  ;;  %v7825_v50 = vld [vmem:[#allocation79_spill] sm:$0xff]  ;;  %v4297_v60 = vmul.f32 -1.442695, %v2180_v31  ;;  %v1856_v15 = vadd.f32 %v7829_v21, %v1840_v53 }
 0x2d0   : > { %v4807_v48 = vpop.eup %4806  ;;  %v6831_v57 = vpop.permute.xlu1 %3821  ;;  %4824 = vrcp.f32 %v2615_v23  ;;  %v2178_v41 = vadd.f32 %v7825_v50, %v2162_v56 }
 0x2d1   : > { %v3030_v7 = vadd.f32 1.0, %v4807_v48  ;;  %v6834_v27 = vpop.permute.xlu0 %3823  ;;  %v4809_v24 = vpop.eup %4808  ;;  %v1855_v48 = vadd.f32 %v7828_v2, %v1839_v51  ;;  %v4277_v46 = vmul.f32 -1.442695, %v1856_v15 }
 0x2d2   : > { %v2616_v11 = vadd.f32 1.0, %v4809_v24  ;;  %v4295_v59 = vmul.f32 -1.442695, %v2178_v41 }
 0x2d3   : > { %v4811_v14 = vpop.eup %4810  ;;  %4826 = vrcp.f32 %v3030_v7  ;;  %v4276_v24 = vmul.f32 -1.442695, %v1855_v48 }
 0x2d4   : > { %v4813_v61 = vpop.eup %4812  ;;  %v3031_v44 = vadd.f32 1.0, %v4811_v14  ;;  %v6840_v39 = vpop.permute.xlu1 %3290  ;;  %4828 = vpow2.f32 %v4239_v13  ;;  %v4296_v13 = vmul.f32 -1.442695, %v2179_v8 }
 0x2d5   : > { %7826 = vst [vmem:[#allocation21_spill] sm:$0xff] %v6840_v39  ;;  %v4815_v36 = vpop.eup %4814  ;;  %v6843_v23 = vpop.permute.xlu0 %3292  ;;  %v3032_v18 = vadd.f32 1.0, %v4813_v61 }
 0x2d6   : > { %7827 = vst [vmem:[#allocation34_spill] sm:$0xff] %v6843_v23  ;;  %4830 = vrcp.f32 %v3031_v44  ;;  %v4817_v35 = vpop.eup %4816 }
 0x2d7   : > { %4832 = vrcp.f32 %v1573_v49  ;;  %v4819_v7 = vpop.eup %4818  ;;  %v1575_v49 = vadd.f32 1.0, %v4817_v35 }
 0x2d8   : > { %4834 = vpow2.f32 %v4278_v20  ;;  %v6847_v56 = vpop.permute.xlu1 %3294  ;;  %v4821_v29 = vpop.eup %4820  ;;  %v1250_v20 = vadd.f32 1.0, %v4819_v7 }
 0x2d9   : > { %7830 = vst [vmem:[#allocation36_spill] sm:$0xff] %v6847_v56  ;;  %4836 = vrcp.f32 %v2616_v11  ;;  %v624_v10 = vpop.permute.xlu0 %623  ;;  %v4823_v62 = vpop.eup %4822  ;;  %v1574_v19 = vadd.f32 1.0, %v4821_v29 }
 0x2da   : > { %4838 = vrcp.f32 %v3032_v18  ;;  %v6850_v51 = vmul.f32 %v6793_v12, %v624_v10  ;;  %v6852_v14 = vpop.eup %4824  ;;  %v1252_v18 = vadd.f32 1.0, %v4823_v62 }
 0x2db   : > { %4840 = vpow2.f32 %v4297_v60  ;;  %v7620_v2 = vrot.slane %v6852_v14, 2 }
 0x2dc   : > { %4842 = vpow2.f32 %v4295_v59  ;;  %v626_v31 = vpop.permute.xlu1 %625  ;;  %v696_v8 = vrot.slane %v6850_v51, 6 }
 0x2dd   : > { %v4827_v61 = vpop.eup %4826  ;;  %4844 = vpow2.f32 %v4296_v13  ;;  %v6855_v53 = vmul.f32 %v6811_v54, %v626_v31  ;;  %v628_v50 = vpop.permute.xlu0 %627 }
 0x2de   : > { %4846 = vpow2.f32 %v4276_v24  ;;  %v6858_v41 = vmul.f32 %v6788_v17, %v628_v50  ;;  %v3042_v12 = vrot.slane %v4827_v61, 2  ;;  %v4829_v44 = vpop.eup %4828 }
 0x2df   : > { %v697_v11 = vrot.slane %v6855_v53, 6  ;;  %4848 = vpow2.f32 %v4277_v46  ;;  %v1251_v62 = vadd.f32 1.0, %v4829_v44 }
 0x2e0   : > { %v6863_v48 = vpop.eup %4830  ;;  %v699_v54 = vrot.slane %v6858_v41, 6  ;;  %v956_v60 = vpop.permute.xlu1 %955  ;;  %3047 = vrot.lane.b32.xlu1 %v3042_v12, %s5085_s16  ;;  %4850 = vrcp.f32 %v1575_v49 }
 0x2e1   : > { %v4833_v17 = vpop.eup %4832  ;;  %v698_v35 = vsel %vm647_vm7, %v696_v8, %v697_v11  ;;  %v6868_v21 = vmul.f32 %v4815_v36, %v956_v60  ;;  %v954_v15 = vpop.permute.xlu0 %953  ;;  %v7619_v59 = vrot.slane %v6863_v48, 2  ;;  %4852 = vrcp.f32 %v1574_v19 }
 0x2e2   : > { %v4835_v7 = vpop.eup %4834  ;;  %v704_v13 = vsel %vm703_vm8, %v698_v35, 0.0  ;;  %v700_v10 = vsel %vm647_vm7, %v697_v11, %v699_v54  ;;  %v6874_v29 = vmul.f32 %v6823_v28, %v954_v15  ;;  %4854 = vrcp.f32 %v1250_v20 }
 0x2e3   : > { %v4837_v24 = vpop.eup %4836  ;;  %v705_v49 = vsel %vm703_vm8, %v700_v10, 0.0  ;;  %v7831_v36 = vrot.slane %v6635_v47, 2  ;;  %v1020_v19 = vrot.slane %v6868_v21, 6  ;;  %v3044_v28 = vsel %vm505_vm5, %v3042_v12, %v7619_v59 }
 0x2e4   : > { %v4839_v31 = vpop.eup %4838  ;;  %v706_v61 = vadd.f32 %v705_v49, %v704_v13  ;;  %v1019_v50 = vrot.slane %v6874_v29, 6  ;;  %v1277_v8 = vpop.permute.xlu1 %1276  ;;  %4856 = vrcp.f32 %v1252_v18  ;;  %3049 = vrot.lane.b32.xlu0 %v3044_v28, %s5085_s16  ;;  %v2629_v60 = vrot.slane %v4837_v24, 2 }
 0x2e5   : > { %v2628_v46 = vsel %vm505_vm5, %v7831_v36, %v7620_v2  ;;  %v4841_v20 = vpop.eup %4840  ;;  %v958_v47 = vpop.permute.xlu0 %957  ;;  %4858 = vrcp.f32 %v1251_v62  ;;  %v3045_v15 = vrot.slane %v4839_v31, 2  ;;  %v1898_v10 = vadd.f32 1.0, %v4835_v7 }
 0x2e6   : > { %2633 = vrot.lane.b32.xlu1 %v2628_v46, %s5085_s16  ;;  %v4843_v44 = vpop.eup %4842  ;;  %v707_v11 = vrot.slane %v706_v61, 4  ;;  %v6890_v54 = vmul.f32 %v6800_v9, %v958_v47  ;;  %v1021_v36 = vsel %vm647_vm7, %v1019_v50, %v1020_v19  ;;  %v7832_v62 = vrot.slane %v6356_v43, 1 }
 0x2e7   : > { %v4845_v35 = vpop.eup %4844  ;;  %v2219_v46 = vadd.f32 1.0, %v4843_v44  ;;  %v1026_v50 = vsel %vm703_vm8, %v1021_v36, 0.0  ;;  %4860 = vrcp.f32 %v1898_v10  ;;  %v2221_v2 = vadd.f32 1.0, %v4841_v20 }
 0x2e8   : > { %v4847_v13 = vpop.eup %4846  ;;  %v708_v49 = vadd.f32 %v707_v11, %v706_v61  ;;  %v1022_v12 = vrot.slane %v6890_v54, 6  ;;  %v1281_v18 = vpop.permute.xlu1 %1280  ;;  %3053 = vrot.lane.b32.xlu0 %v3045_v15, %s5085_s16  ;;  %v2220_v47 = vadd.f32 1.0, %v4845_v35  ;;  %v3702_v7 = vsel %vm487_vm4, %v5641_v32, %v7832_v62 }
 0x2e9   : > { %v1600_v28 = vpop.permute.xlu0 %1599  ;;  %v4849_v9 = vpop.eup %4848  ;;  %v1896_v62 = vadd.f32 1.0, %v4847_v13  ;;  %4862 = vrcp.f32 %v2219_v46  ;;  %v7834_v13 = vrot.slane %v6863_v48, 2 }
 0x2ea   : > { %2637 = vrot.lane.b32.xlu1 %v2629_v60, %s5085_s16  ;;  %v1023_v24 = vsel %vm647_vm7, %v1020_v19, %v1022_v12  ;;  %v4851_v31 = vpop.eup %4850  ;;  %v709_v61 = vrot.slane %v708_v49, 2  ;;  %v6903_v59 = vmul.f32 %v4833_v17, %v1600_v28  ;;  %v7833_v19 = vrot.slane %v6852_v14, 2 }
 0x2eb   : > { %v1027_v11 = vsel %vm703_vm8, %v1023_v24, 0.0  ;;  %v4853_v44 = vpop.eup %4852  ;;  %v1897_v23 = vadd.f32 1.0, %v4849_v9  ;;  %4864 = vrcp.f32 %v2220_v47  ;;  %v3046_v46 = vsel %vm505_vm5, %v7834_v13, %v3045_v15 }
 0x2ec   : > { %v1028_v56 = vadd.f32 %v1027_v11, %v1026_v50  ;;  %v1602_v35 = vpop.permute.xlu1 %1601  ;;  %v2630_v12 = vsel %vm505_vm5, %v7833_v19, %v2629_v60  ;;  %v4855_v32 = vpop.eup %4854  ;;  %v1665_v14 = vrot.slane %v6903_v59, 6  ;;  %4866 = vrcp.f32 %v2221_v2 }
 0x2ed   : > { %v6909_v36 = vmul.f32 %v4853_v44, %v1602_v35  ;;  %2635 = vrot.lane.b32.xlu0 %v2630_v12, %s5085_s16  ;;  %v1604_v17 = vpop.permute.xlu0 %1603  ;;  %v6912_v10 = vmul.f32 %v4855_v32, %v1277_v8  ;;  %4868 = vrcp.f32 %v1896_v62 }
 0x2ee   : > { %3707 = vrot.lane.b32.xlu1 %v3702_v7, %s5085_s16  ;;  %v1029_v20 = vrot.slane %v1028_v56, 4  ;;  %v6914_v28 = vmul.f32 %v4851_v31, %v1604_v17  ;;  %v4857_v24 = vpop.eup %4856  ;;  %v710_v7 = vadd.f32 %v709_v61, %v708_v49  ;;  %4870 = vrcp.f32 %v1897_v23 }
 0x2ef   : > { %v1666_v60 = vrot.slane %v6909_v36, 6  ;;  %v6921_v50 = vmul.f32 %v4857_v24, %v1281_v18  ;;  %v4859_v31 = vpop.eup %4858  ;;  %v1342_v11 = vrot.slane %v6912_v10, 6  ;;  %v3306_v23 = vrot.slane %v6328_v63, 2 }
 0x2f0   : > { %v1030_v9 = vadd.f32 %v1029_v20, %v1028_v56  ;;  %v1668_v8 = vrot.slane %v6914_v28, 6  ;;  %v1923_v47 = vpop.permute.xlu1 %1922  ;;  %v711_v18 = vrot.slane %v710_v7, 1  ;;  %v3307_v17 = vrot.slane %v6334_v38, 2 }
 0x2f1   : > { %v1667_v49 = vsel %vm647_vm7, %v1665_v14, %v1666_v60  ;;  %3296 = vrot.lane.b32.xlu0 %v6493_v16, %s5085_s16  ;;  %v1279_v61 = vpop.permute.xlu0 %1278  ;;  %v1345_v19 = vrot.slane %v6921_v50, 6  ;;  %v4861_v20 = vpop.eup %4860 }
 0x2f2   : > { %3051 = vrot.lane.b32.xlu1 %v3046_v46, %s5085_s16  ;;  %v1031_v48 = vrot.slane %v1030_v9, 2  ;;  %v1672_v15 = vsel %vm703_vm8, %v1667_v49, 0.0  ;;  %v1669_v56 = vsel %vm647_vm7, %v1666_v60, %v1668_v8  ;;  %v6930_v2 = vmul.f32 %v4859_v31, %v1279_v61 }
 0x2f3   : > { %v1673_v44 = vsel %vm703_vm8, %v1669_v56, 0.0  ;;  %v4863_v46 = vpop.eup %4862 }
 0x2f4   : > { %v1032_v35 = vadd.f32 %v1031_v48, %v1030_v9  ;;  %v1674_v12 = vadd.f32 %v1673_v44, %v1672_v15  ;;  %v1343_v16 = vrot.slane %v6930_v2, 6  ;;  %v1927_v32 = vpop.permute.xlu1 %1926  ;;  %v712_v9 = vadd.f32 %v711_v18, %v710_v7 }
 0x2f5   : > { %3709 = vrot.lane.b32.xlu0 %v6539_v1, %s5085_s16  ;;  %v2246_v62 = vpop.permute.xlu0 %2245  ;;  %v3309_v1 = vrot.slane %v6345_v6, 2  ;;  %v4865_v31 = vpop.eup %4864 }
 0x2f6   : > { %3711 = vrot.lane.b32.xlu1 %v6548_v5, %s5085_s16  ;;  %v1033_v24 = vrot.slane %v1032_v35, 1  ;;  %v1675_v14 = vrot.slane %v1674_v12, 4  ;;  %v1344_v60 = vsel %vm647_vm7, %v1342_v11, %v1343_v16  ;;  %v1346_v13 = vsel %vm647_vm7, %v1343_v16, %v1345_v19  ;;  %v4867_v18 = vpop.eup %4866 }
 0x2f7   : > { %v1349_v8 = vsel %vm703_vm8, %v1344_v60, 0.0  ;;  %v1350_v5 = vsel %vm703_vm8, %v1346_v13, 0.0  ;;  %v6947_v15 = vmul.f32 %v4863_v46, %v2246_v62  ;;  %v4869_v60 = vpop.eup %4868  ;;  %v3308_v13 = vsel %vm505_vm5, %v3306_v23, %v3307_v17 }
 0x2f8   : > { %v1034_v49 = vadd.f32 %v1033_v24, %v1032_v35  ;;  %v1676_v61 = vadd.f32 %v1675_v14, %v1674_v12  ;;  %v1351_v48 = vadd.f32 %v1350_v5, %v1349_v8  ;;  %v2248_v56 = vpop.permute.xlu1 %2247  ;;  %v3310_v24 = vsel %vm505_vm5, %v3307_v17, %v3309_v1  ;;  %v4871_v46 = vpop.eup %4870 }
 0x2f9   : > { %v6950_v11 = vmul.f32 %v4865_v31, %v2248_v56  ;;  %3713 = vrot.lane.b32.xlu0 %v6532_v55, %s5085_s16  ;;  %v2250_v7 = vpop.permute.xlu0 %2249  ;;  %v2311_v35 = vrot.slane %v6947_v15, 6  ;;  %v3723_v55 = vrot.slane %v6356_v43, 2  ;;  %v6964_v8 = vmul.f32 %v4861_v20, %v1927_v32 }
 0x2fa   : > { %3311 = vrot.lane.b32.xlu1 %v3306_v23, %s7656_s17  ;;  %v1038_v44 = vadd.f32 %v1034_v49, %v712_v9  ;;  %v1677_v19 = vrot.slane %v1676_v61, 2  ;;  %v1352_v16 = vrot.slane %v1351_v48, 4  ;;  %v6956_v62 = vmul.f32 %v4867_v18, %v2250_v7 }
 0x2fb   : > { %v2312_v12 = vrot.slane %v6950_v11, 6  ;;  %v6962_v9 = vmul.f32 %v4869_v60, %v1923_v47  ;;  %v3726_v47 = vrot.slane %v6376_v40, 2  ;;  %v3724_v20 = vrot.slane %v6368_v42, 2 }
 0x2fc   : > { %v1353_v14 = vadd.f32 %v1352_v16, %v1351_v48  ;;  %v2314_v31 = vrot.slane %v6956_v62, 6  ;;  %v1678_v56 = vadd.f32 %v1677_v19, %v1676_v61  ;;  %v1991_v61 = vrot.slane %v6964_v8, 6 }
 0x2fd   : > { %v2313_v5 = vsel %vm647_vm7, %v2311_v35, %v2312_v12  ;;  %3313 = vrot.lane.b32.xlu0 %v3308_v13, %s7656_s17  ;;  %v1925_v49 = vpop.permute.xlu0 %1924  ;;  %v1988_v16 = vrot.slane %v6962_v9, 6 }
 0x2fe   : > { %3315 = vrot.lane.b32.xlu1 %v3310_v24, %s7656_s17  ;;  %v1354_v48 = vrot.slane %v1353_v14, 2  ;;  %v2318_v23 = vsel %vm703_vm8, %v2313_v5, 0.0  ;;  %v6970_v17 = vmul.f32 %v4871_v46, %v1925_v49  ;;  %v2315_v7 = vsel %vm647_vm7, %v2312_v12, %v2314_v31 }
 0x2ff   : > { %v2319_v32 = vsel %vm703_vm8, %v2315_v7, 0.0  ;;  %v1679_v35 = vrot.slane %v1678_v56, 1  ;;  %v3727_v46 = vsel %vm505_vm5, %v3724_v20, %v3726_v47 }
 0x300   : > { %v1355_v18 = vadd.f32 %v1354_v48, %v1353_v14  ;;  %v2320_v19 = vadd.f32 %v2319_v32, %v2318_v23  ;;  %v1989_v60 = vrot.slane %v6970_v17, 6  ;;  %v3725_v48 = vsel %vm505_vm5, %v3723_v55, %v3724_v20 }
 0x301   : > { %3317 = vrot.lane.b32.xlu0 %v3309_v1, %s7656_s17  ;;  %v1680_v7 = vadd.f32 %v1679_v35, %v1678_v56 }
 0x302   : > { %3728 = vrot.lane.b32.xlu1 %v3723_v55, %s7656_s17  ;;  %v1356_v12 = vrot.slane %v1355_v18, 1  ;;  %v2321_v24 = vrot.slane %v2320_v19, 4  ;;  %v1990_v14 = vsel %vm647_vm7, %v1988_v16, %v1989_v60  ;;  %v1992_v13 = vsel %vm647_vm7, %v1989_v60, %v1991_v61 }
 0x303   : > { %v1995_v31 = vsel %vm703_vm8, %v1990_v14, 0.0  ;;  %v1996_v49 = vsel %vm703_vm8, %v1992_v13, 0.0  ;;  %v3327_v16 = vrot.slane %v6328_v63, 3  ;;  %v988_v13 = vsub.f32 1.0, %v6890_v54 }
 0x304   : > { %v1357_v5 = vadd.f32 %v1356_v12, %v1355_v18  ;;  %v2322_v23 = vadd.f32 %v2321_v24, %v2320_v19  ;;  %v1997_v1 = vadd.f32 %v1996_v49, %v1995_v31  ;;  %v986_v12 = vsub.f32 1.0, %v6874_v29 }
 0x305   : > { %3730 = vrot.lane.b32.xlu0 %v3725_v48, %s7656_s17  ;;  %v659_v31 = vsub.f32 1.0, %v6858_v41  ;;  %v987_v49 = vsub.f32 1.0, %v6868_v21  ;;  %v7836_v48 = vld [vmem:[#allocation66_spill] sm:$0xff] }
 0x306   : > { %3732 = vrot.lane.b32.xlu1 %v3727_v46, %s7656_s17  ;;  %v1361_v32 = vadd.f32 %v1357_v5, %v1038_v44  ;;  %v2323_v61 = vrot.slane %v2322_v23, 2  ;;  %v1998_v60 = vrot.slane %v1997_v1, 4  ;;  %v657_v46 = vsub.f32 1.0, %v6850_v51 }
 0x308   : > { %v1684_v39 = vadd.f32 %v1680_v7, %v1361_v32  ;;  %v1999_v18 = vadd.f32 %v1998_v60, %v1997_v1  ;;  %v2324_v55 = vadd.f32 %v2323_v61, %v2322_v23  ;;  %v7838_v32 = vld [vmem:[#allocation88_spill] sm:$0xff]  ;;  %v7839_v61 = vld [vmem:[#allocation102_spill] sm:$0xff] }
 0x309   : > { %3734 = vrot.lane.b32.xlu0 %v3726_v47, %s7656_s17 }
 0x30a   : > { %3333 = vrot.lane.b32.xlu1 %v3327_v16, %s7835_s22  ;;  %v2000_v20 = vrot.slane %v1999_v18, 2  ;;  %v2325_v44 = vrot.slane %v2324_v55, 1 }
 0x30c   : > { %v2001_v19 = vadd.f32 %v2000_v20, %v1999_v18  ;;  %v2326_v24 = vadd.f32 %v2325_v44, %v2324_v55  ;;  %v7841_v55 = vld [vmem:[#allocation89_spill] sm:$0xff] }
 0x30d   : > { %641 = vperm.xlu0 %4727, %v6855_v53  }
 0x30e   : > { %637 = vperm.xlu1 %4726, %v6850_v51   ;;  %v2002_v56 = vrot.slane %v2001_v19, 1 }
 0x310   : > { %v2003_v35 = vadd.f32 %v2002_v56, %v2001_v19  ;;  %v7842_v19 = vld [vmem:[#allocation60_spill] sm:$0xff]  ;;  %v7843_v56 = vld [vmem:[#allocation106_spill] sm:$0xff] }
 0x311   : > { %971 = vperm.xlu0 %4727, %v6868_v21   ;;  %v7837_v21 = vld [vmem:[#allocation47_spill] sm:$0xff] }
 0x312   : > { %645 = vperm.xlu1 %4726, %v6858_v41   ;;  %v2007_v14 = vadd.f32 %v2003_v35, %v1684_v39  ;;  %v658_v39 = vsub.f32 1.0, %v6855_v53  ;;  %v1632_v53 = vsub.f32 1.0, %v6903_v59  ;;  %v2885_v41 = vadd.f32 %v6758_v26, %v6613_v0  ;;  %v7840_v0 = vld [vmem:[#allocation105_spill] sm:$0xff] }
 0x313   : > { %v7844_v35 = vld [vmem:[#allocation109_spill] sm:$0xff] }
 0x314   : > { %v2330_v47 = vadd.f32 %v2326_v24, %v2007_v14  ;;  %v2906_v7 = vadd.f32 %v6626_v37, %v2885_v41  ;;  %v7845_v24 = vld [vmem:[#allocation90_spill] sm:$0xff]  ;;  %v1310_v14 = vsub.f32 1.0, %v6930_v2 }
 0x315   : > { %991 = vperm.xlu0 %4727, %v986_v12   ;;  %v1309_v12 = vsub.f32 1.0, %v6912_v10 }
 0x316   : > { %967 = vperm.xlu1 %4726, %v6874_v29   ;;  %3998 = vst.msk [vmem:[%s374_s25] sm:$0x1] %vm3997_vm9, %v2330_v47  ;;  %v4960_v29 = vld [vmem:[%s7578_s4 + $0x6] ss:$0 sm:$0xff]  ;;  %v2928_v18 = vadd.f32 %v7840_v0, %v2906_v7  ;;  %v7846_v47 = vld [vmem:[#allocation50_spill] sm:$0xff]  ;;  %s4668_s25 = smul.u32 1536, %s5166_s13 }
 0x317   : > { %v2469_v5 = vadd.f32 %v4960_v29, %v6523_v22  ;;  %v2445_v23 = vadd.f32 %v4960_v29, %v7837_v21  ;;  %v2447_v44 = vadd.f32 %v4960_v29, %v7842_v19  ;;  %v7853_v21 = vld [vmem:[#allocation67_spill] sm:$0xff] }
 0x318   : > { %v2950_v37 = vadd.f32 %v7844_v35, %v2928_v18  ;;  %v7858_v18 = vld [vmem:[#allocation104_spill] sm:$0xff]  ;;  %v7860_v19 = vld [vmem:[#allocation99_spill] sm:$0xff]  ;;  %s7453_s0 = scalar_lea.hbm %s7580_s6, %s4668_s25 }
 0x319   : > { %1001 = vperm.xlu0 %4727, %v988_v13   ;;  %v2446_v13 = vadd.f32 %v4960_v29, %v7846_v47  ;;  %v2862_v29 = vadd.f32 %v6758_v26, %v7853_v21  ;;  %v7862_v35 = vld [vmem:[#allocation108_spill] sm:$0xff]  ;;  %v1955_v21 = vsub.f32 1.0, %v6962_v9 }
 0x31a   : > { %975 = vperm.xlu1 %4726, %v6890_v54   ;;  %v2490_v54 = vadd.f32 %v6466_v52, %v2469_v5  ;;  %v2861_v52 = vadd.f32 %v6758_v26, %v7836_v48  ;;  %v7848_v5 = vld [vmem:[#allocation110_spill] sm:$0xff] }
 0x31c   : > { %v2512_v51 = vadd.f32 %v6478_v4, %v2490_v54  ;;  %v2886_v1 = vadd.f32 %v6618_v30, %v2861_v52  ;;  %v7849_v54 = vld [vmem:[#allocation91_spill] sm:$0xff]  ;;  %v4334_v52 = vmul.f32 -1.442695, %v2950_v37 }
 0x31d   : > { %667 = vperm.xlu0 %4727, %v658_v39  }
 0x31e   : > { %662 = vperm.xlu1 %4726, %v657_v46   ;;  %v2534_v22 = vadd.f32 %v6503_v3, %v2512_v51  ;;  %v2470_v3 = vadd.f32 %v7838_v32, %v2445_v23  ;;  %v2907_v60 = vadd.f32 %v7839_v61, %v2886_v1  ;;  %v7847_v46 = vld [vmem:[#allocation93_spill] sm:$0xff]  ;;  %v7850_v51 = vld [vmem:[#allocation68_spill] sm:$0xff]  ;;  %v7855_v1 = vld [vmem:[#allocation94_spill] sm:$0xff] }
 0x31f   : > { %v2472_v39 = vadd.f32 %v7847_v46, %v2447_v44  ;;  %v7854_v23 = vld [vmem:[#allocation101_spill] sm:$0xff] }
 0x320   : > { %v4313_v4 = vmul.f32 -1.442695, %v2534_v22  ;;  %v2491_v20 = vadd.f32 %v7841_v55, %v2470_v3  ;;  %v2929_v30 = vadd.f32 %v7843_v56, %v2907_v60  ;;  %v2863_v22 = vadd.f32 %v6758_v26, %v7850_v51  ;;  %v7856_v32 = vld [vmem:[#allocation97_spill] sm:$0xff]  ;;  %v7857_v60 = vld [vmem:[#allocation100_spill] sm:$0xff]  ;;  %v7861_v56 = vld [vmem:[#allocation103_spill] sm:$0xff] }
 0x321   : > { %1290 = vperm.xlu0 %4727, %v6912_v10   ;;  %v7852_v10 = vld [vmem:[#allocation95_spill] sm:$0xff]  ;;  %v2887_v0 = vadd.f32 %v7857_v60, %v2862_v29  ;;  %v1633_v26 = vsub.f32 1.0, %v6909_v36  ;;  %v2279_v60 = vsub.f32 1.0, %v6950_v11 }
 0x322   : > { %672 = vperm.xlu1 %4726, %v659_v31   ;;  %4872 = vpow2.f32 %v4313_v4  ;;  %v2951_v31 = vadd.f32 %v7848_v5, %v2929_v30  ;;  %v2493_v48 = vadd.f32 %v7852_v10, %v2472_v39  ;;  %v2888_v4 = vadd.f32 %v7854_v23, %v2863_v22 }
 0x323   : > { %4874 = vpow2.f32 %v4334_v52  ;;  %v2908_v30 = vadd.f32 %v7861_v56, %v2887_v0  ;;  %v2278_v22 = vsub.f32 1.0, %v6947_v15 }
 0x324   : > { %v2515_v3 = vadd.f32 %v7856_v32, %v2493_v48  ;;  %v2909_v55 = vadd.f32 %v7858_v18, %v2888_v4  ;;  %v2280_v48 = vsub.f32 1.0, %v6956_v62  ;;  %v2632_v4 = vpop.permute.xlu0 %2631 }
 0x325   : > { %1298 = vperm.xlu0 %4727, %v6921_v50  }
 0x326   : > { %996 = vperm.xlu1 %4726, %v987_v49   ;;  %v2537_v44 = vadd.f32 %v7860_v19, %v2515_v3  ;;  %v2931_v37 = vadd.f32 %v7862_v35, %v2909_v55 }
 0x328   : > { %v4316_v39 = vmul.f32 -1.442695, %v2537_v44 }
 0x329   : > { %1617 = vperm.xlu0 %4727, %v6909_v36  }
 0x32a   : > { %1613 = vperm.xlu1 %4726, %v6903_v59   ;;  %v1634_v59 = vsub.f32 1.0, %v6914_v28 }
 0x32d   : > { %1637 = vperm.xlu0 %4727, %v1632_v53   ;;  %v7851_v53 = vld [vmem:[#allocation92_spill] sm:$0xff] }
 0x32e   : > { %1621 = vperm.xlu1 %4726, %v6914_v28   ;;  %v2513_v28 = vadd.f32 %v7845_v24, %v2491_v20  ;;  %v2471_v41 = vadd.f32 %v7851_v53, %v2446_v13  ;;  %v7859_v20 = vld [vmem:[#allocation96_spill] sm:$0xff]  ;;  %v7863_v24 = vld [vmem:[#allocation98_spill] sm:$0xff] }
 0x32f   : > { %v7865_v13 = vld [vmem:[#allocation112_spill] sm:$0xff] }
 0x330   : > { %v2535_v49 = vadd.f32 %v7849_v54, %v2513_v28  ;;  %v2492_v7 = vadd.f32 %v7855_v1, %v2471_v41  ;;  %v2953_v46 = vadd.f32 %v7865_v13, %v2931_v37  ;;  %v7868_v37 = vld [vmem:[#allocation30_spill] sm:$0xff] }
 0x331   : > { %1647 = vperm.xlu0 %4727, %v1634_v59   ;;  %v4335_v59 = vmul.f32 -1.442695, %v2951_v31  ;;  %v7866_v31 = vld [vmem:[#allocation111_spill] sm:$0xff] }
 0x332   : > { %1294 = vperm.xlu1 %4726, %v6930_v2   ;;  %v1311_v2 = vsub.f32 1.0, %v6921_v50  ;;  %v4314_v61 = vmul.f32 -1.442695, %v2535_v49  ;;  %v2514_v50 = vadd.f32 %v7859_v20, %v2492_v7  ;;  %v4337_v49 = vmul.f32 -1.442695, %v2953_v46 }
 0x333   : > { %4876 = vpow2.f32 %v4335_v59  ;;  %v7087_v20 = vld [vmem:[%s7578_s4 + $0x8] ss:$0 sm:$0xff] }
 0x334   : > { %v2536_v28 = vadd.f32 %v7863_v24, %v2514_v50  ;;  %4878 = vpow2.f32 %v4314_v61  ;;  %v7869_v24 = vld [vmem:[#allocation16_spill] sm:$0xff] }
 0x335   : > { %1319 = vperm.xlu0 %4727, %v1310_v14   ;;  %v7864_v14 = vld [vmem:[#allocation107_spill] sm:$0xff]  ;;  %4880 = vpow2.f32 %v4316_v39  ;;  %v7870_v39 = vld [vmem:[#allocation17_spill] sm:$0xff] }
 0x336   : > { %1314 = vperm.xlu1 %4726, %v1309_v12   ;;  %v4873_v12 = vpop.eup %4872  ;;  %v2930_v47 = vadd.f32 %v7864_v14, %v2908_v30  ;;  %v4315_v54 = vmul.f32 -1.442695, %v2536_v28  ;;  %v3387_v28 = vadd.f32 %v7087_v20, %v7869_v24 }
 0x337   : > { %v2593_v5 = vadd.f32 1.0, %v4873_v12  ;;  %v4875_v53 = vpop.eup %4874 }
 0x338   : > { %v2952_v36 = vadd.f32 %v7866_v31, %v2930_v47  ;;  %v3009_v10 = vadd.f32 1.0, %v4875_v53  ;;  %v7872_v53 = vld [vmem:[#allocation8_spill] sm:$0xff] }
 0x339   : > { %1936 = vperm.xlu0 %4727, %v6962_v9   ;;  %4882 = vrcp.f32 %v2593_v5  ;;  %v3388_v5 = vadd.f32 %v7087_v20, %v7870_v39 }
 0x33a   : > { %1324 = vperm.xlu1 %4726, %v1311_v2   ;;  %v4336_v51 = vmul.f32 -1.442695, %v2952_v36  ;;  %4884 = vpow2.f32 %v4315_v54  ;;  %v7871_v54 = vld [vmem:[#allocation29_spill] sm:$0xff] }
 0x33b   : > { %4886 = vpow2.f32 %v4337_v49  ;;  %v3399_v49 = vadd.f32 %v7871_v54, %v3387_v28 }
 0x33c   : > { %4888 = vpow2.f32 %v4336_v51 }
 0x33d   : > { %1944 = vperm.xlu0 %4727, %v6964_v8   ;;  %v4877_v41 = vpop.eup %4876  ;;  %4890 = vrcp.f32 %v3009_v10  ;;  %v3412_v10 = vadd.f32 %v6805_v58, %v3399_v49 }
 0x33e   : > { %1642 = vperm.xlu1 %4726, %v1633_v26   ;;  %v4879_v52 = vpop.eup %4878  ;;  %v3010_v2 = vadd.f32 1.0, %v4877_v41  ;;  %v3400_v41 = vadd.f32 %v7872_v53, %v3388_v5 }
 0x33f   : > { %v2594_v29 = vadd.f32 1.0, %v4879_v52  ;;  %v4881_v23 = vpop.eup %4880 }
 0x340   : > { %4892 = vrcp.f32 %v3010_v2  ;;  %v2596_v3 = vadd.f32 1.0, %v4881_v23 }
 0x341   : > { %2263 = vperm.xlu0 %4727, %v6950_v11   ;;  %4894 = vrcp.f32 %v2594_v29  ;;  %v7867_v11 = vld [vmem:[#allocation15_spill] sm:$0xff] }
 0x342   : > { %2259 = vperm.xlu1 %4726, %v6947_v15   ;;  %v1956_v15 = vsub.f32 1.0, %v6970_v17  ;;  %4896 = vrcp.f32 %v2596_v3  ;;  %v3386_v26 = vadd.f32 %v7087_v20, %v7867_v11  ;;  %v7873_v3 = vld [vmem:[#allocation28_spill] sm:$0xff]  ;;  %v7876_v11 = vld [vmem:[#allocation22_spill] sm:$0xff] }
 0x343   : > { %v4883_v1 = vpop.eup %4882 }
 0x344   : > { %v4885_v7 = vpop.eup %4884  ;;  %v7079_v59 = vmul.f32 %v4883_v1, %v2632_v4  ;;  %v3398_v12 = vadd.f32 %v7868_v37, %v3386_v26  ;;  %v7115_v1 = vld [vmem:[%s7578_s4 + $0x9] ss:$0 sm:$0xff] }
 0x345   : > { %2283 = vperm.xlu0 %4727, %v2278_v22   ;;  %v4887_v32 = vpop.eup %4886  ;;  %v2595_v61 = vadd.f32 1.0, %v4885_v7  ;;  %v3413_v7 = vadd.f32 %v6816_v33, %v3400_v41 }
 0x346   : > { %2267 = vperm.xlu1 %4726, %v6956_v62   ;;  %v1957_v62 = vsub.f32 1.0, %v6964_v8  ;;  %v4889_v9 = vpop.eup %4888  ;;  %v2676_v18 = vsub.f32 1.0, %v7079_v59  ;;  %v3411_v31 = vadd.f32 %v6798_v45, %v3398_v12  ;;  %v3328_v45 = vrot.slane %v6334_v38, 3 }
 0x347   : > { %v3011_v55 = vadd.f32 1.0, %v4889_v9  ;;  %v4891_v8 = vpop.eup %4890  ;;  %4898 = vrcp.f32 %v2595_v61  ;;  %v2721_v58 = vrot.slane %v7079_v59, 6  ;;  %v3803_v9 = vadd.f32 %v7115_v1, %v7873_v3  ;;  %v7874_v61 = vld [vmem:[#allocation18_spill] sm:$0xff] }
 0x348   : > { %v4364_v12 = vmul.f32 -1.442695, %v3413_v7  ;;  %v3744_v3 = vrot.slane %v6356_v43, 3 }
 0x349   : > { %2293 = vperm.xlu0 %4727, %v2280_v48   ;;  %v3815_v26 = vadd.f32 %v7876_v11, %v3803_v9 }
 0x34a   : > { %1940 = vperm.xlu1 %4726, %v6970_v17   ;;  %v3012_v17 = vadd.f32 1.0, %v4887_v32  ;;  %v4893_v44 = vpop.eup %4892  ;;  %v3330_v32 = vrot.slane %v6345_v6, 3 }
 0x34b   : > { %v4895_v35 = vpop.eup %4894 }
 0x34c   : > { %4900 = vrcp.f32 %v3012_v17  ;;  %v4897_v22 = vpop.eup %4896  ;;  %v3804_v17 = vadd.f32 %v7115_v1, %v7874_v61 }
 0x34d   : > { %1965 = vperm.xlu0 %4727, %v1956_v15   ;;  %4902 = vrcp.f32 %v3011_v55  ;;  %v4362_v15 = vmul.f32 -1.442695, %v3411_v31 }
 0x34e   : > { %1960 = vperm.xlu1 %4726, %v1955_v21  }
 0x34f   : > { %4904 = vpow2.f32 %v4362_v15 }
 0x351   : > { %2649 = vperm.xlu0 %4727, %v7079_v59   ;;  %v4899_v29 = vpop.eup %4898 }
 0x352   : > { %1970 = vperm.xlu1 %4726, %v1957_v62   ;;  %v3048_v0 = vpop.permute.xlu1 %3047 }
 0x353   : > { %v7089_v50 = vmul.f32 %v4891_v8, %v3048_v0  ;;  %v4363_v8 = vmul.f32 -1.442695, %v3412_v10 }
 0x355   : > { %2682 = vperm.xlu0 %4727, %v2676_v18   ;;  %v3137_v14 = vrot.slane %v7089_v50, 6  ;;  %4906 = vpow2.f32 %v4363_v8 }
 0x356   : > { %2288 = vperm.xlu1 %4726, %v2279_v60   ;;  %v3050_v56 = vpop.permute.xlu0 %3049  ;;  %v4901_v4 = vpop.eup %4900  ;;  %v7875_v60 = vld [vmem:[#allocation19_spill] sm:$0xff]  ;;  %4908 = vpow2.f32 %v4364_v12 }
 0x357   : > { %v7093_v30 = vmul.f32 %v4893_v44, %v3050_v56  ;;  %v3805_v0 = vadd.f32 %v7115_v1, %v7875_v60  ;;  %v4903_v55 = vpop.eup %4902  ;;  %v7877_v56 = vld [vmem:[#allocation25_spill] sm:$0xff] }
 0x358   : > { %v2634_v19 = vpop.permute.xlu1 %2633 }
 0x359   : > { %v2644_v47 = vmul.f32 %v4895_v35, %v2634_v19  ;;  %v3138_v13 = vrot.slane %v7093_v30, 6  ;;  %3069 = vperm.xlu0 %4727, %v7093_v30   ;;  %v3816_v35 = vadd.f32 %v7877_v56, %v3804_v17  ;;  %v4905_v9 = vpop.eup %4904  ;;  %v7878_v17 = vld [vmem:[#allocation9_spill] sm:$0xff] }
 0x35a   : > { %3065 = vperm.xlu1 %4726, %v7089_v50   ;;  %v3054_v36 = vpop.permute.xlu0 %3053  ;;  %v3332_v60 = vsel %vm521_vm2, %v3330_v32, %v7878_v17  ;;  %v3447_v56 = vadd.f32 1.0, %v4905_v9 }
 0x35b   : > { %v3139_v51 = vsel %vm647_vm7, %v3137_v14, %v3138_v13  ;;  %v2677_v48 = vsub.f32 1.0, %v2644_v47  ;;  %v2722_v52 = vrot.slane %v2644_v47, 6  ;;  %v7126_v18 = vmul.f32 %v4901_v4, %v3054_v36 }
 0x35c   : > { %v2638_v46 = vpop.permute.xlu1 %2637  ;;  %v3817_v36 = vadd.f32 %v6772_v34, %v3805_v0  ;;  %v3745_v0 = vrot.slane %v6368_v42, 3 }
 0x35d   : > { %v2646_v2 = vmul.f32 %v4897_v22, %v2638_v46  ;;  %v2723_v33 = vsel %vm647_vm7, %v2721_v58, %v2722_v52  ;;  %v3142_v39 = vrot.slane %v7126_v18, 6  ;;  %v3829_v22 = vadd.f32 %v6831_v57, %v3816_v35 }
 0x35e   : > { %2653 = vperm.xlu1 %4726, %v2644_v47   ;;  %v2731_v46 = vsel %vm703_vm8, %v2723_v33, 0.0  ;;  %v3830_v34 = vadd.f32 %v6834_v27, %v3817_v36  ;;  %v3329_v57 = vsel %vm521_vm2, %v3327_v16, %v3328_v45  ;;  %v3331_v58 = vsel %vm521_vm2, %v3328_v45, %v3330_v32 }
 0x35f   : > { %v2636_v23 = vpop.permute.xlu0 %2635  ;;  %v2726_v59 = vrot.slane %v2646_v2, 6  ;;  %v2679_v54 = vsub.f32 1.0, %v2646_v2  ;;  %v3747_v33 = vrot.slane %v6376_v40, 3  ;;  %v3746_v11 = vsel %vm521_vm2, %v3744_v3, %v3745_v0 }
 0x360   : > { %v7109_v21 = vpop.permute.xlu1 %3707  ;;  %v2645_v62 = vmul.f32 %v4899_v29, %v2636_v23  ;;  %v4388_v61 = vmul.f32 -1.442695, %v3830_v34 }
 0x362   : > { %2687 = vperm.xlu1 %4726, %v2677_v48   ;;  %v2724_v19 = vrot.slane %v2645_v62, 6  ;;  %2657 = vperm.xlu0 %4727, %v2645_v62   ;;  %v2678_v24 = vsub.f32 1.0, %v2645_v62  ;;  %v3828_v48 = vadd.f32 %v6821_v25, %v3815_v26 }
 0x363   : > { %v7135_v47 = vpop.permute.xlu0 %3296 }
 0x364   : > { %v3052_v44 = vpop.permute.xlu1 %3051  ;;  %v2725_v28 = vsel %vm647_vm7, %v2722_v52, %v2724_v19  ;;  %v2727_v14 = vsel %vm647_vm7, %v2724_v19, %v2726_v59  ;;  %v3147_v52 = vsel %vm703_vm8, %v3139_v51, 0.0  ;;  %v4387_v51 = vmul.f32 -1.442695, %v3829_v22  ;;  %v4907_v59 = vpop.eup %4906 }
 0x365   : > { %v7131_v37 = vmul.f32 %v4903_v55, %v3052_v44  ;;  %v2732_v5 = vsel %vm703_vm8, %v2725_v28, 0.0  ;;  %v2734_v53 = vsel %vm703_vm8, %v2727_v14, 0.0  ;;  %v4386_v62 = vmul.f32 -1.442695, %v3828_v48  ;;  %v4909_v26 = vpop.eup %4908 }
 0x366   : > { %2661 = vperm.xlu1 %4726, %v2646_v2   ;;  %v2733_v49 = vadd.f32 %v2732_v5, %v2731_v46  ;;  %2692 = vperm.xlu0 %4727, %v2678_v24   ;;  %4910 = vpow2.f32 %v4387_v51  ;;  %v3748_v24 = vsel %vm521_vm2, %v3745_v0, %v3747_v33  ;;  %v3448_v28 = vadd.f32 1.0, %v4907_v59 }
 0x367   : > { %v3140_v31 = vrot.slane %v7131_v37, 6  ;;  %v7156_v25 = vpop.permute.xlu0 %3709  ;;  %4912 = vpow2.f32 %v4386_v62  ;;  %v3349_v5 = vrot.slane %v6328_v63, 4  ;;  %v3449_v36 = vadd.f32 1.0, %v4909_v26 }
 0x368   : > { %v2735_v29 = vadd.f32 %v2734_v53, %v2733_v49  ;;  %v7150_v23 = vpop.permute.xlu1 %3711  ;;  %4914 = vpow2.f32 %v4388_v61  ;;  %v3352_v53 = vrot.slane %v6345_v6, 4 }
 0x369   : > { %v3141_v41 = vsel %vm647_vm7, %v3138_v13, %v3140_v31  ;;  %v3143_v10 = vsel %vm647_vm7, %v3140_v31, %v3142_v39  ;;  %v3749_v39 = vsel %vm521_vm2, %v3747_v33, %v7878_v17  ;;  %v3350_v31 = vrot.slane %v6334_v38, 4 }
 0x36a   : > { %v3148_v15 = vsel %vm703_vm8, %v3141_v41, 0.0  ;;  %2697 = vperm.xlu1 %4726, %v2679_v54   ;;  %v2736_v13 = vrot.slane %v2735_v29, 4  ;;  %v3150_v4 = vsel %vm703_vm8, %v3143_v10, 0.0  ;;  %3335 = vrot.lane.b32.xlu0 %v3329_v57, %s7835_s22  ;;  %4916 = vrcp.f32 %v3447_v56 }
 0x36b   : > { %v3149_v2 = vadd.f32 %v3148_v15, %v3147_v52  ;;  %v7169_v44 = vpop.permute.xlu0 %3713  ;;  %4918 = vrcp.f32 %v3448_v28  ;;  %v3351_v48 = vsel %vm539_vm3, %v3349_v5, %v3350_v31  ;;  %v3353_v34 = vsel %vm539_vm3, %v3350_v31, %v3352_v53 }
 0x36c   : > { %v2737_v27 = vadd.f32 %v2736_v13, %v2735_v29  ;;  %v7166_v45 = vpop.permute.xlu1 %3311  ;;  %4920 = vrcp.f32 %v3449_v36 }
 0x36d   : > { %v3151_v7 = vadd.f32 %v3150_v4, %v3149_v2  ;;  %v7879_v4 = vld [vmem:[#allocation14_spill] sm:$0xff] }
 0x36e   : > { %3337 = vrot.lane.b32.xlu1 %v3331_v58, %s7835_s22  ;;  %v2738_v55 = vrot.slane %v2737_v27, 2  ;;  %3339 = vrot.lane.b32.xlu0 %v3332_v60, %s7835_s22  ;;  %v3354_v51 = vsel %vm539_vm3, %v3352_v53, %v7879_v4  ;;  %v3767_v58 = vrot.slane %v6368_v42, 4 }
 0x36f   : > { %v3152_v16 = vrot.slane %v3151_v7, 4  ;;  %v7182_v54 = vpop.permute.xlu0 %3313 }
 0x370   : > { %v2739_v19 = vadd.f32 %v2738_v55, %v2737_v27  ;;  %v7176_v46 = vpop.permute.xlu1 %3315  ;;  %v4911_v41 = vpop.eup %4910  ;;  %v3769_v27 = vrot.slane %v6376_v40, 4 }
 0x371   : > { %v3153_v8 = vadd.f32 %v3152_v16, %v3151_v7  ;;  %v4913_v52 = vpop.eup %4912  ;;  %v3865_v2 = vadd.f32 1.0, %v4911_v41  ;;  %v3766_v7 = vrot.slane %v6356_v43, 4 }
 0x372   : > { %3750 = vrot.lane.b32.xlu1 %v3744_v3, %s7835_s22  ;;  %3752 = vrot.lane.b32.xlu0 %v3746_v11, %s7835_s22  ;;  %v2740_v35 = vrot.slane %v2739_v19, 1  ;;  %v4915_v29 = vpop.eup %4914  ;;  %v3864_v13 = vadd.f32 1.0, %v4913_v52  ;;  %v3770_v60 = vsel %vm539_vm3, %v3767_v58, %v3769_v27  ;;  %v3771_v55 = vsel %vm539_vm3, %v3769_v27, %v7879_v4 }
 0x373   : > { %v3154_v32 = vrot.slane %v3153_v8, 2  ;;  %v7194_v57 = vpop.permute.xlu0 %3317  ;;  %v3866_v62 = vadd.f32 1.0, %v4915_v29  ;;  %4922 = vrcp.f32 %v3865_v2  ;;  %v3768_v61 = vsel %vm539_vm3, %v3766_v7, %v3767_v58 }
 0x374   : > { %v2741_v49 = vadd.f32 %v2740_v35, %v2739_v19  ;;  %v7191_v15 = vpop.permute.xlu1 %3728  ;;  %v4917_v3 = vpop.eup %4916  ;;  %4924 = vrcp.f32 %v3864_v13  ;;  %v3092_v2 = vsub.f32 1.0, %v7089_v50  ;;  %v7240_v13 = vld [vmem:[%s7579_s5] ss:$0 sm:$0xff] }
 0x375   : > { %v3155_v12 = vadd.f32 %v3154_v32, %v3153_v8  ;;  %v4919_v16 = vpop.eup %4918  ;;  %4926 = vrcp.f32 %v3866_v62  ;;  %v3459_v8 = vrot.slane %v4917_v3, 2  ;;  %v3094_v3 = vsub.f32 1.0, %v7131_v37 }
 0x376   : > { %3754 = vrot.lane.b32.xlu1 %v3748_v24, %s7835_s22  ;;  %3756 = vrot.lane.b32.xlu0 %v3749_v39, %s7835_s22  ;;  %v4921_v0 = vpop.eup %4920  ;;  %v3460_v33 = vrot.slane %v4919_v16, 2  ;;  %v3095_v16 = vsub.f32 1.0, %v7126_v18 }
 0x377   : > { %v3156_v14 = vrot.slane %v3155_v12, 1  ;;  %v7207_v17 = vpop.permute.xlu0 %3730  ;;  %v3462_v19 = vrot.slane %v4921_v0, 2 }
 0x378   : > { %v7204_v9 = vpop.permute.xlu1 %3732  ;;  %v3461_v11 = vsel %vm505_vm5, %v3459_v8, %v3460_v33 }
 0x379   : > { %v3157_v22 = vadd.f32 %v3156_v14, %v3155_v12  ;;  %v3463_v12 = vsel %vm505_vm5, %v3460_v33, %v3462_v19 }
 0x37a   : > { %3355 = vrot.lane.b32.xlu1 %v3349_v5, %s5088_s23  ;;  %3357 = vrot.lane.b32.xlu0 %v3351_v48, %s5088_s23 }
 0x37b   : > { %v7187_v10 = vadd.f32 %v3157_v22, %v2741_v49  ;;  %v7217_v32 = vpop.permute.xlu0 %3734 }
 0x37c   : > { %v7215_v59 = vpop.permute.xlu1 %3333 }
 0x37d   : > { %v4923_v26 = vpop.eup %4922 }
 0x37e   : > { %3359 = vrot.lane.b32.xlu1 %v3353_v34, %s5088_s23  ;;  %3361 = vrot.lane.b32.xlu0 %v3354_v51, %s5088_s23  ;;  %v4925_v56 = vpop.eup %4924  ;;  %v3877_v14 = vrot.slane %v4923_v26, 2  ;;  %v3093_v51 = vsub.f32 1.0, %v7093_v30 }
 0x37f   : > { %v4927_v24 = vpop.eup %4926  ;;  %v3876_v39 = vrot.slane %v4925_v56, 2 }
 0x380   : > { %v3879_v31 = vrot.slane %v4927_v24, 2 }
 0x381   : > { %v3878_v49 = vsel %vm505_vm5, %v3876_v39, %v3877_v14 }
 0x382   : > { %3772 = vrot.lane.b32.xlu1 %v3766_v7, %s5088_s23  ;;  %3774 = vrot.lane.b32.xlu0 %v3768_v61, %s5088_s23  ;;  %v3880_v53 = vsel %vm505_vm5, %v3877_v14, %v3879_v31 }
 0x386   : > { %3776 = vrot.lane.b32.xlu1 %v3770_v60, %s5088_s23  ;;  %3778 = vrot.lane.b32.xlu0 %v3771_v55, %s5088_s23  ;;  %s7235_s23 = sand.u32 1, %s5071_s10   ;;  %v4961_v60 = vld [vmem:[%s5239_s26] sm:$0xff] }
 0x387   : > { %s4001_s1 = scalar_lea.sflag [#allocation3], %s7235_s23 }
 0x38a   : > { %3464 = vrot.lane.b32.xlu1 %v3459_v8, %s5085_s16  ;;  %3466 = vrot.lane.b32.xlu0 %v3461_v11, %s5085_s16 }
 0x38c   : > { %v642_v28 = vpop.permute.xlu0 %641 }
 0x38d   : > { %v638_v35 = vpop.permute.xlu1 %637  ;;  %v649_v29 = vrot.slane %v642_v28, 6  ;;  %v4962_v28 = vld [vmem:[%s5239_s26 + $0x8] sm:$0xff] }
 0x38e   : > { %3468 = vrot.lane.b32.xlu1 %v3463_v12, %s5085_s16  ;;  %3470 = vrot.lane.b32.xlu0 %v3462_v19, %s5085_s16  ;;  %v648_v52 = vrot.slane %v638_v35, 6 }
 0x390   : > { %v972_v36 = vpop.permute.xlu0 %971  ;;  %v650_v7 = vsel %vm647_vm7, %v648_v52, %v649_v29 }
 0x391   : > { %v646_v5 = vpop.permute.xlu1 %645  ;;  %v655_v0 = vmul.f32 %v4961_v60, %v650_v7  ;;  %v978_v56 = vrot.slane %v972_v36, 6 }
 0x392   : > { %3881 = vrot.lane.b32.xlu1 %v3876_v39, %s5085_s16  ;;  %3883 = vrot.lane.b32.xlu0 %v3878_v49, %s5085_s16  ;;  %v651_v58 = vrot.slane %v646_v5, 6 }
 0x394   : > { %v992_v41 = vpop.permute.xlu0 %991  ;;  %v652_v8 = vsel %vm647_vm7, %v649_v29, %v651_v58  ;;  %v4963_v29 = vld [vmem:[%s5239_s26 + $0x10] sm:$0xff] }
 0x395   : > { %v968_v22 = vpop.permute.xlu1 %967  ;;  %v1004_v35 = vmul.f32 %v7240_v13, %v992_v41  ;;  %v656_v14 = vmul.f32 %v4962_v28, %v652_v8 }
 0x396   : > { %3885 = vrot.lane.b32.xlu1 %v3880_v53, %s5085_s16  ;;  %3887 = vrot.lane.b32.xlu0 %v3879_v31, %s5085_s16  ;;  %s4666_s16 = smul.u32 96, %s7235_s23  ;;  %v977_v33 = vrot.slane %v968_v22, 6 }
 0x397   : > { %v1010_v41 = vrot.slane %v1004_v35, 6 }
 0x398   : > { %v1002_v34 = vpop.permute.xlu0 %1001  ;;  %v979_v5 = vsel %vm647_vm7, %v977_v33, %v978_v56  ;;  %s7260_s27 = scalar_lea.vmem [#allocation2], %s4666_s16 }
 0x399   : > { %v976_v48 = vpop.permute.xlu1 %975  ;;  %s4025_s22 = sshll.u32 %s7260_s27, 4  ;;  %s7446_s22 = int_to_ptr.vmem [resolvable:$true] %s4025_s22 }
 0x39a   : > { %3073 = vperm.xlu1 %4726, %v7131_v37   ;;  %3077 = vperm.xlu0 %4727, %v7126_v18   ;;  %v980_v19 = vrot.slane %v976_v48, 6  ;;  %v1006_v18 = vmul.f32 %v7240_v13, %v1002_v34  ;;  %v984_v34 = vmul.f32 %v4963_v29, %v979_v5  ;;  %s4985_s2 = scalar_lea.vmem %s7446_s22, 1536  ;;  %p4992_p0 = scmp.lt.s32.totalorder %s7446_s22, %s4990_s14 }
 0x39b   : > { %p4986_p11 = scmp.ne.s32.totalorder %s7446_s22, %s4985_s2 }
 0x39c   : > { %v668_v50 = vpop.permute.xlu0 %667  ;;  %v981_v31 = vsel %vm647_vm7, %v978_v56, %v980_v19  ;;  %v1013_v48 = vrot.slane %v1006_v18, 6 }
 0x39d   : > { %v663_v4 = vpop.permute.xlu1 %662  ;;  %v682_v27 = vmul.f32 %v7240_v13, %v668_v50  ;;  %p4987_p12 = pnand %p4986_p11, %p5183_p5 }
 0x39e   : > { %v681_v62 = vmul.f32 %v7240_v13, %v663_v4  ;;  %3098 = vperm.xlu1 %4726, %v3092_v2   ;;  %3103 = vperm.xlu0 %4727, %v3093_v51   ;;  %v4964_v2 = vld [vmem:[%s5239_s26 + $0x18] sm:$0xff] }
 0x39f   : > { %v688_v30 = vrot.slane %v682_v27, 6  ;;  %v985_v4 = vmul.f32 %v4964_v2, %v981_v31  ;;  %p4988_p13 = pneg %p4987_p12 }
 0x3a0   : > { %v687_v61 = vrot.slane %v681_v62, 6  ;;  %v1291_v26 = vpop.permute.xlu0 %1290 }
 0x3a1   : > { %v673_v55 = vpop.permute.xlu1 %672 }
 0x3a2   : > { %v683_v11 = vmul.f32 %v7240_v13, %v673_v55  ;;  %3108 = vperm.xlu1 %4726, %v3094_v3   ;;  %v689_v37 = vsel %vm647_vm7, %v687_v61, %v688_v30  ;;  %3113 = vperm.xlu0 %4727, %v3095_v16  }
 0x3a3   : > { %v694_v12 = vadd.f32 %v689_v37, %v655_v0 }
 0x3a4   : > { %v690_v24 = vrot.slane %v683_v11, 6  ;;  %v1299_v22 = vpop.permute.xlu0 %1298 }
 0x3a5   : > { %v997_v39 = vpop.permute.xlu1 %996  ;;  %713 = vst.msk [vmem:[%s7260_s27] sm:$0xff] %vm393_vm0, %v694_v12  ;;  %v1303_v56 = vrot.slane %v1299_v22, 6 }
 0x3a6   : > { %v691_v36 = vsel %vm647_vm7, %v688_v30, %v690_v24  ;;  %v1005_v49 = vmul.f32 %v7240_v13, %v997_v39  ;;  %v1300_v30 = vrot.slane %v1291_v26, 6  ;;  %v4965_v26 = vld [vmem:[%s5239_s26 + $0x20] sm:$0xff] }
 0x3a7   : > { %v695_v53 = vadd.f32 %v691_v36, %v656_v14 }
 0x3a8   : > { %v1011_v52 = vrot.slane %v1005_v49, 6  ;;  %v1618_v62 = vpop.permute.xlu0 %1617 }
 0x3a9   : > { %714 = vst.msk [vmem:[%s7260_s27 + $0x8] sm:$0xff] %vm393_vm0, %v695_v53  ;;  %v1614_v51 = vpop.permute.xlu1 %1613  ;;  %v1624_v18 = vrot.slane %v1618_v62, 6 }
 0x3aa   : > { %v1012_v7 = vsel %vm647_vm7, %v1010_v41, %v1011_v52  ;;  %v1014_v58 = vsel %vm647_vm7, %v1011_v52, %v1013_v48  ;;  %v1623_v35 = vrot.slane %v1614_v51, 6  ;;  %v4966_v48 = vld [vmem:[%s5239_s26 + $0x28] sm:$0xff] }
 0x3ab   : > { %v1017_v50 = vadd.f32 %v1012_v7, %v984_v34  ;;  %v1018_v27 = vadd.f32 %v1014_v58, %v985_v4 }
 0x3ac   : > { %v1638_v61 = vpop.permute.xlu0 %1637  ;;  %v1625_v34 = vsel %vm647_vm7, %v1623_v35, %v1624_v18 }
 0x3ad   : > { %4224 = vst.msk [vmem:[%s7260_s27 + $0x10] sm:$0xff] %vm393_vm0, %v1017_v50  ;;  %4225 = vst.msk [vmem:[%s7260_s27 + $0x18] sm:$0xff] %vm393_vm0, %v1018_v27  ;;  %v1622_v3 = vpop.permute.xlu1 %1621  ;;  %v1650_v49 = vmul.f32 %v7240_v13, %v1638_v61 }
 0x3ae   : > { %v1626_v28 = vrot.slane %v1622_v3, 6  ;;  %v4967_v3 = vld [vmem:[%s5239_s26 + $0x30] sm:$0xff] }
 0x3af   : > { %v1656_v62 = vrot.slane %v1650_v49, 6  ;;  %v1630_v61 = vmul.f32 %v4967_v3, %v1625_v34 }
 0x3b0   : > { %v1648_v60 = vpop.permute.xlu0 %1647  ;;  %v1627_v2 = vsel %vm647_vm7, %v1624_v18, %v1626_v28 }
 0x3b1   : > { %v1295_v16 = vpop.permute.xlu1 %1294  ;;  %v1652_v22 = vmul.f32 %v7240_v13, %v1648_v60 }
 0x3b2   : > { %v1301_v0 = vrot.slane %v1295_v16, 6  ;;  %v4968_v16 = vld [vmem:[%s5239_s26 + $0x38] sm:$0xff] }
 0x3b3   : > { %v1659_v50 = vrot.slane %v1652_v22, 6  ;;  %v1631_v60 = vmul.f32 %v4968_v16, %v1627_v2 }
 0x3b4   : > { %v1320_v33 = vpop.permute.xlu0 %1319  ;;  %v1302_v19 = vsel %vm647_vm7, %v1300_v30, %v1301_v0  ;;  %v1304_v14 = vsel %vm647_vm7, %v1301_v0, %v1303_v56 }
 0x3b5   : > { %v1315_v55 = vpop.permute.xlu1 %1314  ;;  %v1328_v11 = vmul.f32 %v7240_v13, %v1320_v33  ;;  %v1307_v39 = vmul.f32 %v4965_v26, %v1302_v19  ;;  %v1308_v52 = vmul.f32 %v4966_v48, %v1304_v14 }
 0x3b6   : > { %v1327_v8 = vmul.f32 %v7240_v13, %v1315_v55 }
 0x3b7   : > { %v1334_v12 = vrot.slane %v1328_v11, 6 }
 0x3b8   : > { %v1333_v37 = vrot.slane %v1327_v8, 6  ;;  %v1937_v31 = vpop.permute.xlu0 %1936 }
 0x3b9   : > { %v1325_v24 = vpop.permute.xlu1 %1324 }
 0x3ba   : > { %v1329_v5 = vmul.f32 %v7240_v13, %v1325_v24  ;;  %v1335_v36 = vsel %vm647_vm7, %v1333_v37, %v1334_v12 }
 0x3bb   : > { %v1340_v53 = vadd.f32 %v1335_v36, %v1307_v39 }
 0x3bc   : > { %v1336_v41 = vrot.slane %v1329_v5, 6  ;;  %v1945_v7 = vpop.permute.xlu0 %1944 }
 0x3bd   : > { %v1643_v29 = vpop.permute.xlu1 %1642  ;;  %4243 = vst.msk [vmem:[%s7260_s27 + $0x20] sm:$0xff] %vm393_vm0, %v1340_v53  ;;  %v1949_v5 = vrot.slane %v1945_v7, 6 }
 0x3be   : > { %v1337_v4 = vsel %vm647_vm7, %v1334_v12, %v1336_v41  ;;  %v1651_v51 = vmul.f32 %v7240_v13, %v1643_v29  ;;  %v1946_v12 = vrot.slane %v1937_v31, 6  ;;  %v4969_v31 = vld [vmem:[%s5239_s26 + $0x40] sm:$0xff] }
 0x3bf   : > { %v1341_v58 = vadd.f32 %v1337_v4, %v1308_v52 }
 0x3c0   : > { %v1657_v27 = vrot.slane %v1651_v51, 6  ;;  %v2264_v8 = vpop.permute.xlu0 %2263 }
 0x3c1   : > { %4244 = vst.msk [vmem:[%s7260_s27 + $0x28] sm:$0xff] %vm393_vm0, %v1341_v58  ;;  %v2260_v0 = vpop.permute.xlu1 %2259  ;;  %v2270_v22 = vrot.slane %v2264_v8, 6 }
 0x3c2   : > { %v1658_v30 = vsel %vm647_vm7, %v1656_v62, %v1657_v27  ;;  %v1660_v55 = vsel %vm647_vm7, %v1657_v27, %v1659_v50  ;;  %v2269_v49 = vrot.slane %v2260_v0, 6  ;;  %v4970_v50 = vld [vmem:[%s5239_s26 + $0x48] sm:$0xff] }
 0x3c3   : > { %v1663_v33 = vadd.f32 %v1658_v30, %v1630_v61  ;;  %v1664_v19 = vadd.f32 %v1660_v55, %v1631_v60 }
 0x3c4   : > { %v2284_v56 = vpop.permute.xlu0 %2283  ;;  %v2271_v61 = vsel %vm647_vm7, %v2269_v49, %v2270_v22 }
 0x3c5   : > { %4262 = vst.msk [vmem:[%s7260_s27 + $0x30] sm:$0xff] %vm393_vm0, %v1663_v33  ;;  %4263 = vst.msk [vmem:[%s7260_s27 + $0x38] sm:$0xff] %vm393_vm0, %v1664_v19  ;;  %v2268_v11 = vpop.permute.xlu1 %2267  ;;  %v2296_v51 = vmul.f32 %v7240_v13, %v2284_v56 }
 0x3c6   : > { %v2272_v48 = vrot.slane %v2268_v11, 6  ;;  %v4971_v11 = vld [vmem:[%s5239_s26 + $0x50] sm:$0xff] }
 0x3c7   : > { %v2302_v8 = vrot.slane %v2296_v51, 6  ;;  %v2276_v56 = vmul.f32 %v4971_v11, %v2271_v61 }
 0x3c8   : > { %v2294_v35 = vpop.permute.xlu0 %2293  ;;  %v2273_v16 = vsel %vm647_vm7, %v2270_v22, %v2272_v48 }
 0x3c9   : > { %v1941_v37 = vpop.permute.xlu1 %1940  ;;  %v2298_v7 = vmul.f32 %v7240_v13, %v2294_v35 }
 0x3ca   : > { %v1947_v18 = vrot.slane %v1941_v37, 6  ;;  %v4972_v37 = vld [vmem:[%s5239_s26 + $0x58] sm:$0xff]  ;;  %s7345_s26 = scalar_lea.vmem [#allocation4], %s4666_s16 }
 0x3cb   : > { %v2305_v33 = vrot.slane %v2298_v7, 6  ;;  %v2277_v35 = vmul.f32 %v4972_v37, %v2273_v16  ;;  %v4973_v7 = vld [vmem:[%s5318_s24] sm:$0xff]  ;;  %v4975_v37 = vld [vmem:[%s5318_s24 + $0x10] sm:$0xff] }
 0x3cc   : > { %v1966_v14 = vpop.permute.xlu0 %1965  ;;  %v1948_v26 = vsel %vm647_vm7, %v1946_v12, %v1947_v18  ;;  %v1950_v52 = vsel %vm647_vm7, %v1947_v18, %v1949_v5 }
 0x3cd   : > { %v1961_v24 = vpop.permute.xlu1 %1960  ;;  %v1974_v39 = vmul.f32 %v7240_v13, %v1966_v14  ;;  %v1953_v29 = vmul.f32 %v4969_v31, %v1948_v26  ;;  %v1954_v27 = vmul.f32 %v4970_v50, %v1950_v52 }
 0x3ce   : > { %v1973_v28 = vmul.f32 %v7240_v13, %v1961_v24 }
 0x3cf   : > { %v1980_v53 = vrot.slane %v1974_v39, 6 }
 0x3d0   : > { %v1979_v36 = vrot.slane %v1973_v28, 6  ;;  %v2650_v2 = vpop.permute.xlu0 %2649 }
 0x3d1   : > { %v1971_v41 = vpop.permute.xlu1 %1970 }
 0x3d2   : > { %v1975_v34 = vmul.f32 %v7240_v13, %v1971_v41  ;;  %v1981_v4 = vsel %vm647_vm7, %v1979_v36, %v1980_v53 }
 0x3d3   : > { %v1986_v58 = vadd.f32 %v1981_v4, %v1953_v29 }
 0x3d4   : > { %v1982_v62 = vrot.slane %v1975_v34, 6  ;;  %v2683_v30 = vpop.permute.xlu0 %2682 }
 0x3d5   : > { %v2289_v3 = vpop.permute.xlu1 %2288  ;;  %4281 = vst.msk [vmem:[%s7260_s27 + $0x40] sm:$0xff] %vm393_vm0, %v1986_v58  ;;  %v2700_v41 = vmul.f32 %v7240_v13, %v2683_v30 }
 0x3d6   : > { %v1983_v60 = vsel %vm647_vm7, %v1980_v53, %v1982_v62  ;;  %v2297_v0 = vmul.f32 %v7240_v13, %v2289_v3  ;;  %v2663_v53 = vrot.slane %v2650_v2, 6 }
 0x3d7   : > { %v1987_v55 = vadd.f32 %v1983_v60, %v1954_v27  ;;  %v2708_v34 = vrot.slane %v2700_v41, 6  ;;  %v3278_v41 = vadd.f32 %v7087_v20, %v6328_v63 }
 0x3d8   : > { %v2303_v19 = vrot.slane %v2297_v0, 6  ;;  %v7324_v39 = vpop.permute.xlu0 %3069 }
 0x3d9   : > { %4282 = vst.msk [vmem:[%s7260_s27 + $0x48] sm:$0xff] %vm393_vm0, %v1987_v55  ;;  %v3066_v18 = vpop.permute.xlu1 %3065  ;;  %v3080_v5 = vrot.slane %v7324_v39, 6 }
 0x3da   : > { %v2304_v12 = vsel %vm647_vm7, %v2302_v8, %v2303_v19  ;;  %v2306_v24 = vsel %vm647_vm7, %v2303_v19, %v2305_v33  ;;  %v3079_v28 = vrot.slane %v3066_v18, 6  ;;  %v4974_v8 = vld [vmem:[%s5318_s24 + $0x8] sm:$0xff] }
 0x3db   : > { %v2309_v14 = vadd.f32 %v2304_v12, %v2276_v56  ;;  %v2310_v26 = vadd.f32 %v2306_v24, %v2277_v35 }
 0x3dc   : > { %v7334_v49 = vsel %vm647_vm7, %v3079_v28, %v3080_v5 }
 0x3dd   : > { %4300 = vst.msk [vmem:[%s7260_s27 + $0x50] sm:$0xff] %vm393_vm0, %v2309_v14  ;;  %4301 = vst.msk [vmem:[%s7260_s27 + $0x58] sm:$0xff] %vm393_vm0, %v2310_v26  ;;  %v2654_v36 = vpop.permute.xlu1 %2653  ;;  %s4991_s27 = scalar_lea.vmem %s4990_s14, 3072 }
 0x3de   : > { %v2664_v22 = vrot.slane %v2654_v36, 6  ;;  %p4993_p1 = scmp.lt.s32.totalorder %s4991_s27, %s4985_s2 }
 0x3e0   : > { %v2665_v52 = vsel %vm647_vm7, %v2663_v53, %v2664_v22  ;;  %p4994_p2 = por %p4993_p1, %p4992_p0 }
 0x3e1   : > { %v2688_v48 = vpop.permute.xlu1 %2687  ;;  %v2658_v29 = vpop.permute.xlu0 %2657  ;;  %v2673_v58 = vmul.f32 %v4973_v7, %v2665_v52  ;;  %v7881_v52 = vld [vmem:[#allocation34_spill] sm:$0xff] }
 0x3e2   : > { %v2701_v31 = vmul.f32 %v7240_v13, %v2688_v48  ;;  %v2666_v51 = vrot.slane %v2658_v29, 6  ;;  %v3279_v29 = vadd.f32 %v7087_v20, %v6334_v38  ;;  %v3719_v38 = vadd.f32 %v7115_v1, %v7109_v21  ;;  %p4995_p3 = pnand %p4994_p2, %p4988_p13 }
 0x3e4   : > { %v2709_v4 = vrot.slane %v2701_v31, 6  ;;  %v2667_v61 = vsel %vm647_vm7, %v2664_v22, %v2666_v51  ;;  %v7880_v22 = vld [vmem:[#allocation21_spill] sm:$0xff]  ;;  %v3303_v31 = vadd.f32 %v7881_v52, %v3278_v41 }
 0x3e5   : > { %v2662_v62 = vpop.permute.xlu1 %2661  ;;  %v2693_v3 = vpop.permute.xlu0 %2692  ;;  %v2674_v33 = vmul.f32 %v4974_v8, %v2667_v61  ;;  %v3302_v53 = vadd.f32 %v7087_v20, %v7880_v22 }
 0x3e6   : > { %v2710_v50 = vsel %vm647_vm7, %v2708_v34, %v2709_v4  ;;  %v2668_v27 = vrot.slane %v2662_v62, 6  ;;  %v2702_v16 = vmul.f32 %v7240_v13, %v2693_v3  ;;  %v3324_v62 = vadd.f32 %v7182_v54, %v3303_v31 }
 0x3e7   : > { %v2718_v2 = vadd.f32 %v2710_v50, %v2673_v58  ;;  %v3323_v34 = vadd.f32 %v7166_v45, %v3302_v53  ;;  %v3280_v58 = vadd.f32 %v7087_v20, %v6345_v6  ;;  %v3695_v45 = vadd.f32 %v7115_v1, %v6356_v43 }
 0x3e8   : > { %v2669_v0 = vsel %vm647_vm7, %v2666_v51, %v2668_v27  ;;  %v2711_v30 = vrot.slane %v2702_v16, 6  ;;  %v7882_v51 = vld [vmem:[#allocation36_spill] sm:$0xff] }
 0x3e9   : > { %2742 = vst.msk [vmem:[%s7345_s26] sm:$0xff] %vm393_vm0, %v2718_v2  ;;  %v2698_v60 = vpop.permute.xlu1 %2697  ;;  %v3336_v19 = vpop.permute.xlu0 %3335  ;;  %v2675_v35 = vmul.f32 %v4975_v37, %v2669_v0  ;;  %v3304_v7 = vadd.f32 %v7882_v51, %v3279_v29  ;;  %v3345_v50 = vadd.f32 %v7215_v59, %v3323_v34  ;;  %v3305_v63 = vadd.f32 %v7135_v47, %v3280_v58 }
 0x3ea   : > { %v2703_v55 = vmul.f32 %v7240_v13, %v2698_v60  ;;  %v2712_v11 = vsel %vm647_vm7, %v2709_v4, %v2711_v30  ;;  %v3346_v3 = vadd.f32 %v3336_v19, %v3324_v62  ;;  %v3696_v59 = vadd.f32 %v7115_v1, %v6368_v42 }
 0x3eb   : > { %v2719_v18 = vadd.f32 %v2712_v11, %v2674_v33  ;;  %v3325_v2 = vadd.f32 %v7176_v46, %v3304_v7  ;;  %v3326_v6 = vadd.f32 %v7194_v57, %v3305_v63  ;;  %v3720_v47 = vadd.f32 %v7156_v25, %v3695_v45 }
 0x3ec   : > { %v2713_v56 = vrot.slane %v2703_v55, 6  ;;  %v3740_v46 = vadd.f32 %v7191_v15, %v3719_v38  ;;  %v3721_v43 = vadd.f32 %v7150_v23, %v3696_v59  ;;  %v3697_v57 = vadd.f32 %v7115_v1, %v6376_v40 }
 0x3ed   : > { %v3338_v12 = vpop.permute.xlu1 %3337  ;;  %2743 = vst.msk [vmem:[%s7345_s26 + $0x8] sm:$0xff] %vm393_vm0, %v2719_v18  ;;  %v3340_v14 = vpop.permute.xlu0 %3339  ;;  %v3741_v8 = vadd.f32 %v7207_v17, %v3720_v47 }
 0x3ee   : > { %v2714_v24 = vsel %vm647_vm7, %v2711_v30, %v2713_v56  ;;  %v3347_v20 = vadd.f32 %v3338_v12, %v3325_v2  ;;  %v3348_v30 = vadd.f32 %v3340_v14, %v3326_v6  ;;  %v3722_v25 = vadd.f32 %v7169_v44, %v3697_v57 }
 0x3ef   : > { %v2720_v28 = vadd.f32 %v2714_v24, %v2675_v35  ;;  %v3742_v15 = vadd.f32 %v7204_v9, %v3721_v43 }
 0x3f0   : > { %v3743_v23 = vadd.f32 %v7217_v32, %v3722_v25 }
 0x3f1   : > { %2744 = vst.msk [vmem:[%s7345_s26 + $0x10] sm:$0xff] %vm393_vm0, %v2720_v28  ;;  %v3751_v26 = vpop.permute.xlu1 %3750  ;;  %v3753_v36 = vpop.permute.xlu0 %3752 }
 0x3f2   : > { %v3762_v19 = vadd.f32 %v3751_v26, %v3740_v46  ;;  %v3763_v37 = vadd.f32 %v3753_v36, %v3741_v8 }
 0x3f5   : > { %v3755_v48 = vpop.permute.xlu1 %3754  ;;  %v3757_v4 = vpop.permute.xlu0 %3756 }
 0x3f6   : > { %v3764_v40 = vadd.f32 %v3755_v48, %v3742_v15  ;;  %v3765_v28 = vadd.f32 %v3757_v4, %v3743_v23 }
 0x3f9   : > { %v3356_v27 = vpop.permute.xlu1 %3355  ;;  %v3358_v16 = vpop.permute.xlu0 %3357 }
 0x3fa   : > { %v3367_v61 = vadd.f32 %v3356_v27, %v3345_v50  ;;  %v3368_v60 = vadd.f32 %v3358_v16, %v3346_v3 }
 0x3fc   : > { %v4358_v54 = vmul.f32 -1.442695, %v3367_v61  ;;  %v4359_v21 = vmul.f32 -1.442695, %v3368_v60 }
 0x3fd   : > { %v3360_v0 = vpop.permute.xlu1 %3359  ;;  %v3362_v33 = vpop.permute.xlu0 %3361 }
 0x3fe   : > { %4928 = vpow2.f32 %v4358_v54  ;;  %v3369_v55 = vadd.f32 %v3360_v0, %v3347_v20  ;;  %v3370_v11 = vadd.f32 %v3362_v33, %v3348_v30 }
 0x3ff   : > { %4930 = vpow2.f32 %v4359_v21 }
 0x400   : > { %v4360_v42 = vmul.f32 -1.442695, %v3369_v55  ;;  %v4361_v35 = vmul.f32 -1.442695, %v3370_v11 }
 0x401   : > { %v3773_v56 = vpop.permute.xlu1 %3772  ;;  %v3775_v12 = vpop.permute.xlu0 %3774 }
 0x402   : > { %4932 = vpow2.f32 %v4360_v42  ;;  %v3784_v18 = vadd.f32 %v3773_v56, %v3762_v19  ;;  %v3785_v17 = vadd.f32 %v3775_v12, %v3763_v37 }
 0x403   : > { %4934 = vpow2.f32 %v4361_v35 }
 0x404   : > { %v4382_v1 = vmul.f32 -1.442695, %v3784_v18  ;;  %v4383_v14 = vmul.f32 -1.442695, %v3785_v17 }
 0x405   : > { %v3777_v24 = vpop.permute.xlu1 %3776  ;;  %v3779_v44 = vpop.permute.xlu0 %3778 }
 0x406   : > { %4936 = vpow2.f32 %v4382_v1  ;;  %v3786_v26 = vadd.f32 %v3777_v24, %v3764_v40  ;;  %v3787_v36 = vadd.f32 %v3779_v44, %v3765_v28 }
 0x407   : > { %4938 = vpow2.f32 %v4383_v14 }
 0x408   : > { %v4929_v22 = vpop.eup %4928  ;;  %v4384_v9 = vmul.f32 -1.442695, %v3786_v26  ;;  %v4385_v32 = vmul.f32 -1.442695, %v3787_v36 }
 0x409   : > { %v3426_v53 = vadd.f32 1.0, %v4929_v22  ;;  %v3465_v41 = vpop.permute.xlu1 %3464  ;;  %v4931_v52 = vpop.eup %4930 }
 0x40a   : > { %4940 = vpow2.f32 %v4384_v9  ;;  %v3427_v48 = vadd.f32 1.0, %v4931_v52  ;;  %v3467_v31 = vpop.permute.xlu0 %3466 }
 0x40b   : > { %4942 = vrcp.f32 %v3426_v53 }
 0x40c   : > { %v4933_v29 = vpop.eup %4932  ;;  %4944 = vpow2.f32 %v4385_v32 }
 0x40d   : > { %4946 = vrcp.f32 %v3427_v48  ;;  %v3428_v34 = vadd.f32 1.0, %v4933_v29  ;;  %v3469_v4 = vpop.permute.xlu1 %3468  ;;  %v4935_v51 = vpop.eup %4934 }
 0x40e   : > { %v3429_v7 = vadd.f32 1.0, %v4935_v51  ;;  %v3471_v58 = vpop.permute.xlu0 %3470 }
 0x40f   : > { %4948 = vrcp.f32 %v3428_v34 }
 0x410   : > { %v4937_v62 = vpop.eup %4936  ;;  %4950 = vrcp.f32 %v3429_v7 }
 0x411   : > { %v3843_v50 = vadd.f32 1.0, %v4937_v62  ;;  %v3882_v27 = vpop.permute.xlu1 %3881  ;;  %v4939_v63 = vpop.eup %4938 }
 0x412   : > { %v3844_v2 = vadd.f32 1.0, %v4939_v63  ;;  %v3884_v3 = vpop.permute.xlu0 %3883 }
 0x413   : > { %4952 = vrcp.f32 %v3843_v50 }
 0x414   : > { %v4941_v61 = vpop.eup %4940  ;;  %4954 = vrcp.f32 %v3844_v2 }
 0x415   : > { %v4943_v38 = vpop.eup %4942  ;;  %v3845_v45 = vadd.f32 1.0, %v4941_v61  ;;  %v3886_v16 = vpop.permute.xlu1 %3885 }
 0x416   : > { %v4945_v6 = vpop.eup %4944  ;;  %v3476_v20 = vmul.f32 %v4943_v38, %v3465_v41  ;;  %v3888_v59 = vpop.permute.xlu0 %3887 }
 0x417   : > { %v4947_v54 = vpop.eup %4946  ;;  %4956 = vrcp.f32 %v3845_v45  ;;  %v3846_v60 = vadd.f32 1.0, %v4945_v6 }
 0x418   : > { %v3554_v47 = vrot.slane %v3476_v20, 6  ;;  %v3477_v46 = vmul.f32 %v4947_v54, %v3467_v31  ;;  %3482 = vperm.xlu1 %4726, %v3476_v20   ;;  %v3509_v15 = vsub.f32 1.0, %v3476_v20  ;;  %v4976_v31 = vld [vmem:[%s5318_s24 + $0x18] sm:$0xff] }
 0x419   : > { %v4949_v0 = vpop.eup %4948  ;;  %4958 = vrcp.f32 %v3846_v60  ;;  %v3074_v30 = vpop.permute.xlu1 %3073  ;;  %v3089_v29 = vmul.f32 %v4976_v31, %v7334_v49 }
 0x41a   : > { %v3555_v21 = vrot.slane %v3477_v46, 6  ;;  %v3478_v55 = vmul.f32 %v4949_v0, %v3469_v4  ;;  %3486 = vperm.xlu0 %4727, %v3477_v46   ;;  %v4951_v43 = vpop.eup %4950  ;;  %v3078_v57 = vpop.permute.xlu0 %3077  ;;  %v3082_v42 = vrot.slane %v3074_v30, 6  ;;  %v3510_v23 = vsub.f32 1.0, %v3477_v46 }
 0x41b   : > { %v3479_v19 = vmul.f32 %v4951_v43, %v3471_v58  ;;  %v3084_v53 = vrot.slane %v3078_v57, 6 }
 0x41c   : > { %v3556_v8 = vsel %vm647_vm7, %v3554_v47, %v3555_v21  ;;  %v3557_v33 = vrot.slane %v3478_v55, 6  ;;  %3490 = vperm.xlu1 %4726, %v3478_v55   ;;  %v3511_v24 = vsub.f32 1.0, %v3478_v55  ;;  %v3083_v26 = vsel %vm647_vm7, %v3080_v5, %v3082_v42 }
 0x41d   : > { %v4953_v11 = vpop.eup %4952  ;;  %v3099_v25 = vpop.permute.xlu1 %3098  ;;  %v3559_v37 = vrot.slane %v3479_v19, 6  ;;  %v3564_v12 = vsel %vm703_vm8, %v3556_v8, 0.0  ;;  %v3512_v34 = vsub.f32 1.0, %v3479_v19  ;;  %v3085_v6 = vsel %vm647_vm7, %v3082_v42, %v3084_v53  ;;  %v4978_v8 = vld [vmem:[%s5318_s24 + $0x28] sm:$0xff] }
 0x41e   : > { %v3558_v56 = vsel %vm647_vm7, %v3555_v21, %v3557_v33  ;;  %v7392_v35 = vmul.f32 %v4953_v11, %v3882_v27  ;;  %3494 = vperm.xlu0 %4727, %v3479_v19   ;;  %v4955_v18 = vpop.eup %4954  ;;  %v3116_v1 = vmul.f32 %v7240_v13, %v3099_v25  ;;  %v3104_v17 = vpop.permute.xlu0 %3103  ;;  %v4977_v27 = vld [vmem:[%s5318_s24 + $0x20] sm:$0xff] }
 0x41f   : > { %v3565_v40 = vsel %vm703_vm8, %v3558_v56, 0.0  ;;  %v3560_v14 = vsel %vm647_vm7, %v3557_v33, %v3559_v37  ;;  %v7403_v36 = vmul.f32 %v4955_v18, %v3884_v3  ;;  %v3117_v48 = vmul.f32 %v7240_v13, %v3104_v17 }
 0x420   : > { %v3566_v28 = vadd.f32 %v3565_v40, %v3564_v12  ;;  %3515 = vperm.xlu1 %4726, %v3509_v15   ;;  %v3567_v22 = vsel %vm703_vm8, %v3560_v14, 0.0  ;;  %v3971_v9 = vrot.slane %v7392_v35, 6  ;;  %v3124_v51 = vrot.slane %v3116_v1, 6 }
 0x421   : > { %v4957_v44 = vpop.eup %4956  ;;  %v3109_v41 = vpop.permute.xlu1 %3108  ;;  %v3972_v4 = vrot.slane %v7403_v36, 6  ;;  %v3090_v63 = vmul.f32 %v4977_v27, %v3083_v26  ;;  %v3125_v3 = vrot.slane %v3117_v48, 6  ;;  %v3091_v33 = vmul.f32 %v4978_v8, %v3085_v6 }
 0x422   : > { %v3568_v52 = vadd.f32 %v3567_v22, %v3566_v28  ;;  %v7405_v32 = vmul.f32 %v4957_v44, %v3886_v16  ;;  %v3118_v39 = vmul.f32 %v7240_v13, %v3109_v41  ;;  %3520 = vperm.xlu0 %4727, %v3510_v23   ;;  %v3114_v7 = vpop.permute.xlu0 %3113  ;;  %v3926_v37 = vsub.f32 1.0, %v7392_v35 }
 0x423   : > { %v4959_v5 = vpop.eup %4958  ;;  %v3973_v2 = vsel %vm647_vm7, %v3971_v9, %v3972_v4  ;;  %v3119_v38 = vmul.f32 %v7240_v13, %v3114_v7  ;;  %v3126_v60 = vsel %vm647_vm7, %v3124_v51, %v3125_v3  ;;  %v3927_v12 = vsub.f32 1.0, %v7403_v36 }
 0x424   : > { %v3569_v58 = vrot.slane %v3568_v52, 4  ;;  %v3974_v62 = vrot.slane %v7405_v32, 6  ;;  %v3896_v50 = vmul.f32 %v4959_v5, %v3888_v59  ;;  %3525 = vperm.xlu1 %4726, %v3511_v24   ;;  %v3127_v61 = vrot.slane %v3118_v39, 6 }
 0x425   : > { %v3981_v49 = vsel %vm703_vm8, %v3973_v2, 0.0  ;;  %v3134_v0 = vadd.f32 %v3126_v60, %v3089_v29  ;;  %v3129_v55 = vrot.slane %v3119_v38, 6  ;;  %v3928_v1 = vsub.f32 1.0, %v7405_v32 }
 0x426   : > { %v3570_v45 = vadd.f32 %v3569_v58, %v3568_v52  ;;  %v3975_v16 = vsel %vm647_vm7, %v3972_v4, %v3974_v62  ;;  %3530 = vperm.xlu0 %4727, %v3512_v34   ;;  %v3976_v54 = vrot.slane %v3896_v50, 6  ;;  %v3128_v59 = vsel %vm647_vm7, %v3125_v3, %v3127_v61 }
 0x427   : > { %v3982_v20 = vsel %vm703_vm8, %v3975_v16, 0.0  ;;  %v3135_v30 = vadd.f32 %v3128_v59, %v3090_v63  ;;  %4341 = vst.msk [vmem:[%s7345_s26 + $0x18] sm:$0xff] %vm393_vm0, %v3134_v0  ;;  %v3130_v42 = vsel %vm647_vm7, %v3127_v61, %v3129_v55 }
 0x428   : > { %v3571_v47 = vrot.slane %v3570_v45, 2  ;;  %v3983_v46 = vadd.f32 %v3982_v20, %v3981_v49  ;;  %3899 = vperm.xlu1 %4726, %v7392_v35   ;;  %v3977_v21 = vsel %vm647_vm7, %v3974_v62, %v3976_v54  ;;  %v3136_v25 = vadd.f32 %v3130_v42, %v3091_v33 }
 0x429   : > { %v3984_v57 = vsel %vm703_vm8, %v3977_v21, 0.0  ;;  %4342 = vst.msk [vmem:[%s7345_s26 + $0x20] sm:$0xff] %vm393_vm0, %v3135_v30  ;;  %v3929_v35 = vsub.f32 1.0, %v3896_v50 }
 0x42a   : > { %v3572_v43 = vadd.f32 %v3571_v47, %v3570_v45  ;;  %3903 = vperm.xlu0 %4727, %v7403_v36   ;;  %v3985_v19 = vadd.f32 %v3984_v57, %v3983_v46  ;;  %4343 = vst.msk [vmem:[%s7345_s26 + $0x28] sm:$0xff] %vm393_vm0, %v3136_v25 }
 0x42c   : > { %v3573_v11 = vrot.slane %v3572_v43, 1  ;;  %3907 = vperm.xlu1 %4726, %v7405_v32   ;;  %v3986_v15 = vrot.slane %v3985_v19, 4 }
 0x42e   : > { %v3574_v56 = vadd.f32 %v3573_v11, %v3572_v43  ;;  %3911 = vperm.xlu0 %4727, %v3896_v50   ;;  %v3987_v18 = vadd.f32 %v3986_v15, %v3985_v19 }
 0x430   : > { %v3579_v23 = vadd.f32 %v3574_v56, %v7187_v10  ;;  %3932 = vperm.xlu1 %4726, %v3926_v37   ;;  %v3988_v40 = vrot.slane %v3987_v18, 2 }
 0x432   : > { %3937 = vperm.xlu0 %4727, %v3927_v12   ;;  %v3989_v17 = vadd.f32 %v3988_v40, %v3987_v18 }
 0x434   : > { %3942 = vperm.xlu1 %4726, %v3928_v1   ;;  %v3990_v24 = vrot.slane %v3989_v17, 1 }
 0x436   : > { %3947 = vperm.xlu0 %4727, %v3929_v35   ;;  %v3991_v28 = vadd.f32 %v3990_v24, %v3989_v17 }
 0x438   : > { %v3996_v10 = vadd.f32 %v3991_v28, %v3579_v23 }
 0x43a   : > { %3999 = vst.msk [vmem:[%s377_s28] sm:$0x1] %vm3997_vm9, %v3996_v10 }
 0x43b   : > { %4998 = shalt.err (!%p4995_p3)
}
 0x43c   : > { %s4999_s17 = scalar_lea.hbm %s7453_s0, 1536  ;;  %s5003_s16 = scalar_lea.hbm %s7580_s6, 3072 }
 0x43d   : > { %p5000_p4 = scmp.ne.s32.totalorder %s7453_s0, %s4999_s17  ;;  %p5004_p9 = scmp.lt.u32.totalorder %s7453_s0, %s7580_s6 }
 0x43e   : > { %p5005_p10 = scmp.lt.u32.totalorder %s5003_s16, %s4999_s17  ;;  %p5007_p12 = scmp.lt.u32.totalorder %s4999_s17, %s7453_s0 }
 0x43f   : > { %p5001_p7 = pnand %p5000_p4, %p5183_p5 }
 0x440   : > { %p5006_p11 = por %p5005_p10, %p5004_p9 }
 0x441   : > { %p5002_p8 = pneg %p5001_p7 }
 0x442   : > { %p5008_p13 = por %p5007_p12, %p5006_p11 }
 0x444   : > { %p5009_p0 = pnand %p5008_p13, %p5002_p8 }
 0x446   : > { %5012 = shalt.err (!%p5009_p0)
}
 0x447   : > { %s5092_s2 = smov 128   ;;  %s5093_s27 = smov 8   ;;  %v4979_v7 = vld [vmem:[%s5318_s24 + $0x30] sm:$0xff]  ;;  %v4980_v3 = vld [vmem:[%s5318_s24 + $0x38] sm:$0xff]  ;;  %v4981_v6 = vld [vmem:[%s5318_s24 + $0x40] sm:$0xff] }
 0x448   : > { %4670 = dma.vmem_to_hbm [thread:$0]  (%p5183_p5), %s7446_s22, 1536, %s7453_s0, %s4001_s1, %s5092_s2, %s5092_s2, %s5093_s27  }
 0x449   : > { %v4982_v18 = vld [vmem:[%s5318_s24 + $0x48] sm:$0xff]  ;;  %v4983_v24 = vld [vmem:[%s5318_s24 + $0x50] sm:$0xff]  ;;  %s4041_s0 = sshll.u32 %s7345_s26, 4  ;;  %s7524_s17 = scalar_lea.hbm %s7581_s7, %s4668_s25  ;;  %s7526_s0 = int_to_ptr.vmem [resolvable:$true] %s4041_s0 }
 0x44a   : > { %s5013_s28 = scalar_lea.vmem %s7526_s0, 1536  ;;  %s5094_s29 = smov [#allocation4]  }
 0x44b   : > { %p5014_p1 = scmp.ne.s32.totalorder %s7526_s0, %s5013_s28  ;;  %s5017_s13 = sshll.u32 %s5094_s29, 4  ;;  %s5018_s13 = int_to_ptr.vmem [resolvable:$false] %s5017_s13 }
 0x44c   : > { %s5019_s16 = scalar_lea.vmem %s5018_s13, 3072  ;;  %p5020_p4 = scmp.lt.s32.totalorder %s7526_s0, %s5018_s13 }
 0x44d   : > { %p5015_p2 = pnand %p5014_p1, %p5183_p5  ;;  %p5021_p7 = scmp.lt.s32.totalorder %s5019_s16, %s5013_s28 }
 0x44f   : > { %p5016_p3 = pneg %p5015_p2  ;;  %p5022_p8 = por %p5021_p7, %p5020_p4 }
 0x451   : > { %p5023_p9 = pnand %p5022_p8, %p5016_p3 }
 0x497   : > { %v3483_v14 = vpop.permute.xlu1 %3482 }
 0x498   : > { %v3496_v9 = vrot.slane %v3483_v14, 6 }
 0x499   : > { %v3487_v26 = vpop.permute.xlu0 %3486 }
 0x49a   : > { %v3497_v36 = vrot.slane %v3487_v26, 6 }
 0x49b   : > { %v3491_v44 = vpop.permute.xlu1 %3490 }
 0x49c   : > { %v3499_v41 = vrot.slane %v3491_v44, 6  ;;  %v3498_v48 = vsel %vm647_vm7, %v3496_v9, %v3497_v36  ;;  %v4984_v44 = vld [vmem:[%s5318_s24 + $0x58] sm:$0xff]  ;;  %s4006_s24 = scalar_lea.sflag [#allocation5], %s7235_s23 }
 0x49d   : > { %v3495_v22 = vpop.permute.xlu0 %3494  ;;  %v3506_v58 = vmul.f32 %v4979_v7, %v3498_v48 }
 0x49e   : > { %v3501_v39 = vrot.slane %v3495_v22, 6  ;;  %v3500_v34 = vsel %vm647_vm7, %v3497_v36, %v3499_v41 }
 0x49f   : > { %v3516_v53 = vpop.permute.xlu1 %3515  ;;  %v3507_v61 = vmul.f32 %v4980_v3, %v3500_v34 }
 0x4a0   : > { %v3533_v52 = vmul.f32 %v7240_v13, %v3516_v53  ;;  %v3502_v50 = vsel %vm647_vm7, %v3499_v41, %v3501_v39 }
 0x4a1   : > { %v3521_v32 = vpop.permute.xlu0 %3520  ;;  %v3508_v20 = vmul.f32 %v4981_v6, %v3502_v50 }
 0x4a2   : > { %v3541_v5 = vrot.slane %v3533_v52, 6  ;;  %v3534_v31 = vmul.f32 %v7240_v13, %v3521_v32 }
 0x4a3   : > { %v3526_v29 = vpop.permute.xlu1 %3525 }
 0x4a4   : > { %v3542_v4 = vrot.slane %v3534_v31, 6  ;;  %v3535_v51 = vmul.f32 %v7240_v13, %v3526_v29 }
 0x4a5   : > { %v3531_v62 = vpop.permute.xlu0 %3530 }
 0x4a6   : > { %v3543_v27 = vsel %vm647_vm7, %v3541_v5, %v3542_v4  ;;  %v3544_v63 = vrot.slane %v3535_v51, 6  ;;  %v3536_v2 = vmul.f32 %v7240_v13, %v3531_v62 }
 0x4a7   : > { %v3551_v38 = vadd.f32 %v3543_v27, %v3506_v58  ;;  %v3900_v45 = vpop.permute.xlu1 %3899 }
 0x4a8   : > { %v3545_v49 = vsel %vm647_vm7, %v3542_v4, %v3544_v63  ;;  %v3546_v16 = vrot.slane %v3536_v2, 6  ;;  %v3913_v30 = vrot.slane %v3900_v45, 6 }
 0x4a9   : > { %4365 = vst.msk [vmem:[%s7345_s26 + $0x30] sm:$0xff] %vm393_vm0, %v3551_v38  ;;  %v3552_v54 = vadd.f32 %v3545_v49, %v3507_v61  ;;  %v3904_v60 = vpop.permute.xlu0 %3903 }
 0x4aa   : > { %v3547_v59 = vsel %vm647_vm7, %v3544_v63, %v3546_v16  ;;  %v3914_v21 = vrot.slane %v3904_v60, 6 }
 0x4ab   : > { %4366 = vst.msk [vmem:[%s7345_s26 + $0x38] sm:$0xff] %vm393_vm0, %v3552_v54  ;;  %v3553_v47 = vadd.f32 %v3547_v59, %v3508_v20  ;;  %v3908_v46 = vpop.permute.xlu1 %3907 }
 0x4ac   : > { %v3916_v43 = vrot.slane %v3908_v46, 6  ;;  %v3915_v33 = vsel %vm647_vm7, %v3913_v30, %v3914_v21 }
 0x4ad   : > { %4367 = vst.msk [vmem:[%s7345_s26 + $0x40] sm:$0xff] %vm393_vm0, %v3553_v47  ;;  %v3912_v0 = vpop.permute.xlu0 %3911  ;;  %v3923_v23 = vmul.f32 %v4982_v18, %v3915_v33 }
 0x4ae   : > { %v3918_v19 = vrot.slane %v3912_v0, 6  ;;  %v3917_v15 = vsel %vm647_vm7, %v3914_v21, %v3916_v43 }
 0x4af   : > { %v3933_v55 = vpop.permute.xlu1 %3932  ;;  %v3924_v28 = vmul.f32 %v4983_v24, %v3917_v15 }
 0x4b0   : > { %v3950_v57 = vmul.f32 %v7240_v13, %v3933_v55  ;;  %v3919_v40 = vsel %vm647_vm7, %v3916_v43, %v3918_v19 }
 0x4b1   : > { %v3938_v8 = vpop.permute.xlu0 %3937  ;;  %v3925_v22 = vmul.f32 %v4984_v44, %v3919_v40 }
 0x4b2   : > { %v3958_v42 = vrot.slane %v3950_v57, 6  ;;  %v3951_v11 = vmul.f32 %v7240_v13, %v3938_v8 }
 0x4b3   : > { %v3943_v25 = vpop.permute.xlu1 %3942 }
 0x4b4   : > { %v3959_v56 = vrot.slane %v3951_v11, 6  ;;  %v3952_v37 = vmul.f32 %v7240_v13, %v3943_v25 }
 0x4b5   : > { %v3948_v12 = vpop.permute.xlu0 %3947 }
 0x4b6   : > { %v3960_v1 = vsel %vm647_vm7, %v3958_v42, %v3959_v56  ;;  %v3961_v17 = vrot.slane %v3952_v37, 6  ;;  %v3953_v35 = vmul.f32 %v7240_v13, %v3948_v12 }
 0x4b7   : > { %v3968_v10 = vadd.f32 %v3960_v1, %v3923_v23 }
 0x4b8   : > { %v3962_v14 = vsel %vm647_vm7, %v3959_v56, %v3961_v17  ;;  %v3963_v26 = vrot.slane %v3953_v35, 6 }
 0x4b9   : > { %4389 = vst.msk [vmem:[%s7345_s26 + $0x48] sm:$0xff] %vm393_vm0, %v3968_v10  ;;  %v3969_v9 = vadd.f32 %v3962_v14, %v3924_v28 }
 0x4ba   : > { %v3964_v36 = vsel %vm647_vm7, %v3961_v17, %v3963_v26 }
 0x4bb   : > { %4390 = vst.msk [vmem:[%s7345_s26 + $0x50] sm:$0xff] %vm393_vm0, %v3969_v9  ;;  %v3970_v13 = vadd.f32 %v3964_v36, %v3925_v22 }
 0x4bd   : > { %4391 = vst.msk [vmem:[%s7345_s26 + $0x58] sm:$0xff] %vm393_vm0, %v3970_v13 }
 0x4be   : > { %5026 = shalt.err (!%p5023_p9)
}
 0x4bf   : > { %s5027_s26 = scalar_lea.hbm %s7524_s17, 1536  ;;  %s5031_s14 = scalar_lea.hbm %s7581_s7, 3072 }
 0x4c0   : > { %p5028_p10 = scmp.ne.s32.totalorder %s7524_s17, %s5027_s26  ;;  %p5032_p13 = scmp.lt.u32.totalorder %s7524_s17, %s7581_s7 }
 0x4c1   : > { %p5033_p0 = scmp.lt.u32.totalorder %s5031_s14, %s5027_s26  ;;  %p5035_p2 = scmp.lt.u32.totalorder %s5027_s26, %s7524_s17 }
 0x4c2   : > { %p5029_p11 = pnand %p5028_p10, %p5183_p5 }
 0x4c3   : > { %p5034_p1 = por %p5033_p0, %p5032_p13 }
 0x4c4   : > { %p5030_p12 = pneg %p5029_p11 }
 0x4c5   : > { %p5036_p3 = por %p5035_p2, %p5034_p1 }
 0x4c7   : > { %p5037_p4 = pnand %p5036_p3, %p5030_p12 }
 0x4c9   : > { %5040 = shalt.err (!%p5037_p4)
}
 0x4ca   : > { %4671 = dma.vmem_to_hbm [thread:$0]  (%p5183_p5), %s7526_s0, 1536, %s7524_s17, %s4006_s24, %s5092_s2, %s5092_s2, %s5093_s27  }
 0x4cb PF: > { %p4681_p7 = scmp.ge.s32.totalorder %s5079_s12, 2  ;;  %s4062_s28 = sand.u32 1, %s5067_s30  }
 0x4cc   : > { %s4063_s29 = scalar_lea.sflag [#allocation3], %s4062_s28 }
 0x4cd   : > { %p4675_p8 = pnand %p4681_p7, %p5187_p6 }
 0x4cf   : > { %5058 = dma.done.wait (!%p4675_p8), %s4063_s29, 1536  }
 0x4d0   : > { %5060 = vsyncadd (!%p4675_p8), %s4063_s29, 4294965760  ;;  %s4072_s19 = scalar_lea.sflag [#allocation5], %s4062_s28 }
 0x4d1   : > { %5062 = dma.done.wait (!%p4675_p8), %s4072_s19, 1536  }
 0x4d2   : > { %5064 = vsyncadd (!%p4675_p8), %s4072_s19, 4294965760  ;;  %p23_p5 = scmp.ge.s32.totalorder %s5170_s15, 4   ;;  %s7883_s30 = smov %s5071_s10 }
 0x4d3   : > { %s7884_s10 = smov %s5075_s11  ;;  %s7885_s11 = smov %s5181_s18 }
 0x4d4   : > { %s7886_s12 = smov %s5170_s15  ;;  %25 = sbr.rel (!%p23_p5) target bundleno = 9 (0x9), region = 166 }
 0x4db   :  { %4089 = vsyncpa [#allocation3], 1 }
 0x4dc   :  { %4091 = vsyncpa [#allocation3 + $0x1], 1 }
 0x4dd   :  { %4092 = vsyncpa [#allocation5], 1 }
 0x4de   :  { %4094 = vsyncpa [#allocation5 + $0x1], 1 }

</bundles_post_ra>
